<compile_context>
chip_gen: v7x
topology: tpu7x:2x2x1
jax: 0.10.0
libtpu: 0.0.40
codegen_flags: <defaults>
</compile_context>

<pallas_src>
import numpy as np

import jax
import jax.numpy as jnp
from jax.experimental import pallas as pl
from jax.experimental.pallas import tpu as pltpu


# ----------------------------------------------------------------------------
# Model / layout constants
# ----------------------------------------------------------------------------
CIN, C1, C2 = 4, 8, 16          # channels: input, conv1 out, conv2 out
H = W = 16                      # input spatial size
KH = KW = 3                     # conv kernel size
NTAP = KH * KW                  # 9
NCLS = 10                       # classifier outputs
H2 = W2 = 8                     # conv2 output spatial size (stride 2)

WP = W + 2                      # 18: padded row stride of the flat spatial layout
QN = H * WP                     # 288: dense positions per image
XLEN = (H + 3) * WP             # 342: flat padded input length (1 top / 2 bottom pad rows)
PADOFF = WP + 1                 # 19: left shift so conv1's output is conv2-padded
XROW = 512                      # lane length of one flat input row (19 + 342 + tail zeros)
A1LEN = 384                     # conv1 output / conv2 input lane length
OPAD = 128                      # lane-dense padded class dimension
BB = 8                          # images per grid step


# ----------------------------------------------------------------------------
# Constant selector matrices (built once in numpy)
# ----------------------------------------------------------------------------
_p = np.arange(A1LEN)
# valid conv1 output lanes: act1 sits at [19, 19+288) and columns q%18<16 are real
_MASK1_NP = ((_p >= PADOFF) & (_p < PADOFF + QN)
             & (((_p - PADOFF) % WP) < W)).astype(np.float32).reshape(1, A1LEN)
# block-diagonal channel selector:  [BB*C2, C2*NCLS], row b*C2+c2 keeps column block c2
_DM_NP = np.tile(np.repeat(np.eye(C2, dtype=np.float32), NCLS, axis=1), (BB, 1))
# per-image row-group sum:          [BB, BB*C2]
_RS_NP = np.repeat(np.eye(BB, dtype=np.float32), C2, axis=1)
# collapse the C2 column groups onto padded class lanes:  [C2*NCLS, OPAD]
_CS_NP = np.pad(np.tile(np.eye(NCLS, dtype=np.float32), (C2, 1)),
                ((0, 0), (0, OPAD - NCLS)))


# ----------------------------------------------------------------------------
# Fused kernel: conv1 + ReLU + conv2 + ReLU + flatten + linear for BB images
# ----------------------------------------------------------------------------
def _cnn_block_kernel(x_ref, w1_ref, b1_ref, w2_ref, b2_ref, mask_ref,
                      r_ref, dm_ref, rs_ref, cs_ref, fcb_ref, o_ref):
    f32 = jnp.float32
    xv = x_ref[...]                                                 # [BB*CIN, XROW]
    offs = [i * WP + j for i in range(KH) for j in range(KW)]

    # ---- conv1: all 9 taps for all BB images stacked along sublanes -> 1 matmul.
    st1 = jnp.concatenate([xv[:, off:off + A1LEN] for off in offs], axis=0)
    acc1 = jnp.dot(w1_ref[...], st1, preferred_element_type=f32)    # [BB*C1, A1LEN]
    # bias + ReLU; the mask zeroes the pad lanes so acc1's layout is directly the
    # zero-padded conv2 input (act1 lives at lanes [19, 19+288), wrap cols zeroed).
    a1p = jnp.maximum(acc1 + b1_ref[...], 0.0) * mask_ref[...]      # [BB*C1, A1LEN]

    # ---- conv2 (3x3, dense; the stride-2 subsample is folded into the FC selector).
    st2 = jnp.concatenate([a1p[:, off:off + QN] for off in offs], axis=0)
    acc2 = jnp.dot(w2_ref[...], st2, preferred_element_type=f32)    # [BB*C2, QN]
    act2 = jnp.maximum(acc2 + b2_ref[...], 0.0)

    # ---- FC head: one contraction over positions, then block-diagonal channel
    #      selection + per-image row sum + class-lane collapse (all small matmuls).
    g = jnp.dot(act2, r_ref[...], preferred_element_type=f32)       # [BB*C2, C2*NCLS]
    gm = g * dm_ref[...]
    hsum = jnp.dot(rs_ref[...], gm, preferred_element_type=f32)     # [BB, C2*NCLS]
    logits = jnp.dot(hsum, cs_ref[...], preferred_element_type=f32)  # [BB, OPAD]

    o_ref[...] = (logits + fcb_ref[...]).astype(o_ref.dtype)        # lane-dense store


# ----------------------------------------------------------------------------
# Wrapper: weight / layout transforms + the single pallas_call
# ----------------------------------------------------------------------------
def _prepare_params(params):
    # Tap-major conv weights, block-diagonal over the BB images in a step.
    w1t = params["conv1_w"].transpose(0, 2, 3, 1).reshape(C1, NTAP, CIN)  # [co,t,ci]
    w2t = params["conv2_w"].transpose(0, 2, 3, 1).reshape(C2, NTAP, C1)
    eye_b = jnp.eye(BB, dtype=jnp.float32)
    w1_bd = jnp.einsum('bp,ctk->bctpk', eye_b, w1t).reshape(BB * C1, NTAP * BB * CIN)
    w2_bd = jnp.einsum('bp,ctk->bctpk', eye_b, w2t).reshape(BB * C2, NTAP * BB * C1)
    b1_bd = jnp.tile(params["conv1_b"], BB).reshape(BB * C1, 1)
    b2_bd = jnp.tile(params["conv2_b"], BB).reshape(BB * C2, 1)

    # FC selector R [QN, C2*NCLS]: nonzero only at the 64 stride-2 output positions,
    # reproducing torch's NCHW flatten order (feature = c2*64 + ho*8 + wo).
    fc4 = params["fc_w"].reshape(NCLS, C2, H2, W2)
    rhw = jnp.zeros((H, WP, C2, NCLS), jnp.float32)
    rhw = rhw.at[0::2, 0:W:2, :, :].set(fc4.transpose(2, 3, 1, 0))   # [ho,wo,c2,o]
    r_mat = rhw.reshape(QN, C2 * NCLS)

    fcb = jnp.zeros((1, OPAD), jnp.float32).at[0, :NCLS].set(params["fc_b"])
    return w1_bd, b1_bd, w2_bd, b2_bd, r_mat, fcb


def parsable_cnn_forward(x_nchw, params):
    n = x_nchw.shape[0]
    n_pad = ((n + BB - 1) // BB) * BB
    grid_n = n_pad // BB

    # Flat input rows: [19 zeros][342 flat padded image (row stride 18)][tail zeros].
    xp = jnp.pad(x_nchw.astype(jnp.float32),
                 ((0, n_pad - n), (0, 0), (1, 2), (1, 1)))           # [n_pad,CIN,19,18]
    xp = xp.reshape(n_pad, CIN, XLEN)
    xp = jnp.pad(xp, ((0, 0), (0, 0), (PADOFF, XROW - XLEN - PADOFF)))
    xb = xp.reshape(n_pad * CIN, XROW)

    w1_bd, b1_bd, w2_bd, b2_bd, r_mat, fcb = _prepare_params(params)
    mask1 = jnp.asarray(_MASK1_NP)
    dm = jnp.asarray(_DM_NP)
    rs = jnp.asarray(_RS_NP)
    cs = jnp.asarray(_CS_NP)

    flops_blk = 2 * ((BB * C1) * (NTAP * BB * CIN) * A1LEN
                     + (BB * C2) * (NTAP * BB * C1) * QN
                     + (BB * C2) * QN * (C2 * NCLS)
                     + BB * (BB * C2) * (C2 * NCLS)
                     + BB * (C2 * NCLS) * OPAD)
    bytes_accessed = 4 * (xb.size + w1_bd.size + b1_bd.size + w2_bd.size
                          + b2_bd.size + r_mat.size + mask1.size + dm.size
                          + rs.size + cs.size + fcb.size + n_pad * OPAD)

    out = pl.pallas_call(
        _cnn_block_kernel,
        out_shape=jax.ShapeDtypeStruct((n_pad, OPAD), jnp.float32),
        grid=(grid_n,),
        in_specs=[
            pl.BlockSpec((BB * CIN, XROW), lambda nb: (nb, 0)),               # images
            pl.BlockSpec((BB * C1, NTAP * BB * CIN), lambda nb: (0, 0)),      # conv1 W
            pl.BlockSpec((BB * C1, 1), lambda nb: (0, 0)),                    # conv1 b
            pl.BlockSpec((BB * C2, NTAP * BB * C1), lambda nb: (0, 0)),       # conv2 W
            pl.BlockSpec((BB * C2, 1), lambda nb: (0, 0)),                    # conv2 b
            pl.BlockSpec((1, A1LEN), lambda nb: (0, 0)),                      # valid mask
            pl.BlockSpec((QN, C2 * NCLS), lambda nb: (0, 0)),                 # FC selector
            pl.BlockSpec((BB * C2, C2 * NCLS), lambda nb: (0, 0)),            # diag mask
            pl.BlockSpec((BB, BB * C2), lambda nb: (0, 0)),                   # row sum
            pl.BlockSpec((C2 * NCLS, OPAD), lambda nb: (0, 0)),               # class collapse
            pl.BlockSpec((1, OPAD), lambda nb: (0, 0)),                       # FC bias
        ],
        out_specs=pl.BlockSpec((BB, OPAD), lambda nb: (nb, 0)),
        compiler_params=pltpu.CompilerParams(
            dimension_semantics=("parallel",),
            vmem_limit_bytes=32 * 1024 * 1024),
        cost_estimate=pl.CostEstimate(flops=grid_n * flops_blk, transcendentals=0,
                                      bytes_accessed=bytes_accessed),
    )(xb, w1_bd, b1_bd, w2_bd, b2_bd, mask1, r_mat, dm, rs, cs, fcb)

    return out[:n, :NCLS]


# ----------------------------------------------------------------------------
# Pure-JAX reference (for the correctness check) and parameter init
# ----------------------------------------------------------------------------
def reference_forward(x_nchw, params):
    hi = jax.lax.Precision.HIGHEST
    y = jax.lax.conv_general_dilated(
        x_nchw, params["conv1_w"], (1, 1), ((1, 1), (1, 1)),
        dimension_numbers=("NCHW", "OIHW", "NCHW"), precision=hi)
    y = jax.nn.relu(y + params["conv1_b"][None, :, None, None])
    y = jax.lax.conv_general_dilated(
        y, params["conv2_w"], (2, 2), ((1, 1), (1, 1)),
        dimension_numbers=("NCHW", "OIHW", "NCHW"), precision=hi)
    y = jax.nn.relu(y + params["conv2_b"][None, :, None, None])
    y = y.reshape(y.shape[0], -1)
    return jnp.dot(y, params["fc_w"].T, precision=hi) + params["fc_b"]


def init_params():
    key = jax.random.PRNGKey(0)
    k1, k2, k3, k4, k5, k6 = jax.random.split(key, 6)
    return {
        "conv1_w": 0.1 * jax.random.normal(k1, (C1, CIN, KH, KW), jnp.float32),
        "conv1_b": 0.1 * jax.random.normal(k2, (C1,), jnp.float32),
        "conv2_w": 0.1 * jax.random.normal(k3, (C2, C1, KH, KW), jnp.float32),
        "conv2_b": 0.1 * jax.random.normal(k4, (C2,), jnp.float32),
        "fc_w":    0.05 * jax.random.normal(k5, (NCLS, C2 * H2 * W2), jnp.float32),
        "fc_b":    0.05 * jax.random.normal(k6, (NCLS,), jnp.float32),
    }


if __name__ == "__main__":
    params = init_params()
    x = jax.random.normal(jax.random.PRNGKey(0), (2, CIN, H, W), jnp.float32)  # NCHW

    fwd = jax.jit(parsable_cnn_forward)
    out = fwd(x, params)
    jax.block_until_ready(out)

    assert out.shape == (2, NCLS), out.shape
    assert out.dtype == jnp.float32

    ref = reference_forward(x, params)
    np.testing.assert_allclose(np.asarray(out), np.asarray(ref),
                               rtol=2e-3, atol=2e-3)
    print("KERNEL_OK")
</pallas_src>

<mosaic_0001>
module attributes {stable_mosaic.version = 11 : i64} {
  func.func @_cnn_block_kernel(%arg0: i32, %arg1: memref<32x512xf32, #tpu.memory_space<vmem>>, %arg2: memref<64x288xf32, #tpu.memory_space<vmem>>, %arg3: memref<64x1xf32, #tpu.memory_space<vmem>>, %arg4: memref<128x576xf32, #tpu.memory_space<vmem>>, %arg5: memref<128x1xf32, #tpu.memory_space<vmem>>, %arg6: memref<1x384xf32, #tpu.memory_space<vmem>>, %arg7: memref<288x160xf32, #tpu.memory_space<vmem>>, %arg8: memref<128x160xf32, #tpu.memory_space<vmem>>, %arg9: memref<8x128xf32, #tpu.memory_space<vmem>>, %arg10: memref<160x128xf32, #tpu.memory_space<vmem>>, %arg11: memref<1x128xf32, #tpu.memory_space<vmem>>, %arg12: memref<8x128xf32, #tpu.memory_space<vmem>>) attributes {dimension_semantics = [#tpu.dimension_semantics<parallel>], iteration_bounds = array<i64: 1>, scalar_prefetch = 0 : i64, scratch_operands = 0 : i64, tpu.core_type = #tpu.core_type<tc>, window_params = [{transform_indices = @transform_0, window_bounds = array<i64: 32, 512>}, {pipeline_mode = #tpu.pipeline_mode<synchronous>, transform_indices = @transform_1, window_bounds = array<i64: 64, 288>}, {pipeline_mode = #tpu.pipeline_mode<synchronous>, transform_indices = @transform_2, window_bounds = array<i64: 64, 1>}, {pipeline_mode = #tpu.pipeline_mode<synchronous>, transform_indices = @transform_3, window_bounds = array<i64: 128, 576>}, {pipeline_mode = #tpu.pipeline_mode<synchronous>, transform_indices = @transform_4, window_bounds = array<i64: 128, 1>}, {pipeline_mode = #tpu.pipeline_mode<synchronous>, transform_indices = @transform_5, window_bounds = array<i64: 1, 384>}, {pipeline_mode = #tpu.pipeline_mode<synchronous>, transform_indices = @transform_6, window_bounds = array<i64: 288, 160>}, {pipeline_mode = #tpu.pipeline_mode<synchronous>, transform_indices = @transform_7, window_bounds = array<i64: 128, 160>}, {pipeline_mode = #tpu.pipeline_mode<synchronous>, transform_indices = @transform_8, window_bounds = array<i64: 8, 128>}, {pipeline_mode = #tpu.pipeline_mode<synchronous>, transform_indices = @transform_9, window_bounds = array<i64: 160, 128>}, {pipeline_mode = #tpu.pipeline_mode<synchronous>, transform_indices = @transform_10, window_bounds = array<i64: 1, 128>}, {transform_indices = @transform_11, window_bounds = array<i64: 8, 128>}]} {
    %c0 = arith.constant 0 : index
    %c0_0 = arith.constant 0 : index
    %0 = vector.load %arg1[%c0, %c0_0] : memref<32x512xf32, #tpu.memory_space<vmem>>, vector<32x512xf32>
    %1 = vector.extract_strided_slice %0 {offsets = [0, 0], sizes = [32, 384], strides = [1, 1]} : vector<32x512xf32> to vector<32x384xf32>
    %2 = vector.extract_strided_slice %0 {offsets = [0, 1], sizes = [32, 384], strides = [1, 1]} : vector<32x512xf32> to vector<32x384xf32>
    %3 = vector.extract_strided_slice %0 {offsets = [0, 2], sizes = [32, 384], strides = [1, 1]} : vector<32x512xf32> to vector<32x384xf32>
    %4 = vector.extract_strided_slice %0 {offsets = [0, 18], sizes = [32, 384], strides = [1, 1]} : vector<32x512xf32> to vector<32x384xf32>
    %5 = vector.extract_strided_slice %0 {offsets = [0, 19], sizes = [32, 384], strides = [1, 1]} : vector<32x512xf32> to vector<32x384xf32>
    %6 = vector.extract_strided_slice %0 {offsets = [0, 20], sizes = [32, 384], strides = [1, 1]} : vector<32x512xf32> to vector<32x384xf32>
    %7 = vector.extract_strided_slice %0 {offsets = [0, 36], sizes = [32, 384], strides = [1, 1]} : vector<32x512xf32> to vector<32x384xf32>
    %8 = vector.extract_strided_slice %0 {offsets = [0, 37], sizes = [32, 384], strides = [1, 1]} : vector<32x512xf32> to vector<32x384xf32>
    %9 = vector.extract_strided_slice %0 {offsets = [0, 38], sizes = [32, 384], strides = [1, 1]} : vector<32x512xf32> to vector<32x384xf32>
    %10 = tpu.concatenate %1, %2, %3, %4, %5, %6, %7, %8, %9 in 0 : vector<32x384xf32>, vector<32x384xf32>, vector<32x384xf32>, vector<32x384xf32>, vector<32x384xf32>, vector<32x384xf32>, vector<32x384xf32>, vector<32x384xf32>, vector<32x384xf32> -> vector<288x384xf32>
    %c0_1 = arith.constant 0 : index
    %c0_2 = arith.constant 0 : index
    %11 = vector.load %arg2[%c0_1, %c0_2] : memref<64x288xf32, #tpu.memory_space<vmem>>, vector<64x288xf32>
    %cst = arith.constant dense<0.000000e+00> : vector<64x384xf32>
    %12 = tpu.matmul %11, %10, %cst {dimension_numbers = #tpu.dot_dimension_numbers<[1], [0], [0], [1], [0, 0, 1, 1], [], []>} : vector<64x288xf32>, vector<288x384xf32>, vector<64x384xf32> -> vector<64x384xf32>
    %c0_3 = arith.constant 0 : index
    %c0_4 = arith.constant 0 : index
    %13 = vector.load %arg3[%c0_3, %c0_4] : memref<64x1xf32, #tpu.memory_space<vmem>>, vector<64x1xf32>
    %14 = vector.broadcast %13 : vector<64x1xf32> to vector<64x384xf32>
    %15 = arith.addf %12, %14 : vector<64x384xf32>
    %cst_5 = arith.constant 0.000000e+00 : f32
    %16 = vector.broadcast %cst_5 : f32 to vector<64x384xf32>
    %17 = arith.maximumf %15, %16 : vector<64x384xf32>
    %c0_6 = arith.constant 0 : index
    %c0_7 = arith.constant 0 : index
    %18 = vector.load %arg6[%c0_6, %c0_7] : memref<1x384xf32, #tpu.memory_space<vmem>>, vector<1x384xf32>
    %19 = vector.broadcast %18 : vector<1x384xf32> to vector<64x384xf32>
    %20 = arith.mulf %17, %19 : vector<64x384xf32>
    %21 = vector.extract_strided_slice %20 {offsets = [0, 0], sizes = [64, 288], strides = [1, 1]} : vector<64x384xf32> to vector<64x288xf32>
    %22 = vector.extract_strided_slice %20 {offsets = [0, 1], sizes = [64, 288], strides = [1, 1]} : vector<64x384xf32> to vector<64x288xf32>
    %23 = vector.extract_strided_slice %20 {offsets = [0, 2], sizes = [64, 288], strides = [1, 1]} : vector<64x384xf32> to vector<64x288xf32>
    %24 = vector.extract_strided_slice %20 {offsets = [0, 18], sizes = [64, 288], strides = [1, 1]} : vector<64x384xf32> to vector<64x288xf32>
    %25 = vector.extract_strided_slice %20 {offsets = [0, 19], sizes = [64, 288], strides = [1, 1]} : vector<64x384xf32> to vector<64x288xf32>
    %26 = vector.extract_strided_slice %20 {offsets = [0, 20], sizes = [64, 288], strides = [1, 1]} : vector<64x384xf32> to vector<64x288xf32>
    %27 = vector.extract_strided_slice %20 {offsets = [0, 36], sizes = [64, 288], strides = [1, 1]} : vector<64x384xf32> to vector<64x288xf32>
    %28 = vector.extract_strided_slice %20 {offsets = [0, 37], sizes = [64, 288], strides = [1, 1]} : vector<64x384xf32> to vector<64x288xf32>
    %29 = vector.extract_strided_slice %20 {offsets = [0, 38], sizes = [64, 288], strides = [1, 1]} : vector<64x384xf32> to vector<64x288xf32>
    %30 = tpu.concatenate %21, %22, %23, %24, %25, %26, %27, %28, %29 in 0 : vector<64x288xf32>, vector<64x288xf32>, vector<64x288xf32>, vector<64x288xf32>, vector<64x288xf32>, vector<64x288xf32>, vector<64x288xf32>, vector<64x288xf32>, vector<64x288xf32> -> vector<576x288xf32>
    %c0_8 = arith.constant 0 : index
    %c0_9 = arith.constant 0 : index
    %31 = vector.load %arg4[%c0_8, %c0_9] : memref<128x576xf32, #tpu.memory_space<vmem>>, vector<128x576xf32>
    %cst_10 = arith.constant dense<0.000000e+00> : vector<128x288xf32>
    %32 = tpu.matmul %31, %30, %cst_10 {dimension_numbers = #tpu.dot_dimension_numbers<[1], [0], [0], [1], [0, 0, 1, 1], [], []>} : vector<128x576xf32>, vector<576x288xf32>, vector<128x288xf32> -> vector<128x288xf32>
    %c0_11 = arith.constant 0 : index
    %c0_12 = arith.constant 0 : index
    %33 = vector.load %arg5[%c0_11, %c0_12] : memref<128x1xf32, #tpu.memory_space<vmem>>, vector<128x1xf32>
    %34 = vector.broadcast %33 : vector<128x1xf32> to vector<128x288xf32>
    %35 = arith.addf %32, %34 : vector<128x288xf32>
    %cst_13 = arith.constant 0.000000e+00 : f32
    %36 = vector.broadcast %cst_13 : f32 to vector<128x288xf32>
    %37 = arith.maximumf %35, %36 : vector<128x288xf32>
    %c0_14 = arith.constant 0 : index
    %c0_15 = arith.constant 0 : index
    %38 = vector.load %arg7[%c0_14, %c0_15] : memref<288x160xf32, #tpu.memory_space<vmem>>, vector<288x160xf32>
    %cst_16 = arith.constant dense<0.000000e+00> : vector<128x160xf32>
    %39 = tpu.matmul %37, %38, %cst_16 {dimension_numbers = #tpu.dot_dimension_numbers<[1], [0], [0], [1], [0, 0, 1, 1], [], []>} : vector<128x288xf32>, vector<288x160xf32>, vector<128x160xf32> -> vector<128x160xf32>
    %c0_17 = arith.constant 0 : index
    %c0_18 = arith.constant 0 : index
    %40 = vector.load %arg8[%c0_17, %c0_18] : memref<128x160xf32, #tpu.memory_space<vmem>>, vector<128x160xf32>
    %41 = arith.mulf %39, %40 : vector<128x160xf32>
    %c0_19 = arith.constant 0 : index
    %c0_20 = arith.constant 0 : index
    %42 = vector.load %arg9[%c0_19, %c0_20] : memref<8x128xf32, #tpu.memory_space<vmem>>, vector<8x128xf32>
    %cst_21 = arith.constant dense<0.000000e+00> : vector<8x160xf32>
    %43 = tpu.matmul %42, %41, %cst_21 {dimension_numbers = #tpu.dot_dimension_numbers<[1], [0], [0], [1], [0, 0, 1, 1], [], []>} : vector<8x128xf32>, vector<128x160xf32>, vector<8x160xf32> -> vector<8x160xf32>
    %c0_22 = arith.constant 0 : index
    %c0_23 = arith.constant 0 : index
    %44 = vector.load %arg10[%c0_22, %c0_23] : memref<160x128xf32, #tpu.memory_space<vmem>>, vector<160x128xf32>
    %cst_24 = arith.constant dense<0.000000e+00> : vector<8x128xf32>
    %45 = tpu.matmul %43, %44, %cst_24 {dimension_numbers = #tpu.dot_dimension_numbers<[1], [0], [0], [1], [0, 0, 1, 1], [], []>} : vector<8x160xf32>, vector<160x128xf32>, vector<8x128xf32> -> vector<8x128xf32>
    %c0_25 = arith.constant 0 : index
    %c0_26 = arith.constant 0 : index
    %46 = vector.load %arg11[%c0_25, %c0_26] : memref<1x128xf32, #tpu.memory_space<vmem>>, vector<1x128xf32>
    %47 = vector.broadcast %46 : vector<1x128xf32> to vector<8x128xf32>
    %48 = arith.addf %45, %47 : vector<8x128xf32>
    %c0_27 = arith.constant 0 : index
    %c0_28 = arith.constant 0 : index
    %49 = vector.load %arg12[%c0_27, %c0_28] : memref<8x128xf32, #tpu.memory_space<vmem>>, vector<8x128xf32>
    tpu.vector_store %arg12[%c0_27, %c0_28], %48 {strides = array<i32>} : memref<8x128xf32, #tpu.memory_space<vmem>>, vector<8x128xf32>,
    return
  }
  func.func @transform_0(%arg0: i32) -> (i32, i32) {
    %c0_i32 = arith.constant 0 : i32
    %c0_i32_0 = arith.constant 0 : i32
    return %arg0, %c0_i32 : i32, i32
  }
  func.func @transform_1(%arg0: i32) -> (i32, i32) {
    %c0_i32 = arith.constant 0 : i32
    %c0_i32_0 = arith.constant 0 : i32
    %c0_i32_1 = arith.constant 0 : i32
    return %c0_i32, %c0_i32_0 : i32, i32
  }
  func.func @transform_2(%arg0: i32) -> (i32, i32) {
    %c0_i32 = arith.constant 0 : i32
    %c0_i32_0 = arith.constant 0 : i32
    %c0_i32_1 = arith.constant 0 : i32
    return %c0_i32, %c0_i32_0 : i32, i32
  }
  func.func @transform_3(%arg0: i32) -> (i32, i32) {
    %c0_i32 = arith.constant 0 : i32
    %c0_i32_0 = arith.constant 0 : i32
    %c0_i32_1 = arith.constant 0 : i32
    return %c0_i32, %c0_i32_0 : i32, i32
  }
  func.func @transform_4(%arg0: i32) -> (i32, i32) {
    %c0_i32 = arith.constant 0 : i32
    %c0_i32_0 = arith.constant 0 : i32
    %c0_i32_1 = arith.constant 0 : i32
    return %c0_i32, %c0_i32_0 : i32, i32
  }
  func.func @transform_5(%arg0: i32) -> (i32, i32) {
    %c0_i32 = arith.constant 0 : i32
    %c0_i32_0 = arith.constant 0 : i32
    %c0_i32_1 = arith.constant 0 : i32
    return %c0_i32, %c0_i32_0 : i32, i32
  }
  func.func @transform_6(%arg0: i32) -> (i32, i32) {
    %c0_i32 = arith.constant 0 : i32
    %c0_i32_0 = arith.constant 0 : i32
    %c0_i32_1 = arith.constant 0 : i32
    return %c0_i32, %c0_i32_0 : i32, i32
  }
  func.func @transform_7(%arg0: i32) -> (i32, i32) {
    %c0_i32 = arith.constant 0 : i32
    %c0_i32_0 = arith.constant 0 : i32
    %c0_i32_1 = arith.constant 0 : i32
    return %c0_i32, %c0_i32_0 : i32, i32
  }
  func.func @transform_8(%arg0: i32) -> (i32, i32) {
    %c0_i32 = arith.constant 0 : i32
    %c0_i32_0 = arith.constant 0 : i32
    %c0_i32_1 = arith.constant 0 : i32
    return %c0_i32, %c0_i32_0 : i32, i32
  }
  func.func @transform_9(%arg0: i32) -> (i32, i32) {
    %c0_i32 = arith.constant 0 : i32
    %c0_i32_0 = arith.constant 0 : i32
    %c0_i32_1 = arith.constant 0 : i32
    return %c0_i32, %c0_i32_0 : i32, i32
  }
  func.func @transform_10(%arg0: i32) -> (i32, i32) {
    %c0_i32 = arith.constant 0 : i32
    %c0_i32_0 = arith.constant 0 : i32
    %c0_i32_1 = arith.constant 0 : i32
    return %c0_i32, %c0_i32_0 : i32, i32
  }
  func.func @transform_11(%arg0: i32) -> (i32, i32) {
    %c0_i32 = arith.constant 0 : i32
    %c0_i32_0 = arith.constant 0 : i32
    return %arg0, %c0_i32 : i32, i32
  }
}

</mosaic_0001>

<bundles_post_ra>
// kernel: tile.18
= control target key start
LH: loop header
LB: loop body
LE: loop exit
PB: predicated region body
PF: predicated region fallthrough
CT: control target
= control target key end

     0   :  { %s22_s0 = inlined_call_operand.vmem [shape: f32[16], index: 0, kind: input, shape index: {}]   ;;  %s23_s1 = inlined_call_operand.vmem [shape: f32[8,16], index: 1, kind: output, shape index: {}]  }
   0x1   :  { %v4_v0 = vld [vmem:[%s22_s0] ss:$0 sm:$0xff] }
   0x2   :  { %5 = vst [vmem:[%s23_s1] sm:$0xff] %v4_v0 }

// kernel: tile.1
= control target key start
LH: loop header
LB: loop body
LE: loop exit
PB: predicated region body
PF: predicated region fallthrough
CT: control target
= control target key end

     0   :  { %vm3_vm0 = vcmask 7168   ;;  %s264_s8 = smov 125   ;;  %s265_s17 = smov 126   ;;  %s547_s0 = inlined_call_operand.vmem [shape: f32[8,16], index: 0, kind: input, shape index: {}]   ;;  %s548_s1 = inlined_call_operand.vmem [shape: f32[128,1], index: 1, kind: output, shape index: {}]  }
   0x1   :  { %v8_v0 = vld [vmem:[%s547_s0] sm:$0xff]   ;;  %s263_s0 = smov 127   ;;  %s266_s18 = smov 124  }
   0x2   :  { %9 = vrot.lane.b32.xlu0 %v8_v0, %s263_s0  ;;  %33 = vrot.lane.b32.xlu1 %v8_v0, %s264_s8  ;;  %4 = vst.msk [vmem:[%s548_s1] ss:$16 sm:$0x3] %vm3_vm0, %v8_v0   ;;  %5 = vst.msk [vmem:[%s548_s1] ss:$16 sm:$0xc] %vm3_vm0, %v8_v0  }
   0x3   :  { %6 = vst.msk [vmem:[%s548_s1] ss:$16 sm:$0x30] %vm3_vm0, %v8_v0   ;;  %7 = vst.msk [vmem:[%s548_s1] ss:$16 sm:$0xc0] %vm3_vm0, %v8_v0  }
   0x4   :  { %s267_s19 = smov 123   ;;  %s268_s20 = smov 122  }
   0x5   :  { %s269_s21 = smov 121   ;;  %s270_s22 = smov 120  }
   0x6   :  { %21 = vrot.lane.b32.xlu0 %v8_v0, %s265_s17  ;;  %45 = vrot.lane.b32.xlu1 %v8_v0, %s266_s18  ;;  %s271_s23 = smov 119   ;;  %s272_s24 = smov 118  }
   0x7   :  { %s273_s25 = smov 117   ;;  %s274_s26 = smov 116  }
   0x8   :  { %s275_s27 = smov 115   ;;  %s276_s28 = smov 114  }
   0x9   :  { %s277_s29 = smov 113  }
   0xa   :  { %57 = vrot.lane.b32.xlu0 %v8_v0, %s267_s19  ;;  %69 = vrot.lane.b32.xlu1 %v8_v0, %s268_s20 }
   0xe   :  { %81 = vrot.lane.b32.xlu0 %v8_v0, %s269_s21  ;;  %93 = vrot.lane.b32.xlu1 %v8_v0, %s270_s22 }
  0x12   :  { %105 = vrot.lane.b32.xlu0 %v8_v0, %s271_s23  ;;  %117 = vrot.lane.b32.xlu1 %v8_v0, %s272_s24 }
  0x16   :  { %129 = vrot.lane.b32.xlu0 %v8_v0, %s273_s25  ;;  %141 = vrot.lane.b32.xlu1 %v8_v0, %s274_s26 }
  0x1a   :  { %153 = vrot.lane.b32.xlu0 %v8_v0, %s275_s27  ;;  %165 = vrot.lane.b32.xlu1 %v8_v0, %s276_s28 }
  0x1e   :  { %177 = vrot.lane.b32.xlu0 %v8_v0, %s277_s29 }
  0x74   :  { %v10_v1 = vpop.permute.xlu0 %9   ;;  %v34_v2 = vpop.permute.xlu1 %33  }
  0x75   :  { %188 = vst.msk [vmem:[%s548_s1 + $0x1] ss:$16 sm:$0x3] %vm3_vm0, %v10_v1   ;;  %189 = vst.msk [vmem:[%s548_s1 + $0x1] ss:$16 sm:$0xc] %vm3_vm0, %v10_v1  }
  0x76   :  { %190 = vst.msk [vmem:[%s548_s1 + $0x1] ss:$16 sm:$0x30] %vm3_vm0, %v10_v1   ;;  %191 = vst.msk [vmem:[%s548_s1 + $0x1] ss:$16 sm:$0xc0] %vm3_vm0, %v10_v1  }
  0x77   :  { %196 = vst.msk [vmem:[%s548_s1 + $0x3] ss:$16 sm:$0x3] %vm3_vm0, %v34_v2   ;;  %197 = vst.msk [vmem:[%s548_s1 + $0x3] ss:$16 sm:$0xc] %vm3_vm0, %v34_v2  }
  0x78   :  { %198 = vst.msk [vmem:[%s548_s1 + $0x3] ss:$16 sm:$0x30] %vm3_vm0, %v34_v2   ;;  %199 = vst.msk [vmem:[%s548_s1 + $0x3] ss:$16 sm:$0xc0] %vm3_vm0, %v34_v2   ;;  %v22_v3 = vpop.permute.xlu0 %21   ;;  %v46_v4 = vpop.permute.xlu1 %45  }
  0x79   :  { %192 = vst.msk [vmem:[%s548_s1 + $0x2] ss:$16 sm:$0x3] %vm3_vm0, %v22_v3   ;;  %193 = vst.msk [vmem:[%s548_s1 + $0x2] ss:$16 sm:$0xc] %vm3_vm0, %v22_v3  }
  0x7a   :  { %194 = vst.msk [vmem:[%s548_s1 + $0x2] ss:$16 sm:$0x30] %vm3_vm0, %v22_v3   ;;  %195 = vst.msk [vmem:[%s548_s1 + $0x2] ss:$16 sm:$0xc0] %vm3_vm0, %v22_v3  }
  0x7b   :  { %200 = vst.msk [vmem:[%s548_s1 + $0x4] ss:$16 sm:$0x3] %vm3_vm0, %v46_v4   ;;  %201 = vst.msk [vmem:[%s548_s1 + $0x4] ss:$16 sm:$0xc] %vm3_vm0, %v46_v4  }
  0x7c   :  { %202 = vst.msk [vmem:[%s548_s1 + $0x4] ss:$16 sm:$0x30] %vm3_vm0, %v46_v4   ;;  %203 = vst.msk [vmem:[%s548_s1 + $0x4] ss:$16 sm:$0xc0] %vm3_vm0, %v46_v4   ;;  %v58_v5 = vpop.permute.xlu0 %57   ;;  %v70_v6 = vpop.permute.xlu1 %69  }
  0x7d   :  { %204 = vst.msk [vmem:[%s548_s1 + $0x5] ss:$16 sm:$0x3] %vm3_vm0, %v58_v5   ;;  %205 = vst.msk [vmem:[%s548_s1 + $0x5] ss:$16 sm:$0xc] %vm3_vm0, %v58_v5  }
  0x7e   :  { %206 = vst.msk [vmem:[%s548_s1 + $0x5] ss:$16 sm:$0x30] %vm3_vm0, %v58_v5   ;;  %207 = vst.msk [vmem:[%s548_s1 + $0x5] ss:$16 sm:$0xc0] %vm3_vm0, %v58_v5  }
  0x7f   :  { %208 = vst.msk [vmem:[%s548_s1 + $0x6] ss:$16 sm:$0x3] %vm3_vm0, %v70_v6   ;;  %209 = vst.msk [vmem:[%s548_s1 + $0x6] ss:$16 sm:$0xc] %vm3_vm0, %v70_v6  }
  0x80   :  { %210 = vst.msk [vmem:[%s548_s1 + $0x6] ss:$16 sm:$0x30] %vm3_vm0, %v70_v6   ;;  %211 = vst.msk [vmem:[%s548_s1 + $0x6] ss:$16 sm:$0xc0] %vm3_vm0, %v70_v6   ;;  %v82_v7 = vpop.permute.xlu0 %81   ;;  %v94_v8 = vpop.permute.xlu1 %93  }
  0x81   :  { %212 = vst.msk [vmem:[%s548_s1 + $0x7] ss:$16 sm:$0x3] %vm3_vm0, %v82_v7   ;;  %213 = vst.msk [vmem:[%s548_s1 + $0x7] ss:$16 sm:$0xc] %vm3_vm0, %v82_v7  }
  0x82   :  { %214 = vst.msk [vmem:[%s548_s1 + $0x7] ss:$16 sm:$0x30] %vm3_vm0, %v82_v7   ;;  %215 = vst.msk [vmem:[%s548_s1 + $0x7] ss:$16 sm:$0xc0] %vm3_vm0, %v82_v7  }
  0x83   :  { %216 = vst.msk [vmem:[%s548_s1 + $0x8] ss:$16 sm:$0x3] %vm3_vm0, %v94_v8   ;;  %217 = vst.msk [vmem:[%s548_s1 + $0x8] ss:$16 sm:$0xc] %vm3_vm0, %v94_v8  }
  0x84   :  { %218 = vst.msk [vmem:[%s548_s1 + $0x8] ss:$16 sm:$0x30] %vm3_vm0, %v94_v8   ;;  %219 = vst.msk [vmem:[%s548_s1 + $0x8] ss:$16 sm:$0xc0] %vm3_vm0, %v94_v8   ;;  %v106_v9 = vpop.permute.xlu0 %105   ;;  %v118_v10 = vpop.permute.xlu1 %117  }
  0x85   :  { %220 = vst.msk [vmem:[%s548_s1 + $0x9] ss:$16 sm:$0x3] %vm3_vm0, %v106_v9   ;;  %221 = vst.msk [vmem:[%s548_s1 + $0x9] ss:$16 sm:$0xc] %vm3_vm0, %v106_v9  }
  0x86   :  { %222 = vst.msk [vmem:[%s548_s1 + $0x9] ss:$16 sm:$0x30] %vm3_vm0, %v106_v9   ;;  %223 = vst.msk [vmem:[%s548_s1 + $0x9] ss:$16 sm:$0xc0] %vm3_vm0, %v106_v9  }
  0x87   :  { %224 = vst.msk [vmem:[%s548_s1 + $0xa] ss:$16 sm:$0x3] %vm3_vm0, %v118_v10   ;;  %225 = vst.msk [vmem:[%s548_s1 + $0xa] ss:$16 sm:$0xc] %vm3_vm0, %v118_v10  }
  0x88   :  { %226 = vst.msk [vmem:[%s548_s1 + $0xa] ss:$16 sm:$0x30] %vm3_vm0, %v118_v10   ;;  %227 = vst.msk [vmem:[%s548_s1 + $0xa] ss:$16 sm:$0xc0] %vm3_vm0, %v118_v10   ;;  %v130_v11 = vpop.permute.xlu0 %129   ;;  %v142_v12 = vpop.permute.xlu1 %141  }
  0x89   :  { %228 = vst.msk [vmem:[%s548_s1 + $0xb] ss:$16 sm:$0x3] %vm3_vm0, %v130_v11   ;;  %229 = vst.msk [vmem:[%s548_s1 + $0xb] ss:$16 sm:$0xc] %vm3_vm0, %v130_v11  }
  0x8a   :  { %230 = vst.msk [vmem:[%s548_s1 + $0xb] ss:$16 sm:$0x30] %vm3_vm0, %v130_v11   ;;  %231 = vst.msk [vmem:[%s548_s1 + $0xb] ss:$16 sm:$0xc0] %vm3_vm0, %v130_v11  }
  0x8b   :  { %232 = vst.msk [vmem:[%s548_s1 + $0xc] ss:$16 sm:$0x3] %vm3_vm0, %v142_v12   ;;  %233 = vst.msk [vmem:[%s548_s1 + $0xc] ss:$16 sm:$0xc] %vm3_vm0, %v142_v12  }
  0x8c   :  { %234 = vst.msk [vmem:[%s548_s1 + $0xc] ss:$16 sm:$0x30] %vm3_vm0, %v142_v12   ;;  %235 = vst.msk [vmem:[%s548_s1 + $0xc] ss:$16 sm:$0xc0] %vm3_vm0, %v142_v12   ;;  %v154_v13 = vpop.permute.xlu0 %153   ;;  %v166_v14 = vpop.permute.xlu1 %165  }
  0x8d   :  { %236 = vst.msk [vmem:[%s548_s1 + $0xd] ss:$16 sm:$0x3] %vm3_vm0, %v154_v13   ;;  %237 = vst.msk [vmem:[%s548_s1 + $0xd] ss:$16 sm:$0xc] %vm3_vm0, %v154_v13  }
  0x8e   :  { %238 = vst.msk [vmem:[%s548_s1 + $0xd] ss:$16 sm:$0x30] %vm3_vm0, %v154_v13   ;;  %239 = vst.msk [vmem:[%s548_s1 + $0xd] ss:$16 sm:$0xc0] %vm3_vm0, %v154_v13  }
  0x8f   :  { %240 = vst.msk [vmem:[%s548_s1 + $0xe] ss:$16 sm:$0x3] %vm3_vm0, %v166_v14   ;;  %241 = vst.msk [vmem:[%s548_s1 + $0xe] ss:$16 sm:$0xc] %vm3_vm0, %v166_v14  }
  0x90   :  { %242 = vst.msk [vmem:[%s548_s1 + $0xe] ss:$16 sm:$0x30] %vm3_vm0, %v166_v14   ;;  %243 = vst.msk [vmem:[%s548_s1 + $0xe] ss:$16 sm:$0xc0] %vm3_vm0, %v166_v14   ;;  %v178_v15 = vpop.permute.xlu0 %177  }
  0x91   :  { %244 = vst.msk [vmem:[%s548_s1 + $0xf] ss:$16 sm:$0x3] %vm3_vm0, %v178_v15   ;;  %245 = vst.msk [vmem:[%s548_s1 + $0xf] ss:$16 sm:$0xc] %vm3_vm0, %v178_v15  }
  0x92   :  { %246 = vst.msk [vmem:[%s548_s1 + $0xf] ss:$16 sm:$0x30] %vm3_vm0, %v178_v15   ;;  %247 = vst.msk [vmem:[%s548_s1 + $0xf] ss:$16 sm:$0xc0] %vm3_vm0, %v178_v15  }

// kernel: tile.13
= control target key start
LH: loop header
LB: loop body
LE: loop exit
PB: predicated region body
PF: predicated region fallthrough
CT: control target
= control target key end

     0   :  { %s22_s0 = inlined_call_operand.vmem [shape: f32[8], index: 0, kind: input, shape index: {}]   ;;  %s23_s1 = inlined_call_operand.vmem [shape: f32[8,8], index: 1, kind: output, shape index: {}]  }
   0x1   :  { %v4_v0 = vld [vmem:[%s22_s0] ss:$0 sm:$0xff] }
   0x2   :  { %5 = vst [vmem:[%s23_s1] sm:$0xff] %v4_v0 }

// kernel: tile.0
= control target key start
LH: loop header
LB: loop body
LE: loop exit
PB: predicated region body
PF: predicated region fallthrough
CT: control target
= control target key end

     0   :  { %vm3_vm0 = vcmask 7168   ;;  %s84_s8 = smov 125   ;;  %s85_s13 = smov 126   ;;  %s167_s0 = inlined_call_operand.vmem [shape: f32[8,8], index: 0, kind: input, shape index: {}]   ;;  %s168_s1 = inlined_call_operand.vmem [shape: f32[64,1], index: 1, kind: output, shape index: {}]  }
   0x1   :  { %v6_v0 = vld [vmem:[%s167_s0] sm:$0xff]   ;;  %s83_s0 = smov 127   ;;  %s86_s14 = smov 124  }
   0x2   :  { %7 = vrot.lane.b32.xlu0 %v6_v0, %s83_s0  ;;  %23 = vrot.lane.b32.xlu1 %v6_v0, %s84_s8  ;;  %4 = vst.msk [vmem:[%s168_s1] ss:$8 sm:$0xf] %vm3_vm0, %v6_v0   ;;  %5 = vst.msk [vmem:[%s168_s1] ss:$8 sm:$0xf0] %vm3_vm0, %v6_v0  }
   0x3   :  { %s87_s15 = smov 123   ;;  %s88_s16 = smov 122  }
   0x4   :  { %s89_s17 = smov 121  }
   0x6   :  { %15 = vrot.lane.b32.xlu0 %v6_v0, %s85_s13  ;;  %31 = vrot.lane.b32.xlu1 %v6_v0, %s86_s14 }
   0xa   :  { %39 = vrot.lane.b32.xlu0 %v6_v0, %s87_s15  ;;  %47 = vrot.lane.b32.xlu1 %v6_v0, %s88_s16 }
   0xe   :  { %55 = vrot.lane.b32.xlu0 %v6_v0, %s89_s17 }
  0x74   :  { %v8_v1 = vpop.permute.xlu0 %7   ;;  %v24_v2 = vpop.permute.xlu1 %23  }
  0x75   :  { %62 = vst.msk [vmem:[%s168_s1 + $0x1] ss:$8 sm:$0xf] %vm3_vm0, %v8_v1   ;;  %63 = vst.msk [vmem:[%s168_s1 + $0x1] ss:$8 sm:$0xf0] %vm3_vm0, %v8_v1  }
  0x76   :  { %66 = vst.msk [vmem:[%s168_s1 + $0x3] ss:$8 sm:$0xf] %vm3_vm0, %v24_v2   ;;  %67 = vst.msk [vmem:[%s168_s1 + $0x3] ss:$8 sm:$0xf0] %vm3_vm0, %v24_v2  }
  0x78   :  { %v16_v3 = vpop.permute.xlu0 %15   ;;  %v32_v4 = vpop.permute.xlu1 %31  }
  0x79   :  { %64 = vst.msk [vmem:[%s168_s1 + $0x2] ss:$8 sm:$0xf] %vm3_vm0, %v16_v3   ;;  %65 = vst.msk [vmem:[%s168_s1 + $0x2] ss:$8 sm:$0xf0] %vm3_vm0, %v16_v3  }
  0x7a   :  { %68 = vst.msk [vmem:[%s168_s1 + $0x4] ss:$8 sm:$0xf] %vm3_vm0, %v32_v4   ;;  %69 = vst.msk [vmem:[%s168_s1 + $0x4] ss:$8 sm:$0xf0] %vm3_vm0, %v32_v4  }
  0x7c   :  { %v40_v5 = vpop.permute.xlu0 %39   ;;  %v48_v6 = vpop.permute.xlu1 %47  }
  0x7d   :  { %70 = vst.msk [vmem:[%s168_s1 + $0x5] ss:$8 sm:$0xf] %vm3_vm0, %v40_v5   ;;  %71 = vst.msk [vmem:[%s168_s1 + $0x5] ss:$8 sm:$0xf0] %vm3_vm0, %v40_v5  }
  0x7e   :  { %72 = vst.msk [vmem:[%s168_s1 + $0x6] ss:$8 sm:$0xf] %vm3_vm0, %v48_v6   ;;  %73 = vst.msk [vmem:[%s168_s1 + $0x6] ss:$8 sm:$0xf0] %vm3_vm0, %v48_v6  }
  0x80   :  { %v56_v7 = vpop.permute.xlu0 %55  }
  0x81   :  { %74 = vst.msk [vmem:[%s168_s1 + $0x7] ss:$8 sm:$0xf] %vm3_vm0, %v56_v7   ;;  %75 = vst.msk [vmem:[%s168_s1 + $0x7] ss:$8 sm:$0xf0] %vm3_vm0, %v56_v7  }

// kernel: parsable_cnn_forward.1
= control target key start
LH: loop header
LB: loop body
LE: loop exit
PB: predicated region body
PF: predicated region fallthrough
CT: control target
= control target key end

     0   :  { %s5547_s29 = smov 127   ;;  %s5548_s30 = smov 90   ;;  %v8389_v32 = vmov 0.0   ;;  %vm102_vm0 = vcmask 1039360   ;;  %vm501_vm1 = vcmask 736256   ;;  %vm159_vm2 = vcmask 1031168   ;;  %s8377_s0 = inlined_call_operand.vmem [shape: f32[32,512], index: 0, kind: input, shape index: {}]   ;;  %s8378_s1 = inlined_call_operand.vmem [shape: f32[64,288], index: 1, kind: input, shape index: {}]   ;;  %s8379_s2 = inlined_call_operand.vmem [shape: f32[64,1], index: 2, kind: input, shape index: {}]   ;;  %s8380_s5 = inlined_call_operand.vmem [shape: f32[1,384], index: 5, kind: input, shape index: {}]   ;;  %s8381_s3 = inlined_call_operand.vmem [shape: f32[128,576], index: 3, kind: input, shape index: {}]   ;;  %s8382_s4 = inlined_call_operand.vmem [shape: f32[128,1], index: 4, kind: input, shape index: {}]   ;;  %s8383_s6 = inlined_call_operand.vmem [shape: f32[288,160], index: 6, kind: input, shape index: {}]   ;;  %s8384_s9 = inlined_call_operand.vmem [shape: f32[160,128], index: 9, kind: input, shape index: {}]   ;;  %s8385_s7 = inlined_call_operand.vmem [shape: f32[128,160], index: 7, kind: input, shape index: {}]   ;;  %s8386_s8 = inlined_call_operand.vmem [shape: f32[8,128], index: 8, kind: input, shape index: {}]   ;;  %s8387_s10 = inlined_call_operand.vmem [shape: f32[1,128], index: 10, kind: input, shape index: {}]   ;;  %s8388_s11 = inlined_call_operand.vmem [shape: f32[8,128], index: 11, kind: output, shape index: {}]  }
   0x1   :  { %v39_v0 = vld [vmem:[%s8377_s0 + $0x8] sm:$0xff]  ;;  %v5624_v1 = vld [vmem:[%s8377_s0 + $0x10] sm:$0xff]  ;;  %v38_v2 = vld [vmem:[%s8377_s0] sm:$0xff]  ;;  %s5550_s15 = smov 109   ;;  %800 = vmatprep.mubr.f32.mxu1 %v8389_v32  ;;  %s5552_s16 = smov 110   ;;  %vm598_vm3 = vcmask 261120  }
   0x2   :  { %v5630_v3 = vpack.i.bf16 %v5624_v1, %v39_v0  ;;  %v42_v4 = vld [vmem:[%s8377_s0 + $0x20] sm:$0xff]  ;;  %v43_v5 = vld [vmem:[%s8377_s0 + $0x28] sm:$0xff]  ;;  %v5641_v6 = vld [vmem:[%s8377_s0 + $0x30] sm:$0xff]  ;;  %s5553_s17 = smov 108   ;;  %s5554_s18 = smov 92   ;;  %vm273_vm4 = vcmask 891904  }
   0x3   :  { %v5643_v7 = vpack.i.bf16 %v42_v4, %v38_v2  ;;  %v4750_v8 = vpack.i.bf16 %v5641_v6, %v43_v5  ;;  %v47_v9 = vld [vmem:[%s8377_s0 + $0x48] sm:$0xff]  ;;  %v5659_v10 = vld [vmem:[%s8377_s0 + $0x50] sm:$0xff]  ;;  %v5669_v13 = vpack.i.bf16 %v43_v5, %v39_v0  ;;  %v46_v14 = vld [vmem:[%s8377_s0 + $0x40] sm:$0xff]  ;;  %v4104_v26 = vpack.c.bf16 %v43_v5, %v39_v0  ;;  %s5555_s19 = smov 91  }
   0x4   :  { %4746 = vrot.lane.b32.xlu0 %v5630_v3, %s5547_s29  ;;  %v51_v11 = vld [vmem:[%s8377_s0 + $0x68] sm:$0xff]  ;;  %v5667_v12 = vld [vmem:[%s8377_s0 + $0x70] sm:$0xff]  ;;  %v50_v15 = vld [vmem:[%s8377_s0 + $0x60] sm:$0xff]  ;;  %v4775_v17 = vpack.i.bf16 %v5659_v10, %v47_v9  ;;  %v4106_v27 = vpack.c.bf16 %v42_v4, %v38_v2  ;;  %v4178_v33 = vpack.c.bf16 %v5641_v6, %v5624_v1  ;;  %vm216_vm5 = vcmask 900096  }
   0x5   :  { %4756 = vrot.lane.b32.xlu1 %v5643_v7, %s5547_s29  ;;  %v5677_v16 = vpack.i.bf16 %v51_v11, %v47_v9  ;;  %v5681_v18 = vpack.i.bf16 %v50_v15, %v46_v14  ;;  %v4780_v19 = vpack.i.bf16 %v5667_v12, %v51_v11  ;;  %v41_v20 = vld [vmem:[%s8377_s0 + $0x18] sm:$0xff]  ;;  %4105 = vmatprep.subr.bf16.mxu0 %v4104_v26  ;;  %v5778_v37 = vld [vmem:[%s8378_s1 + $0x8] sm:$0xff]  ;;  %vm330_vm6 = vcmask 883712  }
   0x6   :  { %v45_v21 = vld [vmem:[%s8377_s0 + $0x38] sm:$0xff]  ;;  %v4108_v28 = vpack.c.bf16 %v51_v11, %v47_v9  ;;  %4107 = vmatpush1.bf16.msra.mxu0 %v4106_v27  ;;  %v4110_v29 = vpack.c.bf16 %v50_v15, %v46_v14  ;;  %v4820_v30 = vpack.i.bf16 %v41_v20, %v5624_v1  ;;  %v4182_v36 = vpack.c.bf16 %v5667_v12, %v5659_v10 }
   0x7   :  { %v49_v22 = vld [vmem:[%s8377_s0 + $0x58] sm:$0xff]  ;;  %v5698_v24 = vpack.i.bf16 %v45_v21, %v41_v20  ;;  %v4825_v31 = vpack.i.bf16 %v45_v21, %v5641_v6  ;;  %687 = vmatprep.mubr.f32.mxu0 %v5778_v37  ;;  %vm387_vm7 = vcmask 752640   ;;  %vm444_vm8 = vcmask 744448  }
   0x8   :  { %4751 = vrot.lane.b32.xlu0 %v4750_v8, %s5547_s29  ;;  %v53_v23 = vld [vmem:[%s8377_s0 + $0x78] sm:$0xff]  ;;  %4109 = vmatprep.subr.bf16.mxu0 %v4108_v28  ;;  %s5549_s0 = smov 126   ;;  %v4845_v34 = vpack.i.bf16 %v49_v22, %v5659_v10  ;;  %v6032_v10 = vld [vmem:[%s8378_s1 + $0xa0] sm:$0xff]  ;;  %vm2028_vm9 = vcmask 523264  }
   0x9   :  { %4761 = vrot.lane.b32.xlu1 %v5630_v3, %s5548_s30  ;;  %v5700_v25 = vpack.i.bf16 %v53_v23, %v49_v22  ;;  %v4850_v35 = vpack.i.bf16 %v53_v23, %v5667_v12 }
   0xa   :  { %4111 = vmatpush1.bf16.msra.mxu0 %v4110_v29 }
   0xc   :  { %4766 = vrot.lane.b32.xlu0 %v4750_v8, %s5548_s30 }
   0xd   :  { %4771 = vrot.lane.b32.xlu1 %v5643_v7, %s5548_s30 }
  0x10   :  { %4776 = vrot.lane.b32.xlu0 %v4775_v17, %s5547_s29 }
  0x11   :  { %4781 = vrot.lane.b32.xlu1 %v4780_v19, %s5547_s29 }
  0x14   :  { %4786 = vrot.lane.b32.xlu0 %v5681_v18, %s5547_s29 }
  0x15   :  { %4791 = vrot.lane.b32.xlu1 %v4775_v17, %s5548_s30 }
  0x18   :  { %4796 = vrot.lane.b32.xlu0 %v4780_v19, %s5548_s30 }
  0x19   :  { %4801 = vrot.lane.b32.xlu1 %v5681_v18, %s5548_s30 }
  0x1c   :  { %4806 = vrot.lane.b32.xlu0 %v5630_v3, %s5549_s0 }
  0x1d   :  { %4811 = vrot.lane.b32.xlu1 %v4750_v8, %s5549_s0 }
  0x20   :  { %4816 = vrot.lane.b32.xlu0 %v5643_v7, %s5549_s0 }
  0x21   :  { %4821 = vrot.lane.b32.xlu1 %v4820_v30, %s5550_s15 }
  0x24   :  { %4826 = vrot.lane.b32.xlu0 %v4825_v31, %s5550_s15 }
  0x25   :  { %4831 = vrot.lane.b32.xlu1 %v4775_v17, %s5549_s0 }
  0x28   :  { %4836 = vrot.lane.b32.xlu0 %v4780_v19, %s5549_s0 }
  0x29   :  { %4841 = vrot.lane.b32.xlu1 %v5681_v18, %s5549_s0 }
  0x2c   :  { %4846 = vrot.lane.b32.xlu0 %v4845_v34, %s5550_s15 }
  0x2d   :  { %4851 = vrot.lane.b32.xlu1 %v4850_v35, %s5550_s15 }
  0x30   :  { %4856 = vrot.lane.b32.xlu0 %v5630_v3, %s5552_s16 }
  0x31   :  { %4861 = vrot.lane.b32.xlu1 %v4750_v8, %s5552_s16 }
  0x34   :  { %4866 = vrot.lane.b32.xlu0 %v5643_v7, %s5552_s16 }
  0x35   :  { %4871 = vrot.lane.b32.xlu1 %v4820_v30, %s5553_s17 }
  0x38   :  { %4876 = vrot.lane.b32.xlu0 %v4825_v31, %s5553_s17 }
  0x39   :  { %4881 = vrot.lane.b32.xlu1 %v5698_v24, %s5547_s29 }
  0x3c   :  { %4886 = vrot.lane.b32.xlu0 %v4775_v17, %s5552_s16 }
  0x3d   :  { %4891 = vrot.lane.b32.xlu1 %v4780_v19, %s5552_s16 }
  0x40   :  { %4896 = vrot.lane.b32.xlu0 %v5681_v18, %s5552_s16 }
  0x41   :  { %4901 = vrot.lane.b32.xlu1 %v4845_v34, %s5553_s17 }
  0x44   :  { %4906 = vrot.lane.b32.xlu0 %v4850_v35, %s5553_s17 }
  0x45   :  { %4911 = vrot.lane.b32.xlu1 %v5700_v25, %s5547_s29 }
  0x48   :  { %4916 = vrot.lane.b32.xlu0 %v5669_v13, %s5550_s15 }
  0x49   :  { %4921 = vrot.lane.b32.xlu1 %v5643_v7, %s5550_s15 }
  0x4c   :  { %4926 = vrot.lane.b32.xlu0 %v4820_v30, %s5554_s18 }
  0x4d   :  { %4931 = vrot.lane.b32.xlu1 %v4825_v31, %s5554_s18 }
  0x50   :  { %4936 = vrot.lane.b32.xlu0 %v5698_v24, %s5549_s0 }
  0x51   :  { %4941 = vrot.lane.b32.xlu1 %v5677_v16, %s5550_s15 }
  0x54   :  { %4946 = vrot.lane.b32.xlu0 %v5681_v18, %s5550_s15 }
  0x55   :  { %4951 = vrot.lane.b32.xlu1 %v4845_v34, %s5554_s18 }
  0x58   :  { %4956 = vrot.lane.b32.xlu0 %v4850_v35, %s5554_s18 }
  0x59   :  { %4961 = vrot.lane.b32.xlu1 %v5700_v25, %s5549_s0 }
  0x5c   :  { %4966 = vrot.lane.b32.xlu0 %v5669_v13, %s5553_s17 }
  0x5d   :  { %4971 = vrot.lane.b32.xlu1 %v5643_v7, %s5553_s17 }
  0x60   :  { %4976 = vrot.lane.b32.xlu0 %v4820_v30, %s5555_s19 }
  0x61   :  { %4981 = vrot.lane.b32.xlu1 %v4825_v31, %s5555_s19 }
  0x64   :  { %4986 = vrot.lane.b32.xlu0 %v5698_v24, %s5552_s16 }
  0x65   :  { %4991 = vrot.lane.b32.xlu1 %v5677_v16, %s5553_s17 }
  0x68   :  { %4996 = vrot.lane.b32.xlu0 %v5681_v18, %s5553_s17 }
  0x69   :  { %5001 = vrot.lane.b32.xlu1 %v4845_v34, %s5555_s19 }
  0x6c   :  { %5006 = vrot.lane.b32.xlu0 %v4850_v35, %s5555_s19 }
  0x6d   :  { %5011 = vrot.lane.b32.xlu1 %v5700_v25, %s5552_s16 }
  0x70   :  { %5016 = vrot.lane.b32.xlu0 %v5669_v13, %s5554_s18 }
  0x71   :  { %5021 = vrot.lane.b32.xlu1 %v5643_v7, %s5554_s18 }
  0x74   :  { %5026 = vrot.lane.b32.xlu0 %v5677_v16, %s5554_s18 }
  0x75   :  { %5031 = vrot.lane.b32.xlu1 %v5681_v18, %s5554_s18 }
  0x76   :  { %v5795_v38 = vpop.permute.xlu0 %4746 }
  0x77   :  { %v4757_v39 = vpop.permute.xlu1 %4756  ;;  %v4749_v40 = vunpack.i.h.bf16 %v5795_v38  ;;  %v4748_v41 = vunpack.i.l.bf16 %v5795_v38 }
  0x78   :  { %v4758_v42 = vunpack.i.l.bf16 %v4757_v39  ;;  %5036 = vrot.lane.b32.xlu0 %v5669_v13, %s5555_s19  ;;  %v4759_v44 = vunpack.i.h.bf16 %v4757_v39 }
  0x79   :  { %5041 = vrot.lane.b32.xlu1 %v5643_v7, %s5555_s19  ;;  %v104_v48 = vsel %vm102_vm0, %v4748_v41, %v4749_v40 }
  0x7a   :  { %v5803_v43 = vpop.permute.xlu0 %4751  ;;  %v103_v49 = vsel %vm102_vm0, %v4758_v42, %v4748_v41 }
  0x7b   :  { %v4754_v45 = vunpack.i.h.bf16 %v5803_v43  ;;  %v4753_v46 = vunpack.i.l.bf16 %v5803_v43  ;;  %v5807_v47 = vpop.permute.xlu1 %4761 }
  0x7c   :  { %5046 = vrot.lane.b32.xlu0 %v5677_v16, %s5555_s19  ;;  %v4764_v50 = vunpack.i.h.bf16 %v5807_v47  ;;  %v4763_v51 = vunpack.i.l.bf16 %v5807_v47 }
  0x7d   :  { %5051 = vrot.lane.b32.xlu1 %v5681_v18, %s5555_s19  ;;  %v107_v52 = vsel %vm102_vm0, %v4753_v46, %v4754_v45  ;;  %v106_v53 = vsel %vm102_vm0, %v4759_v44, %v4753_v46 }
  0x7e   :  { %v5823_v54 = vpop.permute.xlu0 %4766  ;;  %v4112_v55 = vpack.c.bf16 %v107_v52, %v104_v48  ;;  %v4114_v56 = vpack.c.bf16 %v106_v53, %v103_v49  ;;  %v503_v62 = vsel %vm501_vm1, %v4763_v51, %v4764_v50 }
  0x7f   :  { %v8393_v57 = vunpack.i.h.bf16 %v5823_v54  ;;  %v4768_v58 = vunpack.i.l.bf16 %v5823_v54  ;;  %v4772_v59 = vpop.permute.xlu1 %4771 }
  0x80   :  { %v4774_v60 = vunpack.i.h.bf16 %v4772_v59  ;;  %v4773_v61 = vunpack.i.l.bf16 %v4772_v59  ;;  %5056 = vrot.lane.b32.xlu0 %v5698_v24, %s5548_s30  ;;  %4113 = vmatprep.subr.bf16.mxu0 %v4112_v55 }
  0x81   :  { %5061 = vrot.lane.b32.xlu1 %v5700_v25, %s5548_s30  ;;  %4115 = vmatpush1.bf16.msra.mxu0 %v4114_v56  ;;  %v506_v63 = vsel %vm501_vm1, %v4768_v58, %v8393_v57  ;;  %v5885_v56 = vld [vmem:[%s8378_s1 + $0x10] sm:$0xff] }
  0x82   :  { %v5837_v0 = vpop.permute.xlu0 %4776  ;;  %v4168_v2 = vpack.c.bf16 %v506_v63, %v503_v62  ;;  %v502_v3 = vsel %vm501_vm1, %v4773_v61, %v4763_v51  ;;  %v505_v4 = vsel %vm501_vm1, %v4774_v60, %v4768_v58 }
  0x83   :  { %v4779_v5 = vunpack.i.h.bf16 %v5837_v0  ;;  %v4778_v7 = vunpack.i.l.bf16 %v5837_v0  ;;  %v5843_v8 = vpop.permute.xlu1 %4781  ;;  %v4170_v9 = vpack.c.bf16 %v505_v4, %v502_v3 }
  0x84   :  { %v4784_v11 = vunpack.i.h.bf16 %v5843_v8  ;;  %v4783_v13 = vunpack.i.l.bf16 %v5843_v8  ;;  %4169 = vmatprep.subr.bf16.mxu1 %v4168_v2 }
  0x85   :  { %4171 = vmatpush1.bf16.msra.mxu1 %v4170_v9  ;;  %v110_v14 = vsel %vm102_vm0, %v4778_v7, %v4779_v5  ;;  %v5902_v9 = vld [vmem:[%s8378_s1 + $0x28] sm:$0xff] }
  0x86   :  { %v4787_v15 = vpop.permute.xlu0 %4786  ;;  %v113_v16 = vsel %vm102_vm0, %v4783_v13, %v4784_v11 }
  0x87   :  { %v4789_v17 = vunpack.i.h.bf16 %v4787_v15  ;;  %v4788_v18 = vunpack.i.l.bf16 %v4787_v15  ;;  %v5853_v19 = vpop.permute.xlu1 %4791  ;;  %v4116_v20 = vpack.c.bf16 %v113_v16, %v110_v14  ;;  %v551_v14 = vld [vmem:[%s8379_s2 + $0x8] sm:$0xff] }
  0x88   :  { %v8392_v21 = vunpack.i.h.bf16 %v5853_v19  ;;  %v4793_v22 = vunpack.i.l.bf16 %v5853_v19 }
  0x89   :  { %4117 = vmatprep.subr.bf16.mxu0 %v4116_v20  ;;  %v109_v23 = vsel %vm102_vm0, %v4788_v18, %v4778_v7  ;;  %v112_v24 = vsel %vm102_vm0, %v4789_v17, %v4783_v13  ;;  %v550_v13 = vld [vmem:[%s8379_s2] sm:$0xff]  ;;  %v5556_v17 = vmov 0  }
  0x8a   :  { %v5859_v25 = vpop.permute.xlu0 %4796  ;;  %v4118_v26 = vpack.c.bf16 %v112_v24, %v109_v23  ;;  %v509_v34 = vsel %vm501_vm1, %v4793_v22, %v8392_v21  ;;  %5066 = vset.pattern.permute.xlu1 %v5556_v17  ;;  %5065 = vset.pattern.permute.xlu0 %v5556_v17  ;;  %v553_v23 = vld [vmem:[%s8379_s2 + $0x18] sm:$0xff]  ;;  %v552_v24 = vld [vmem:[%s8379_s2 + $0x10] sm:$0xff] }
  0x8b   :  { %v8391_v27 = vunpack.i.h.bf16 %v5859_v25  ;;  %v4798_v28 = vunpack.i.l.bf16 %v5859_v25  ;;  %v4802_v29 = vpop.permute.xlu1 %4801  ;;  %560 = vperm.xlu0 %5065, %v550_v13   ;;  %565 = vperm.xlu1 %5066, %v551_v14   ;;  %v556_v17 = vld [vmem:[%s8379_s2 + $0x30] sm:$0xff] }
  0x8c   :  { %v4804_v30 = vunpack.i.h.bf16 %v4802_v29  ;;  %v4803_v31 = vunpack.i.l.bf16 %v4802_v29  ;;  %4119 = vmatpush1.bf16.msra.mxu0 %v4118_v26 }
  0x8d   :  { %v512_v35 = vsel %vm501_vm1, %v4798_v28, %v8391_v27 }
  0x8e   :  { %v5869_v39 = vpop.permute.xlu0 %4806  ;;  %v4172_v41 = vpack.c.bf16 %v512_v35, %v509_v34  ;;  %v508_v42 = vsel %vm501_vm1, %v4803_v31, %v4793_v22  ;;  %v511_v44 = vsel %vm501_vm1, %v4804_v30, %v4798_v28  ;;  %v5936_v31 = vld [vmem:[%s8378_s1 + $0x40] sm:$0xff] }
  0x8f   :  { %v4809_v46 = vunpack.i.h.bf16 %v5869_v39  ;;  %v4808_v48 = vunpack.i.l.bf16 %v5869_v39  ;;  %v5875_v49 = vpop.permute.xlu1 %4811  ;;  %v4174_v51 = vpack.c.bf16 %v511_v44, %v508_v42  ;;  %575 = vperm.xlu0 %5065, %v553_v23   ;;  %570 = vperm.xlu1 %5066, %v552_v24   ;;  %v5990_v23 = vld [vmem:[%s8378_s1 + $0x70] sm:$0xff] }
  0x90   :  { %v4814_v52 = vunpack.i.h.bf16 %v5875_v49  ;;  %v4813_v53 = vunpack.i.l.bf16 %v5875_v49  ;;  %4173 = vmatprep.subr.bf16.mxu1 %v4172_v41 }
  0x91   :  { %4175 = vmatpush1.bf16.msra.mxu1 %v4174_v51  ;;  %v161_v55 = vsel %vm159_vm2, %v4808_v48, %v4809_v46 }
  0x92   :  { %v4817_v58 = vpop.permute.xlu0 %4816  ;;  %v164_v59 = vsel %vm159_vm2, %v4813_v53, %v4814_v52 }
  0x93   :  { %v4819_v60 = vunpack.i.h.bf16 %v4817_v58  ;;  %v4818_v61 = vunpack.i.l.bf16 %v4817_v58  ;;  %v5890_v62 = vpop.permute.xlu1 %4821  ;;  %v4120_v63 = vpack.c.bf16 %v164_v59, %v161_v55  ;;  %v554_v55 = vld [vmem:[%s8379_s2 + $0x20] sm:$0xff] }
  0x94   :  { %3726 = vmatmul.mubr.msk.f32.vlgmr.msra.gmra.mrb[0].mxu1 %vm598_vm3, %v5885_v56  ;;  %v4824_v2 = vunpack.i.h.bf16 %v5890_v62  ;;  %v4823_v3 = vunpack.i.l.bf16 %v5890_v62  ;;  %580 = vperm.xlu1 %5066, %v554_v55  }
  0x95   :  { %4121 = vmatprep.subr.bf16.mxu0 %v4120_v63  ;;  %v160_v4 = vsel %vm159_vm2, %v4818_v61, %v4808_v48  ;;  %v163_v7 = vsel %vm159_vm2, %v4819_v60, %v4813_v53  ;;  %806 = vmatprep.mubr.f32.mxu1 %v8389_v32  ;;  %v555_v53 = vld [vmem:[%s8379_s2 + $0x28] sm:$0xff]  ;;  %v5963_v60 = vld [vmem:[%s8378_s1 + $0x58] sm:$0xff] }
  0x96   :  { %v5910_v15 = vpop.permute.xlu0 %4826  ;;  %v4122_v16 = vpack.c.bf16 %v163_v7, %v160_v4  ;;  %v276_v29 = vsel %vm273_vm4, %v4823_v3, %v4824_v2  ;;  %585 = vperm.xlu0 %5065, %v555_v53   ;;  %v6012_v53 = vld [vmem:[%s8378_s1 + $0x88] sm:$0xff] }
  0x97   :  { %v4829_v18 = vunpack.i.h.bf16 %v5910_v15  ;;  %v4828_v20 = vunpack.i.l.bf16 %v5910_v15  ;;  %v5914_v22 = vpop.permute.xlu1 %4831 }
  0x98   :  { %4123 = vmatpush1.bf16.msra.mxu0 %v4122_v16  ;;  %3727 = vmatmul.mubr.msk.f32.gmra.mrb[2].mxu1 %vm598_vm3, %v5902_v9  ;;  %v4834_v26 = vunpack.i.h.bf16 %v5914_v22  ;;  %v4833_v28 = vunpack.i.l.bf16 %v5914_v22  ;;  %v557_v16 = vld [vmem:[%s8379_s2 + $0x38] sm:$0xff] }
  0x99   :  { %v279_v30 = vsel %vm273_vm4, %v4828_v20, %v4829_v18  ;;  %812 = vmatprep.mubr.f32.mxu1 %v8389_v32  ;;  %590 = vperm.xlu1 %5066, %v556_v17  }
  0x9a   :  { %v5938_v34 = vpop.permute.xlu0 %4836  ;;  %v4176_v35 = vpack.c.bf16 %v279_v30, %v276_v29  ;;  %v167_v58 = vsel %vm159_vm2, %v4833_v28, %v4834_v26  ;;  %595 = vperm.xlu0 %5065, %v557_v16  }
  0x9b   :  { %v4839_v41 = vunpack.i.h.bf16 %v5938_v34  ;;  %v4838_v42 = vunpack.i.l.bf16 %v5938_v34  ;;  %v4842_v44 = vpop.permute.xlu1 %4841 }
  0x9c   :  { %v4844_v48 = vunpack.i.h.bf16 %v4842_v44  ;;  %v4843_v51 = vunpack.i.l.bf16 %v4842_v44  ;;  %4177 = vmatprep.subr.bf16.mxu1 %v4176_v35  ;;  %3728 = vmatmul.mubr.msk.f32.gmra.mrb[4].mxu1 %vm598_vm3, %v5936_v31 }
  0x9d   :  { %v170_v59 = vsel %vm159_vm2, %v4838_v42, %v4839_v41  ;;  %4179 = vmatpush3.bf16.msra.mxu1 %v4178_v33  ;;  %818 = vmatprep.mubr.f32.mxu1 %v8389_v32 }
  0x9e   :  { %v5965_v61 = vpop.permute.xlu0 %4846  ;;  %v4124_v63 = vpack.c.bf16 %v170_v59, %v167_v58  ;;  %v166_v2 = vsel %vm159_vm2, %v4843_v51, %v4833_v28  ;;  %v169_v4 = vsel %vm159_vm2, %v4844_v48, %v4838_v42 }
  0x9f   :  { %v4849_v7 = vunpack.i.h.bf16 %v5965_v61  ;;  %v4848_v13 = vunpack.i.l.bf16 %v5965_v61  ;;  %v5971_v1 = vpop.permute.xlu1 %4851  ;;  %v4126_v6 = vpack.c.bf16 %v169_v4, %v166_v2 }
  0xa0   :  { %v4854_v33 = vunpack.i.h.bf16 %v5971_v1  ;;  %v4853_v14 = vunpack.i.l.bf16 %v5971_v1  ;;  %4125 = vmatprep.subr.bf16.mxu0 %v4124_v63  ;;  %3729 = vmatmul.mubr.msk.f32.gmra.mrb[6].mxu1 %vm598_vm3, %v5963_v60 }
  0xa1   :  { %4127 = vmatpush1.bf16.msra.mxu0 %v4126_v6  ;;  %v282_v18 = vsel %vm273_vm4, %v4848_v13, %v4849_v7  ;;  %824 = vmatprep.mubr.f32.mxu1 %v8389_v32 }
  0xa2   :  { %v5992_v24 = vpop.permute.xlu0 %4856  ;;  %v285_v28 = vsel %vm273_vm4, %v4853_v14, %v4854_v33 }
  0xa3   :  { %v4859_v29 = vunpack.i.h.bf16 %v5992_v24  ;;  %v4858_v30 = vunpack.i.l.bf16 %v5992_v24  ;;  %v5999_v35 = vpop.permute.xlu1 %4861  ;;  %v4180_v42 = vpack.c.bf16 %v285_v28, %v282_v18 }
  0xa4   :  { %v4864_v44 = vunpack.i.h.bf16 %v5999_v35  ;;  %v4863_v48 = vunpack.i.l.bf16 %v5999_v35  ;;  %3730 = vmatmul.mubr.msk.f32.gmra.mrb[8].mxu1 %vm598_vm3, %v5990_v23 }
  0xa5   :  { %4181 = vmatprep.subr.bf16.mxu1 %v4180_v42  ;;  %v218_v51 = vsel %vm216_vm5, %v4858_v30, %v4859_v29  ;;  %830 = vmatprep.mubr.f32.mxu1 %v8389_v32 }
  0xa6   :  { %v4867_v55 = vpop.permute.xlu0 %4866  ;;  %v221_v58 = vsel %vm216_vm5, %v4863_v48, %v4864_v44  ;;  %4183 = vmatpush3.bf16.msra.mxu1 %v4182_v36 }
  0xa7   :  { %v4869_v59 = vunpack.i.h.bf16 %v4867_v55  ;;  %v4868_v63 = vunpack.i.l.bf16 %v4867_v55  ;;  %v6020_v2 = vpop.permute.xlu1 %4871  ;;  %v4128_v4 = vpack.c.bf16 %v221_v58, %v218_v51  ;;  %v6050_v55 = vld [vmem:[%s8378_s1 + $0xb8] sm:$0xff] }
  0xa8   :  { %3731 = vmatmul.mubr.msk.f32.gmra.mrb[10].mxu1 %vm598_vm3, %v6012_v53  ;;  %v4874_v7 = vunpack.i.h.bf16 %v6020_v2  ;;  %v4873_v6 = vunpack.i.l.bf16 %v6020_v2 }
  0xa9   :  { %4129 = vmatprep.subr.bf16.mxu0 %v4128_v4  ;;  %v217_v33 = vsel %vm216_vm5, %v4868_v63, %v4858_v30  ;;  %v220_v16 = vsel %vm216_vm5, %v4869_v59, %v4863_v48  ;;  %836 = vmatprep.mubr.f32.mxu1 %v8389_v32 }
  0xaa   :  { %v6034_v12 = vpop.permute.xlu0 %4876  ;;  %v4130_v36 = vpack.c.bf16 %v220_v16, %v217_v33  ;;  %v333_v48 = vsel %vm330_vm6, %v4873_v6, %v4874_v7 }
  0xab   :  { %v4879_v17 = vunpack.i.h.bf16 %v6034_v12  ;;  %v4878_v18 = vunpack.i.l.bf16 %v6034_v12  ;;  %v4882_v28 = vpop.permute.xlu1 %4881 }
  0xac   :  { %v4884_v42 = vunpack.i.h.bf16 %v4882_v28  ;;  %v4883_v30 = vunpack.i.l.bf16 %v4882_v28  ;;  %4131 = vmatpush1.bf16.msra.mxu0 %v4130_v36  ;;  %3732 = vmatmul.mubr.msk.f32.gmra.mrb[12].mxu1 %vm598_vm3, %v6032_v10 }
  0xad   :  { %v336_v51 = vsel %vm330_vm6, %v4878_v18, %v4879_v17  ;;  %842 = vmatprep.mubr.f32.mxu1 %v8389_v32 }
  0xae   :  { %v108_v58 = vsel %vm102_vm0, %v4754_v45, %v4884_v42  ;;  %v105_v59 = vsel %vm102_vm0, %v4749_v40, %v4883_v30  ;;  %v6058_v63 = vpop.permute.xlu0 %4886  ;;  %v4184_v4 = vpack.c.bf16 %v336_v51, %v333_v48 }
  0xaf   :  { %v4889_v7 = vunpack.i.h.bf16 %v6058_v63  ;;  %v4888_v33 = vunpack.i.l.bf16 %v6058_v63  ;;  %v6062_v16 = vpop.permute.xlu1 %4891  ;;  %v4186_v36 = vpack.c.bf16 %v108_v58, %v105_v59 }
  0xb0   :  { %v4894_v17 = vunpack.i.h.bf16 %v6062_v16  ;;  %v4893_v43 = vunpack.i.l.bf16 %v6062_v16  ;;  %4185 = vmatprep.subr.bf16.mxu1 %v4184_v4  ;;  %3733 = vmatmul.mubr.msk.f32.gmra.mrb[14].mxu1 %vm598_vm3, %v6050_v55  ;;  %v6218_v16 = vld [vmem:[%s8378_s1] sm:$0xff] }
  0xb1   :  { %4187 = vmatpush3.bf16.msra.mxu1 %v4186_v36  ;;  %v224_v38 = vsel %vm216_vm5, %v4888_v33, %v4889_v7  ;;  %913 = vmatprep.mubr.f32.mxu1 %v5778_v37 }
  0xb2   :  { %v4897_v40 = vpop.permute.xlu0 %4896  ;;  %v227_v45 = vsel %vm216_vm5, %v4893_v43, %v4894_v17 }
  0xb3   :  { %v4899_v28 = vunpack.i.h.bf16 %v4897_v40  ;;  %v4898_v42 = vunpack.i.l.bf16 %v4897_v40  ;;  %v6075_v30 = vpop.permute.xlu1 %4901  ;;  %v4132_v48 = vpack.c.bf16 %v227_v45, %v224_v38 }
  0xb4   :  { %v4904_v51 = vunpack.i.h.bf16 %v6075_v30  ;;  %v4903_v58 = vunpack.i.l.bf16 %v6075_v30 }
  0xb5   :  { %4133 = vmatprep.subr.bf16.mxu0 %v4132_v48  ;;  %v223_v59 = vsel %vm216_vm5, %v4898_v42, %v4888_v33  ;;  %v226_v4 = vsel %vm216_vm5, %v4899_v28, %v4893_v43 }
  0xb6   :  { %v6081_v37 = vpop.permute.xlu0 %4906  ;;  %v4134_v36 = vpack.c.bf16 %v226_v4, %v223_v59  ;;  %v339_v38 = vsel %vm330_vm6, %v4903_v58, %v4904_v51 }
  0xb7   :  { %v4909_v32 = vunpack.i.h.bf16 %v6081_v37  ;;  %v4908_v27 = vunpack.i.l.bf16 %v6081_v37  ;;  %v4912_v40 = vpop.permute.xlu1 %4911 }
  0xb8   :  { %v4914_v21 = vunpack.i.h.bf16 %v4912_v40  ;;  %v4913_v57 = vunpack.i.l.bf16 %v4912_v40  ;;  %4135 = vmatpush1.bf16.msra.mxu0 %v4134_v36 }
  0xb9   :  { %v342_v33 = vsel %vm330_vm6, %v4908_v27, %v4909_v32 }
  0xba   :  { %v111_v43 = vsel %vm102_vm0, %v4779_v5, %v4913_v57  ;;  %v114_v45 = vsel %vm102_vm0, %v4784_v11, %v4914_v21  ;;  %v4917_v28 = vpop.permute.xlu0 %4916  ;;  %v4188_v42 = vpack.c.bf16 %v342_v33, %v339_v38 }
  0xbb   :  { %v4919_v48 = vunpack.i.h.bf16 %v4917_v28  ;;  %v4918_v59 = vunpack.i.l.bf16 %v4917_v28  ;;  %v4922_v4 = vpop.permute.xlu1 %4921  ;;  %v4190_v36 = vpack.c.bf16 %v114_v45, %v111_v43 }
  0xbc   :  { %v4924_v40 = vunpack.i.h.bf16 %v4922_v4  ;;  %v4923_v51 = vunpack.i.l.bf16 %v4922_v4  ;;  %4189 = vmatprep.subr.bf16.mxu1 %v4188_v42 }
  0xbd   :  { %4191 = vmatpush3.bf16.msra.mxu1 %v4190_v36  ;;  %v275_v32 = vsel %vm273_vm4, %v4918_v59, %v4823_v3  ;;  %v278_v57 = vsel %vm273_vm4, %v4919_v48, %v4828_v20 }
  0xbe   :  { %v6103_v0 = vpop.permute.xlu0 %4926  ;;  %v4136_v5 = vpack.c.bf16 %v278_v57, %v275_v32  ;;  %v274_v8 = vsel %vm273_vm4, %v4923_v51, %v4918_v59  ;;  %v277_v11 = vsel %vm273_vm4, %v4924_v40, %v4919_v48 }
  0xbf   :  { %v4929_v21 = vunpack.i.h.bf16 %v6103_v0  ;;  %v4928_v38 = vunpack.i.l.bf16 %v6103_v0  ;;  %v6109_v33 = vpop.permute.xlu1 %4931  ;;  %v4138_v62 = vpack.c.bf16 %v277_v11, %v274_v8  ;;  %v6225_v0 = vld [vmem:[%s8378_s1 + $0x20] sm:$0xff] }
  0xc0   :  { %v4934_v3 = vunpack.i.h.bf16 %v6109_v33  ;;  %v4933_v15 = vunpack.i.l.bf16 %v6109_v33  ;;  %4137 = vmatprep.subr.bf16.mxu0 %v4136_v5 }
  0xc1   :  { %4139 = vmatpush1.bf16.msra.mxu0 %v4138_v62  ;;  %v390_v20 = vsel %vm387_vm7, %v4928_v38, %v4929_v21 }
  0xc2   :  { %v4937_v43 = vpop.permute.xlu0 %4936  ;;  %v393_v45 = vsel %vm387_vm7, %v4933_v15, %v4934_v3 }
  0xc3   :  { %v4939_v28 = vunpack.i.h.bf16 %v4937_v43  ;;  %v4938_v42 = vunpack.i.l.bf16 %v4937_v43  ;;  %v4942_v48 = vpop.permute.xlu1 %4941  ;;  %v4192_v59 = vpack.c.bf16 %v393_v45, %v390_v20 }
  0xc4   :  { %v4944_v4 = vunpack.i.h.bf16 %v4942_v48  ;;  %v4943_v36 = vunpack.i.l.bf16 %v4942_v48 }
  0xc5   :  { %v162_v40 = vsel %vm159_vm2, %v4809_v46, %v4938_v42  ;;  %v165_v51 = vsel %vm159_vm2, %v4814_v52, %v4939_v28  ;;  %4193 = vmatprep.subr.bf16.mxu1 %v4192_v59 }
  0xc6   :  { %v4947_v32 = vpop.permute.xlu0 %4946  ;;  %v281_v57 = vsel %vm273_vm4, %v4943_v36, %v4848_v13  ;;  %v284_v5 = vsel %vm273_vm4, %v4944_v4, %v4853_v14  ;;  %v4194_v8 = vpack.c.bf16 %v165_v51, %v162_v40 }
  0xc7   :  { %v4949_v11 = vunpack.i.h.bf16 %v4947_v32  ;;  %v4948_v21 = vunpack.i.l.bf16 %v4947_v32  ;;  %v6131_v39 = vpop.permute.xlu1 %4951  ;;  %v4140_v46 = vpack.c.bf16 %v284_v5, %v281_v57 }
  0xc8   :  { %4195 = vmatpush3.bf16.msra.mxu1 %v4194_v8  ;;  %v4954_v49 = vunpack.i.h.bf16 %v6131_v39  ;;  %v4953_v52 = vunpack.i.l.bf16 %v6131_v39  ;;  %v6245_v39 = vld [vmem:[%s8378_s1 + $0x38] sm:$0xff] }
  0xc9   :  { %4141 = vmatprep.subr.bf16.mxu0 %v4140_v46  ;;  %v280_v61 = vsel %vm273_vm4, %v4948_v21, %v4943_v36  ;;  %v283_v13 = vsel %vm273_vm4, %v4949_v11, %v4944_v4 }
  0xca   :  { %v6137_v62 = vpop.permute.xlu0 %4956  ;;  %v4142_v1 = vpack.c.bf16 %v283_v13, %v280_v61  ;;  %v396_v28 = vsel %vm387_vm7, %v4953_v52, %v4954_v49 }
  0xcb   :  { %v4959_v14 = vunpack.i.h.bf16 %v6137_v62  ;;  %v4958_v3 = vunpack.i.l.bf16 %v6137_v62  ;;  %v4962_v20 = vpop.permute.xlu1 %4961 }
  0xcc   :  { %v4964_v43 = vunpack.i.h.bf16 %v4962_v20  ;;  %v4963_v45 = vunpack.i.l.bf16 %v4962_v20  ;;  %4143 = vmatpush1.bf16.msra.mxu0 %v4142_v1 }
  0xcd   :  { %v399_v42 = vsel %vm387_vm7, %v4958_v3, %v4959_v14 }
  0xce   :  { %v171_v48 = vsel %vm159_vm2, %v4839_v41, %v4964_v43  ;;  %v168_v59 = vsel %vm159_vm2, %v4834_v26, %v4963_v45  ;;  %v4967_v4 = vpop.permute.xlu0 %4966  ;;  %v4196_v36 = vpack.c.bf16 %v399_v42, %v396_v28 }
  0xcf   :  { %v4969_v40 = vunpack.i.h.bf16 %v4967_v4  ;;  %v4968_v51 = vunpack.i.l.bf16 %v4967_v4  ;;  %v4972_v32 = vpop.permute.xlu1 %4971  ;;  %v4198_v57 = vpack.c.bf16 %v171_v48, %v168_v59 }
  0xd0   :  { %v4974_v5 = vunpack.i.h.bf16 %v4972_v32  ;;  %v4973_v8 = vunpack.i.l.bf16 %v4972_v32  ;;  %4197 = vmatprep.subr.bf16.mxu1 %v4196_v36 }
  0xd1   :  { %4199 = vmatpush3.bf16.msra.mxu1 %v4198_v57  ;;  %v332_v34 = vsel %vm330_vm6, %v4968_v51, %v4873_v6  ;;  %v335_v22 = vsel %vm330_vm6, %v4969_v40, %v4878_v18 }
  0xd2   :  { %v6159_v41 = vpop.permute.xlu0 %4976  ;;  %v4144_v26 = vpack.c.bf16 %v335_v22, %v332_v34  ;;  %v331_v11 = vsel %vm330_vm6, %v4973_v8, %v4968_v51  ;;  %v334_v21 = vsel %vm330_vm6, %v4974_v5, %v4969_v40 }
  0xd3   :  { %v4979_v46 = vunpack.i.h.bf16 %v6159_v41  ;;  %v4978_v49 = vunpack.i.l.bf16 %v6159_v41  ;;  %v6165_v61 = vpop.permute.xlu1 %4981  ;;  %v4146_v2 = vpack.c.bf16 %v334_v21, %v331_v11  ;;  %v536_v41 = vld [vmem:[%s8378_s1 + $0x50] sm:$0xff] }
  0xd4   :  { %v4984_v6 = vunpack.i.h.bf16 %v6165_v61  ;;  %v4983_v12 = vunpack.i.l.bf16 %v6165_v61  ;;  %4145 = vmatprep.subr.bf16.mxu0 %v4144_v26 }
  0xd5   :  { %4147 = vmatpush1.bf16.msra.mxu0 %v4146_v2  ;;  %v447_v18 = vsel %vm444_vm8, %v4978_v49, %v4979_v46 }
  0xd6   :  { %v4987_v13 = vpop.permute.xlu0 %4986  ;;  %v450_v1 = vsel %vm444_vm8, %v4983_v12, %v4984_v6 }
  0xd7   :  { %v4989_v14 = vunpack.i.h.bf16 %v4987_v13  ;;  %v4988_v20 = vunpack.i.l.bf16 %v4987_v13  ;;  %v4992_v43 = vpop.permute.xlu1 %4991  ;;  %v4200_v45 = vpack.c.bf16 %v450_v1, %v447_v18 }
  0xd8   :  { %v4994_v28 = vunpack.i.h.bf16 %v4992_v43  ;;  %v4993_v42 = vunpack.i.l.bf16 %v4992_v43 }
  0xd9   :  { %v219_v48 = vsel %vm216_vm5, %v4859_v29, %v4988_v20  ;;  %v222_v59 = vsel %vm216_vm5, %v4864_v44, %v4989_v14  ;;  %4201 = vmatprep.subr.bf16.mxu1 %v4200_v45 }
  0xda   :  { %v4997_v4 = vpop.permute.xlu0 %4996  ;;  %v338_v36 = vsel %vm330_vm6, %v4993_v42, %v4903_v58  ;;  %v341_v40 = vsel %vm330_vm6, %v4994_v28, %v4908_v27  ;;  %v4202_v51 = vpack.c.bf16 %v222_v59, %v219_v48 }
  0xdb   :  { %v4999_v32 = vunpack.i.h.bf16 %v4997_v4  ;;  %v4998_v57 = vunpack.i.l.bf16 %v4997_v4  ;;  %v6187_v24 = vpop.permute.xlu1 %5001  ;;  %v4148_v29 = vpack.c.bf16 %v341_v40, %v338_v36 }
  0xdc   :  { %4203 = vmatpush3.bf16.msra.mxu1 %v4202_v51  ;;  %v5004_v35 = vunpack.i.h.bf16 %v6187_v24  ;;  %v5003_v44 = vunpack.i.l.bf16 %v6187_v24  ;;  %v539_v24 = vld [vmem:[%s8378_s1 + $0x68] sm:$0xff] }
  0xdd   :  { %4149 = vmatprep.subr.bf16.mxu0 %v4148_v29  ;;  %v337_v30 = vsel %vm330_vm6, %v4998_v57, %v4993_v42  ;;  %v340_v58 = vsel %vm330_vm6, %v4999_v32, %v4994_v28  ;;  %v6238_v32 = vld [vmem:[%s8378_s1 + $0x18] sm:$0xff] }
  0xde   :  { %v6193_v5 = vpop.permute.xlu0 %5006  ;;  %v4150_v37 = vpack.c.bf16 %v340_v58, %v337_v30  ;;  %v453_v11 = vsel %vm444_vm8, %v5003_v44, %v5004_v35 }
  0xdf   :  { %v5009_v27 = vunpack.i.h.bf16 %v6193_v5  ;;  %v5008_v8 = vunpack.i.l.bf16 %v6193_v5  ;;  %v5012_v34 = vpop.permute.xlu1 %5011 }
  0xe0   :  { %v5014_v22 = vunpack.i.h.bf16 %v5012_v34  ;;  %v5013_v26 = vunpack.i.l.bf16 %v5012_v34  ;;  %4151 = vmatpush1.bf16.msra.mxu0 %v4150_v37 }
  0xe1   :  { %v456_v21 = vsel %vm444_vm8, %v5008_v8, %v5009_v27 }
  0xe2   :  { %v225_v46 = vsel %vm216_vm5, %v4889_v7, %v5013_v26  ;;  %v228_v2 = vsel %vm216_vm5, %v4894_v17, %v5014_v22  ;;  %v5017_v6 = vpop.permute.xlu0 %5016  ;;  %v4204_v18 = vpack.c.bf16 %v456_v21, %v453_v11  ;;  %v532_v26 = vld [vmem:[%s8378_s1 + $0x30] sm:$0xff] }
  0xe3   :  { %v5019_v13 = vunpack.i.h.bf16 %v5017_v6  ;;  %v5018_v1 = vunpack.i.l.bf16 %v5017_v6  ;;  %v5022_v14 = vpop.permute.xlu1 %5021  ;;  %v4206_v20 = vpack.c.bf16 %v228_v2, %v225_v46 }
  0xe4   :  { %v5024_v43 = vunpack.i.h.bf16 %v5022_v14  ;;  %v5023_v45 = vunpack.i.l.bf16 %v5022_v14  ;;  %4205 = vmatprep.subr.bf16.mxu1 %v4204_v18 }
  0xe5   :  { %4207 = vmatpush3.bf16.msra.mxu1 %v4206_v20  ;;  %v389_v63 = vsel %vm387_vm7, %v5018_v1, %v4928_v38  ;;  %v392_v7 = vsel %vm387_vm7, %v5019_v13, %v4933_v15  ;;  %v535_v20 = vld [vmem:[%s8378_s1 + $0x48] sm:$0xff] }
  0xe6   :  { %v5027_v17 = vpop.permute.xlu0 %5026  ;;  %v4152_v28 = vpack.c.bf16 %v392_v7, %v389_v63  ;;  %v388_v42 = vsel %vm387_vm7, %v5023_v45, %v5018_v1  ;;  %v391_v48 = vsel %vm387_vm7, %v5024_v43, %v5019_v13 }
  0xe7   :  { %v5029_v38 = vunpack.i.h.bf16 %v5027_v17  ;;  %v5028_v33 = vunpack.i.l.bf16 %v5027_v17  ;;  %v5032_v59 = vpop.permute.xlu1 %5031  ;;  %v4154_v15 = vpack.c.bf16 %v391_v48, %v388_v42  ;;  %v538_v48 = vld [vmem:[%s8378_s1 + $0x60] sm:$0xff] }
  0xe8   :  { %v5034_v4 = vunpack.i.h.bf16 %v5032_v59  ;;  %v5033_v36 = vunpack.i.l.bf16 %v5032_v59  ;;  %4153 = vmatprep.subr.bf16.mxu0 %v4152_v28  ;;  %914 = vmatmul.mubr.f32.vlgmr.msra.gmra.mrb[16].mxu1 %v6218_v16 }
  0xe9   :  { %4155 = vmatpush1.bf16.msra.mxu0 %v4154_v15  ;;  %918 = vmatprep.mubr.f32.mxu1 %v6225_v0  ;;  %v395_v40 = vsel %vm387_vm7, %v5028_v33, %v4953_v52  ;;  %v398_v51 = vsel %vm387_vm7, %v5029_v38, %v4958_v3 }
  0xea   :  { %v5037_v57 = vpop.permute.xlu0 %5036  ;;  %v4156_v29 = vpack.c.bf16 %v398_v51, %v395_v40  ;;  %v394_v35 = vsel %vm387_vm7, %v5033_v36, %v5028_v33  ;;  %v397_v30 = vsel %vm387_vm7, %v5034_v4, %v5029_v38  ;;  %v8396_v33 = vunpack.i.h.bf16 %v5823_v54  ;;  %v545_v54 = vld [vmem:[%s8378_s1 + $0x98] sm:$0xff] }
  0xeb   :  { %v5039_v52 = vunpack.i.h.bf16 %v5037_v57  ;;  %v5038_v62 = vunpack.i.l.bf16 %v5037_v57  ;;  %v5042_v58 = vpop.permute.xlu1 %5041  ;;  %v4158_v3 = vpack.c.bf16 %v397_v30, %v394_v35  ;;  %v8397_v4 = vunpack.i.h.bf16 %v5853_v19  ;;  %v542_v57 = vld [vmem:[%s8378_s1 + $0x80] sm:$0xff]  ;;  %v544_v19 = vld [vmem:[%s8378_s1 + $0x90] sm:$0xff] }
  0xec   :  { %v5044_v37 = vunpack.i.h.bf16 %v5042_v58  ;;  %v5043_v27 = vunpack.i.l.bf16 %v5042_v58  ;;  %4157 = vmatprep.subr.bf16.mxu0 %v4156_v29  ;;  %919 = vmatmul.mubr.f32.gmra.mrb[18].mxu1 %v6238_v32  ;;  %v8398_v40 = vunpack.i.h.bf16 %v5859_v25  ;;  %v548_v25 = vld [vmem:[%s8378_s1 + $0xb0] sm:$0xff] }
  0xed   :  { %4159 = vmatpush1.bf16.msra.mxu0 %v4158_v3  ;;  %923 = vmatprep.mubr.f32.mxu1 %v6245_v39  ;;  %v446_v34 = vsel %vm444_vm8, %v5038_v62, %v4978_v49  ;;  %v449_v22 = vsel %vm444_vm8, %v5039_v52, %v4983_v12 }
  0xee   :  { %v5047_v11 = vpop.permute.xlu0 %5046  ;;  %v4160_v21 = vpack.c.bf16 %v449_v22, %v446_v34  ;;  %v445_v46 = vsel %vm444_vm8, %v5043_v27, %v5038_v62  ;;  %v448_v2 = vsel %vm444_vm8, %v5044_v37, %v5039_v52 }
  0xef   :  { %v5049_v6 = vunpack.i.h.bf16 %v5047_v11  ;;  %v5048_v49 = vunpack.i.l.bf16 %v5047_v11  ;;  %v5052_v18 = vpop.permute.xlu1 %5051  ;;  %v4162_v61 = vpack.c.bf16 %v448_v2, %v445_v46  ;;  %v1085_v2 = vlaneseq }
  0xf0   :  { %v5054_v13 = vunpack.i.h.bf16 %v5052_v18  ;;  %v5053_v12 = vunpack.i.l.bf16 %v5052_v18  ;;  %4161 = vmatprep.subr.bf16.mxu0 %v4160_v21  ;;  %924 = vmatmul.mubr.f32.gmra.mrb[20].mxu1 %v532_v26 }
  0xf1   :  { %4163 = vmatpush1.bf16.msra.mxu0 %v4162_v61  ;;  %928 = vmatprep.mubr.f32.mxu1 %v536_v41  ;;  %v452_v1 = vsel %vm444_vm8, %v5048_v49, %v5003_v44  ;;  %v455_v14 = vsel %vm444_vm8, %v5049_v6, %v5008_v8  ;;  %v1086_v61 = vshrl.u32 %v1085_v2, 7 }
  0xf2   :  { %v5057_v43 = vpop.permute.xlu0 %5056  ;;  %v4164_v45 = vpack.c.bf16 %v455_v14, %v452_v1  ;;  %v451_v63 = vsel %vm444_vm8, %v5053_v12, %v5048_v49  ;;  %v454_v7 = vsel %vm444_vm8, %v5054_v13, %v5049_v6 }
  0xf3   :  { %v5059_v17 = vunpack.i.h.bf16 %v5057_v43  ;;  %v5058_v44 = vunpack.i.l.bf16 %v5057_v43  ;;  %v5062_v28 = vpop.permute.xlu1 %5061  ;;  %v4166_v5 = vpack.c.bf16 %v454_v7, %v451_v63  ;;  %v1087_v63 = vsub.s32 0, %v1086_v61 }
  0xf4   :  { %v5064_v42 = vunpack.i.h.bf16 %v5062_v28  ;;  %v5063_v8 = vunpack.i.l.bf16 %v5062_v28  ;;  %4165 = vmatprep.subr.bf16.mxu0 %v4164_v45  ;;  %929 = vmatmul.mubr.f32.gmra.mrb[22].mxu1 %v535_v20  ;;  %v1091_v28 = vsub.s32 1, %v1086_v61 }
  0xf5   :  { %4167 = vmatpush1.bf16.msra.mxu0 %v4166_v5  ;;  %933 = vmatprep.mubr.f32.mxu1 %v539_v24  ;;  %v504_v38 = vsel %vm501_vm1, %v4764_v50, %v5058_v44  ;;  %v507_v59 = vsel %vm501_vm1, %v8396_v33, %v5059_v17  ;;  %v541_v50 = vld [vmem:[%s8378_s1 + $0x78] sm:$0xff]  ;;  %v1083_v44 = vld [vmem:[%s8380_s5] sm:$0x7] }
  0xf6   :  { %v4208_v15 = vpack.c.bf16 %v507_v59, %v504_v38  ;;  %v510_v36 = vsel %vm501_vm1, %v8397_v4, %v5063_v8  ;;  %v513_v51 = vsel %vm501_vm1, %v8398_v40, %v5064_v42  ;;  %v1095_v38 = vsub.s32 2, %v1086_v61 }
  0xf7   :  { %v4212_v47 = vpack.c.bf16 %v513_v51, %v510_v36  ;;  %v6361_v4 = vrot.slane %v1083_v44, %v1087_v63 }
  0xf8   :  { %688 = vmatmul.mubr.f32.vlgmr.msra.gmra.mrb[0].mxu0 %v6218_v16  ;;  %934 = vmatmul.mubr.f32.gmra.mrb[24].mxu1 %v538_v48  ;;  %v547_v16 = vld [vmem:[%s8378_s1 + $0xa8] sm:$0xff] }
  0xf9   :  { %4209 = vmatprep.subr.bf16.mxu1 %v4208_v15  ;;  %693 = vmatprep.mubr.f32.mxu0 %v6225_v0 }
  0xfa   :  { %4211 = vmatpush3.bf16.msra.mxu1 %v4208_v15  ;;  %938 = vmatprep.mubr.f32.mxu1 %v542_v57 }
  0xfb   :  { %4213 = vmatprep.subr.bf16.mxu1 %v4212_v47 }
  0xfc   :  { %694 = vmatmul.mubr.f32.gmra.mrb[2].mxu0 %v6238_v32  ;;  %939 = vmatmul.mubr.f32.gmra.mrb[26].mxu1 %v541_v50 }
  0xfd   :  { %699 = vmatprep.mubr.f32.mxu0 %v6245_v39  ;;  %943 = vmatprep.mubr.f32.mxu1 %v545_v54 }
  0xfe   :  { %4215 = vmatpush3.bf16.msra.mxu1 %v4212_v47  ;;  %v6363_v47 = vrot.slane %v1083_v44, %v1091_v28 }
 0x100   :  { %700 = vmatmul.mubr.f32.gmra.mrb[4].mxu0 %v532_v26  ;;  %944 = vmatmul.mubr.f32.gmra.mrb[28].mxu1 %v544_v19 }
 0x101   :  { %705 = vmatprep.mubr.f32.mxu0 %v536_v41  ;;  %948 = vmatprep.mubr.f32.mxu1 %v548_v25 }
 0x104   :  { %706 = vmatmul.mubr.f32.gmra.mrb[6].mxu0 %v535_v20  ;;  %949 = vmatmul.mubr.f32.gmra.mrb[30].mxu1 %v547_v16 }
 0x105   :  { %711 = vmatprep.mubr.f32.mxu0 %v539_v24  ;;  %4052 = vmatprep.mubr.msk.f32.mxu1 %vm598_vm3, %v5885_v56 }
 0x108   :  { %712 = vmatmul.mubr.f32.gmra.mrb[8].mxu0 %v538_v48  ;;  %4053 = vmatmul.mubr.msk.f32.vlgmr.msra.gmra.mrb[32].mxu1 %vm598_vm3, %v5902_v9 }
 0x109   :  { %717 = vmatprep.mubr.f32.mxu0 %v542_v57  ;;  %4055 = vmatprep.mubr.msk.f32.mxu1 %vm598_vm3, %v5936_v31 }
 0x10a   :  { %v566_v26 = vpop.permute.xlu1 %565  ;;  %v561_v21 = vpop.permute.xlu0 %560 }
 0x10c   :  { %718 = vmatmul.mubr.f32.gmra.mrb[10].mxu0 %v541_v50  ;;  %4056 = vmatmul.mubr.msk.f32.gmra.mrb[34].mxu1 %vm598_vm3, %v5963_v60 }
 0x10d   :  { %723 = vmatprep.mubr.f32.mxu0 %v545_v54  ;;  %4058 = vmatprep.mubr.msk.f32.mxu1 %vm598_vm3, %v5990_v23 }
 0x10e   :  { %v571_v49 = vpop.permute.xlu1 %570  ;;  %v6354_v12 = vpop.permute.xlu0 %575 }
 0x110   :  { %724 = vmatmul.mubr.f32.gmra.mrb[12].mxu0 %v544_v19  ;;  %4059 = vmatmul.mubr.msk.f32.gmra.mrb[36].mxu1 %vm598_vm3, %v6012_v53 }
 0x111   :  { %729 = vmatprep.mubr.f32.mxu0 %v548_v25  ;;  %4061 = vmatprep.mubr.msk.f32.mxu1 %vm598_vm3, %v6032_v10 }
 0x113   :  { %v6359_v5 = vpop.permute.xlu1 %580 }
 0x114   :  { %730 = vmatmul.mubr.f32.gmra.mrb[14].mxu0 %v547_v16  ;;  %4062 = vmatmul.mubr.msk.f32.gmra.mrb[38].mxu1 %vm598_vm3, %v6050_v55 }
 0x115   :  { %v6365_v54 = vpop.permute.xlu0 %585 }
 0x167   :  { %v802_v56 = vpop.f32.mrb[0].mxu1 }
 0x168   :  { %v804_v9 = vpop.f32.mrb[1].mxu1 }
 0x16b   :  { %v808_v31 = vpop.f32.mrb[2].mxu1 }
 0x16c   :  { %v810_v60 = vpop.f32.mrb[3].mxu1 }
 0x16f   :  { %v6330_v0 = vpop.f32.mrb[4].mxu1 }
 0x170   :  { %v6332_v32 = vpop.f32.mrb[5].mxu1 }
 0x173   :  { %v6334_v23 = vpop.f32.mrb[6].mxu1 }
 0x174   :  { %v6336_v29 = vpop.f32.mrb[7].mxu1 }
 0x177   :  { %v6338_v53 = vpop.f32.mrb[8].mxu1 }
 0x178   :  { %v6340_v35 = vpop.f32.mrb[9].mxu1 }
 0x17b   :  { %v6342_v10 = vpop.f32.mrb[10].mxu1 }
 0x17c   :  { %v6344_v30 = vpop.f32.mrb[11].mxu1 }
 0x17f   :  { %v6346_v55 = vpop.f32.mrb[12].mxu1 }
 0x180   :  { %v6348_v39 = vpop.f32.mrb[13].mxu1 }
 0x183   :  { %v6350_v52 = vpop.f32.mrb[14].mxu1 }
 0x184   :  { %v6352_v62 = vpop.f32.mrb[15].mxu1 }
 0x1bb   :  { %v3824_v58 = vpop.f32.mrb[16].mxu1 }
 0x1bc   :  { %v3825_v3 = vpop.f32.mrb[17].mxu1 }
 0x1bd   :  { %v3826_v37 = vadd.f32 %v3825_v3, %v3824_v58 }
 0x1bf   :  { %v3827_v27 = vpop.f32.mrb[18].mxu1  ;;  %v916_v58 = vadd.f32 %v3826_v37, %v561_v21 }
 0x1c0   :  { %v3828_v34 = vpop.f32.mrb[19].mxu1 }
 0x1c1   :  { %v3829_v22 = vadd.f32 %v3828_v34, %v3827_v27 }
 0x1c3   :  { %v3830_v11 = vpop.f32.mrb[20].mxu1 }
 0x1c4   :  { %v3831_v46 = vpop.f32.mrb[21].mxu1 }
 0x1c5   :  { %v3832_v41 = vadd.f32 %v3831_v46, %v3830_v11 }
 0x1c7   :  { %v3833_v6 = vpop.f32.mrb[22].mxu1  ;;  %v6370_v2 = vadd.f32 %v3832_v41, %v571_v49 }
 0x1c8   :  { %v3834_v18 = vpop.f32.mrb[23].mxu1 }
 0x1c9   :  { %v3835_v13 = vadd.f32 %v3834_v18, %v3833_v6 }
 0x1cb   :  { %v689_v1 = vpop.f32.mrb[0].mxu0  ;;  %v3836_v14 = vpop.f32.mrb[24].mxu1  ;;  %v931_v46 = vadd.f32 %v3835_v13, %v6354_v12 }
 0x1cc   :  { %v690_v20 = vadd.f32 %v689_v1, %v561_v21  ;;  %v691_v43 = vpop.f32.mrb[1].mxu0  ;;  %v3837_v45 = vpop.f32.mrb[25].mxu1 }
 0x1cd   :  { %v692_v7 = vadd.f32 %v691_v43, %v561_v21  ;;  %v3838_v24 = vadd.f32 %v3837_v45, %v3836_v14  ;;  %v6381_v21 = vpop.permute.xlu1 %590 }
 0x1ce   :  { %v803_v17 = vadd.f32 %v802_v56, %v690_v20  ;;  %v921_v56 = vadd.f32 %v3829_v22, %v566_v26 }
 0x1cf   :  { %v805_v42 = vadd.f32 %v804_v9, %v692_v7  ;;  %v695_v8 = vpop.f32.mrb[2].mxu0  ;;  %v3839_v48 = vpop.f32.mrb[26].mxu1  ;;  %v6367_v9 = vrot.slane %v1083_v44, %v1095_v38  ;;  %v6373_v61 = vadd.f32 %v3838_v24, %v6359_v5 }
 0x1d0   :  { %v696_v33 = vadd.f32 %v695_v8, %v566_v26  ;;  %v697_v59 = vpop.f32.mrb[3].mxu0  ;;  %v3840_v15 = vpop.f32.mrb[27].mxu1  ;;  %v1059_v51 = vmax.f32 %v803_v17, 0.0 }
 0x1d1   :  { %v698_v36 = vadd.f32 %v697_v59, %v566_v26  ;;  %v3841_v40 = vadd.f32 %v3840_v15, %v3839_v48  ;;  %v1060_v57 = vmax.f32 %v805_v42, 0.0  ;;  %v6402_v8 = vpop.permute.xlu0 %595 }
 0x1d2   :  { %v809_v50 = vadd.f32 %v808_v31, %v696_v33 }
 0x1d3   :  { %v811_v19 = vadd.f32 %v810_v60, %v698_v36  ;;  %v701_v25 = vpop.f32.mrb[4].mxu0  ;;  %v3842_v16 = vpop.f32.mrb[28].mxu1  ;;  %v1100_v60 = vmul.f32 %v6361_v4, %v1059_v51  ;;  %v6377_v22 = vmul.f32 %v6363_v47, %v1060_v57  ;;  %v6388_v14 = vadd.f32 %v3841_v40, %v6365_v54 }
 0x1d4   :  { %v1062_v3 = vmax.f32 %v809_v50, 0.0  ;;  %v702_v27 = vadd.f32 %v701_v25, %v571_v49  ;;  %v703_v34 = vpop.f32.mrb[5].mxu0  ;;  %v3843_v11 = vpop.f32.mrb[29].mxu1 }
 0x1d5   :  { %v1063_v6 = vmax.f32 %v811_v19, 0.0  ;;  %v704_v18 = vadd.f32 %v703_v34, %v571_v49  ;;  %v3844_v31 = vadd.f32 %v3843_v11, %v3842_v16 }
 0x1d6   :  { %v1103_v37 = vmul.f32 %v6361_v4, %v1062_v3  ;;  %v815_v26 = vadd.f32 %v6330_v0, %v702_v27 }
 0x1d7   :  { %v6384_v41 = vmul.f32 %v6363_v47, %v1063_v6  ;;  %v817_v49 = vadd.f32 %v6332_v32, %v704_v18  ;;  %v707_v13 = vpop.f32.mrb[6].mxu0  ;;  %v3845_v1 = vpop.f32.mrb[30].mxu1  ;;  %v6391_v20 = vadd.f32 %v3844_v31, %v6381_v21 }
 0x1d8   :  { %v1065_v43 = vmax.f32 %v815_v26, 0.0  ;;  %v708_v45 = vadd.f32 %v707_v13, %v6354_v12  ;;  %v709_v63 = vpop.f32.mrb[7].mxu0  ;;  %v3846_v0 = vpop.f32.mrb[31].mxu1  ;;  %v6394_v7 = vpack.i.bf16 %v1103_v37, %v1100_v60  ;;  %v4218_v24 = vpack.c.bf16 %v1103_v37, %v1100_v60 }
 0x1d9   :  { %v1066_v17 = vmax.f32 %v817_v49, 0.0  ;;  %v710_v44 = vadd.f32 %v709_v63, %v6354_v12  ;;  %v3847_v32 = vadd.f32 %v3846_v0, %v3845_v1  ;;  %v4216_v28 = vpack.c.bf16 %v6384_v41, %v6377_v22 }
 0x1da   :  { %v6400_v42 = vmul.f32 %v6361_v4, %v1065_v43  ;;  %v821_v48 = vadd.f32 %v6334_v23, %v708_v45  ;;  %5068 = vrot.lane.b32.xlu1 %v6394_v7, %s5547_s29 }
 0x1db   :  { %v6408_v38 = vmul.f32 %v6363_v47, %v1066_v17  ;;  %v823_v33 = vadd.f32 %v6336_v29, %v710_v44  ;;  %v713_v12 = vpop.f32.mrb[8].mxu0  ;;  %v4054_v59 = vpop.f32.mrb[32].mxu1  ;;  %4217 = vmatprep.subr.bf16.mxu1 %v4216_v28  ;;  %v6412_v15 = vadd.f32 %v3847_v32, %v6402_v8 }
 0x1dc   :  { %v1068_v36 = vmax.f32 %v821_v48, 0.0  ;;  %v714_v40 = vadd.f32 %v713_v12, %v6359_v5  ;;  %v1026_v51 = vadd.f32 %v4054_v59, %v921_v56  ;;  %v715_v57 = vpop.f32.mrb[9].mxu0  ;;  %v1020_v23 = vpop.f32.mrb[33].mxu1  ;;  %4219 = vmatpush1.bf16.msra.mxu1 %v4218_v24 }
 0x1dd   :  { %v1069_v50 = vmax.f32 %v823_v33, 0.0  ;;  %v716_v19 = vadd.f32 %v715_v57, %v6359_v5  ;;  %v1021_v25 = vadd.f32 %v1020_v23, %v916_v58 }
 0x1de   :  { %v1109_v16 = vmul.f32 %v6361_v4, %v1068_v36  ;;  %v827_v29 = vadd.f32 %v6338_v53, %v714_v40  ;;  %v1064_v3 = vmax.f32 %v1026_v51, 0.0  ;;  %5073 = vrot.lane.b32.xlu1 %v6394_v7, %s5549_s0 }
 0x1df   :  { %v6421_v27 = vmul.f32 %v6363_v47, %v1069_v50  ;;  %v829_v56 = vadd.f32 %v6340_v35, %v716_v19  ;;  %v1061_v34 = vmax.f32 %v1021_v25, 0.0  ;;  %v719_v11 = vpop.f32.mrb[10].mxu0  ;;  %v4057_v6 = vpop.f32.mrb[34].mxu1 }
 0x1e0   :  { %v1071_v18 = vmax.f32 %v827_v29, 0.0  ;;  %v6425_v5 = vmul.f32 %v6367_v9, %v1064_v3  ;;  %v720_v58 = vadd.f32 %v719_v11, %v6365_v54  ;;  %v1036_v31 = vadd.f32 %v4057_v6, %v931_v46  ;;  %v721_v53 = vpop.f32.mrb[11].mxu0  ;;  %v1030_v60 = vpop.f32.mrb[35].mxu1 }
 0x1e1   :  { %v1072_v37 = vmax.f32 %v829_v56, 0.0  ;;  %v6429_v26 = vmul.f32 %v6367_v9, %v1061_v34  ;;  %v722_v49 = vadd.f32 %v721_v53, %v6365_v54  ;;  %v1031_v35 = vadd.f32 %v1030_v60, %v6370_v2 }
 0x1e2   :  { %v6434_v13 = vmul.f32 %v6361_v4, %v1071_v18  ;;  %v833_v1 = vadd.f32 %v6342_v10, %v720_v58  ;;  %v1070_v43 = vmax.f32 %v1036_v31, 0.0  ;;  %v6438_v45 = vpack.i.bf16 %v1109_v16, %v6400_v42  ;;  %5078 = vrot.lane.b32.xlu1 %v6394_v7, %s5552_s16 }
 0x1e3   :  { %v6443_v46 = vmul.f32 %v6363_v47, %v1072_v37  ;;  %v835_v63 = vadd.f32 %v6344_v30, %v722_v49  ;;  %v1067_v54 = vmax.f32 %v1031_v35, 0.0  ;;  %v725_v0 = vpop.f32.mrb[12].mxu0  ;;  %v4060_v2 = vpop.f32.mrb[36].mxu1  ;;  %v4220_v24 = vpack.c.bf16 %v6421_v27, %v6408_v38 }
 0x1e4   :  { %v1074_v17 = vmax.f32 %v833_v1, 0.0  ;;  %v6449_v10 = vmul.f32 %v6367_v9, %v1070_v43  ;;  %5088 = vrot.lane.b32.xlu0 %v6438_v45, %s5547_s29  ;;  %v726_v44 = vadd.f32 %v725_v0, %v6381_v21  ;;  %v1046_v32 = vadd.f32 %v4060_v2, %v6388_v14  ;;  %v727_v28 = vpop.f32.mrb[13].mxu0  ;;  %v1040_v48 = vpop.f32.mrb[37].mxu1 }
 0x1e5   :  { %v1075_v30 = vmax.f32 %v835_v63, 0.0  ;;  %v6456_v33 = vmul.f32 %v6367_v9, %v1067_v54  ;;  %4221 = vmatprep.subr.bf16.mxu1 %v4220_v24  ;;  %v728_v12 = vadd.f32 %v727_v28, %v6381_v21  ;;  %v1041_v59 = vadd.f32 %v1040_v48, %v6373_v61  ;;  %v1853_v24 = vld [vmem:[%s8381_s3 + $0x8] sm:$0xff] }
 0x1e6   :  { %v1115_v36 = vmul.f32 %v6361_v4, %v1074_v17  ;;  %v839_v40 = vadd.f32 %v6346_v55, %v726_v44  ;;  %v1076_v51 = vmax.f32 %v1046_v32, 0.0  ;;  %v4222_v57 = vpack.c.bf16 %v1109_v16, %v6400_v42  ;;  %5083 = vrot.lane.b32.xlu1 %v6394_v7, %s5550_s15  ;;  %2624 = vmatprep.mubr.f32.mxu0 %v1853_v24 }
 0x1e7   :  { %v1116_v14 = vmul.f32 %v6363_v47, %v1075_v30  ;;  %v841_v23 = vadd.f32 %v6348_v39, %v728_v12  ;;  %v1073_v50 = vmax.f32 %v1041_v59, 0.0  ;;  %v731_v19 = vpop.f32.mrb[14].mxu0  ;;  %v4063_v25 = vpop.f32.mrb[38].mxu1  ;;  %v6485_v53 = vpack.i.bf16 %v6429_v26, %v6377_v22  ;;  %2141 = vmatprep.mubr.f32.mxu1 %v1853_v24 }
 0x1e8   :  { %v1077_v21 = vmax.f32 %v839_v40, 0.0  ;;  %v6468_v61 = vmul.f32 %v6367_v9, %v1076_v51  ;;  %4223 = vmatpush1.bf16.msra.mxu1 %v4222_v57  ;;  %v732_v55 = vadd.f32 %v731_v19, %v6402_v8  ;;  %v1056_v29 = vadd.f32 %v4063_v25, %v6412_v15  ;;  %v733_v42 = vpop.f32.mrb[15].mxu0  ;;  %v1050_v16 = vpop.f32.mrb[39].mxu1  ;;  %5093 = vrot.lane.b32.xlu0 %v6438_v45, %s5549_s0 }
 0x1e9   :  { %v1078_v3 = vmax.f32 %v841_v23, 0.0  ;;  %v6473_v56 = vmul.f32 %v6367_v9, %v1073_v50  ;;  %v734_v39 = vadd.f32 %v733_v42, %v6402_v8  ;;  %v1051_v34 = vadd.f32 %v1050_v16, %v6391_v20 }
 0x1ea   :  { %v1118_v11 = vmul.f32 %v6361_v4, %v1077_v21  ;;  %v845_v6 = vadd.f32 %v6350_v52, %v732_v55  ;;  %v1082_v18 = vmax.f32 %v1056_v29, 0.0  ;;  %v4224_v20 = vpack.c.bf16 %v1116_v14, %v6443_v46  ;;  %5123 = vrot.lane.b32.xlu1 %v6485_v53, %s5547_s29 }
 0x1eb   :  { %v1119_v15 = vmul.f32 %v6363_v47, %v1078_v3  ;;  %v847_v58 = vadd.f32 %v6352_v62, %v734_v39  ;;  %v1079_v31 = vmax.f32 %v1051_v34, 0.0  ;;  %v4226_v8 = vpack.c.bf16 %v1115_v36, %v6434_v13 }
 0x1ec   :  { %v1080_v60 = vmax.f32 %v845_v6, 0.0  ;;  %v6488_v37 = vmul.f32 %v6367_v9, %v1082_v18  ;;  %5098 = vrot.lane.b32.xlu0 %v6438_v45, %s5552_s16  ;;  %v6501_v62 = vpack.i.bf16 %v6425_v5, %v6384_v41  ;;  %4225 = vmatprep.subr.bf16.mxu1 %v4224_v20  ;;  %v6511_v43 = vpack.i.bf16 %v6456_v33, %v6408_v38 }
 0x1ed   :  { %v1081_v49 = vmax.f32 %v847_v58, 0.0  ;;  %v6493_v52 = vmul.f32 %v6367_v9, %v1079_v31  ;;  %4227 = vmatpush1.bf16.msra.mxu1 %v4226_v8  ;;  %v6507_v9 = vpack.i.bf16 %v6449_v10, %v6421_v27  ;;  %v6518_v41 = vpack.i.bf16 %v1115_v36, %v6434_v13 }
 0x1ee   :  { %v1121_v22 = vmul.f32 %v6361_v4, %v1080_v60  ;;  %5128 = vrot.lane.b32.xlu1 %v6485_v53, %s5549_s0  ;;  %v6525_v27 = vpack.i.bf16 %v6473_v56, %v6443_v46  ;;  %v4362_v46 = vpack.c.bf16 %v6425_v5, %v6429_v26  ;;  %v4366_v54 = vpack.c.bf16 %v6449_v10, %v6456_v33 }
 0x1ef   :  { %v1122_v35 = vmul.f32 %v6363_v47, %v1081_v49  ;;  %v6521_v47 = vpack.i.bf16 %v6468_v61, %v1116_v14  ;;  %v6528_v38 = vpack.i.bf16 %v6493_v52, %v1119_v15  ;;  %v4370_v0 = vpack.c.bf16 %v6468_v61, %v6473_v56 }
 0x1f0   :  { %v4230_v1 = vpack.c.bf16 %v1121_v22, %v1118_v11  ;;  %5103 = vrot.lane.b32.xlu0 %v6501_v62, %s5547_s29  ;;  %v6537_v63 = vpack.i.bf16 %v1121_v22, %v1118_v11  ;;  %v4374_v2 = vpack.c.bf16 %v6488_v37, %v6493_v52 }
 0x1f1   :  { %v4228_v4 = vpack.c.bf16 %v1122_v35, %v1119_v15  ;;  %v6535_v13 = vpack.i.bf16 %v6488_v37, %v1122_v35 }
 0x1f2   :  { %5133 = vrot.lane.b32.xlu1 %v6485_v53, %s5552_s16 }
 0x1f3   :  { %4229 = vmatprep.subr.bf16.mxu1 %v4228_v4 }
 0x1f4   :  { %4231 = vmatpush1.bf16.msra.mxu1 %v4230_v1  ;;  %5108 = vrot.lane.b32.xlu0 %v6501_v62, %s5549_s0 }
 0x1f6   :  { %5138 = vrot.lane.b32.xlu1 %v6485_v53, %s5550_s15 }
 0x1f8   :  { %5113 = vrot.lane.b32.xlu0 %v6501_v62, %s5552_s16 }
 0x1fa   :  { %5143 = vrot.lane.b32.xlu1 %v6507_v9, %s5547_s29 }
 0x1fc   :  { %5118 = vrot.lane.b32.xlu0 %v6501_v62, %s5550_s15 }
 0x1fe   :  { %5148 = vrot.lane.b32.xlu1 %v6507_v9, %s5549_s0 }
 0x200   :  { %5158 = vrot.lane.b32.xlu0 %v6511_v43, %s5547_s29 }
 0x202   :  { %5153 = vrot.lane.b32.xlu1 %v6507_v9, %s5552_s16 }
 0x204   :  { %5163 = vrot.lane.b32.xlu0 %v6511_v43, %s5549_s0 }
 0x206   :  { %5178 = vrot.lane.b32.xlu1 %v6518_v41, %s5547_s29 }
 0x208   :  { %5168 = vrot.lane.b32.xlu0 %v6511_v43, %s5552_s16 }
 0x20a   :  { %5183 = vrot.lane.b32.xlu1 %v6518_v41, %s5549_s0 }
 0x20c   :  { %5173 = vrot.lane.b32.xlu0 %v6511_v43, %s5550_s15 }
 0x20e   :  { %5188 = vrot.lane.b32.xlu1 %v6518_v41, %s5552_s16 }
 0x210   :  { %5193 = vrot.lane.b32.xlu0 %v6521_v47, %s5547_s29 }
 0x212   :  { %5208 = vrot.lane.b32.xlu1 %v6525_v27, %s5547_s29 }
 0x214   :  { %5198 = vrot.lane.b32.xlu0 %v6521_v47, %s5549_s0 }
 0x216   :  { %5213 = vrot.lane.b32.xlu1 %v6525_v27, %s5549_s0 }
 0x218   :  { %5203 = vrot.lane.b32.xlu0 %v6521_v47, %s5552_s16 }
 0x21a   :  { %5218 = vrot.lane.b32.xlu1 %v6525_v27, %s5552_s16 }
 0x21c   :  { %5223 = vrot.lane.b32.xlu0 %v6528_v38, %s5547_s29 }
 0x21e   :  { %5253 = vrot.lane.b32.xlu1 %v6535_v13, %s5547_s29 }
 0x220   :  { %5228 = vrot.lane.b32.xlu0 %v6528_v38, %s5549_s0 }
 0x222   :  { %5258 = vrot.lane.b32.xlu1 %v6507_v9, %s5550_s15 }
 0x224   :  { %5233 = vrot.lane.b32.xlu0 %v6528_v38, %s5552_s16 }
 0x226   :  { %5268 = vrot.lane.b32.xlu1 %v6525_v27, %s5550_s15 }
 0x228   :  { %5238 = vrot.lane.b32.xlu0 %v6537_v63, %s5547_s29 }
 0x22a   :  { %5278 = vrot.lane.b32.xlu1 %v6518_v41, %s5550_s15 }
 0x22c   :  { %5243 = vrot.lane.b32.xlu0 %v6537_v63, %s5549_s0 }
 0x22e   :  { %5293 = vrot.lane.b32.xlu1 %v6535_v13, %s5549_s0 }
 0x230   :  { %5248 = vrot.lane.b32.xlu0 %v6537_v63, %s5552_s16 }
 0x232   :  { %5298 = vrot.lane.b32.xlu1 %v6485_v53, %s5553_s17 }
 0x234   :  { %5263 = vrot.lane.b32.xlu0 %v6438_v45, %s5550_s15 }
 0x236   :  { %5308 = vrot.lane.b32.xlu1 %v6394_v7, %s5553_s17 }
 0x238   :  { %5273 = vrot.lane.b32.xlu0 %v6521_v47, %s5550_s15 }
 0x23a   :  { %5318 = vrot.lane.b32.xlu1 %v6507_v9, %s5553_s17 }
 0x23c   :  { %5283 = vrot.lane.b32.xlu0 %v6528_v38, %s5550_s15 }
 0x23e   :  { %5328 = vrot.lane.b32.xlu1 %v6535_v13, %s5552_s16 }
 0x240   :  { %5288 = vrot.lane.b32.xlu0 %v6537_v63, %s5550_s15 }
 0x242   :  { %5333 = vrot.lane.b32.xlu1 %v6525_v27, %s5553_s17 }
 0x244   :  { %5303 = vrot.lane.b32.xlu0 %v6501_v62, %s5553_s17 }
 0x246   :  { %5343 = vrot.lane.b32.xlu1 %v6518_v41, %s5553_s17 }
 0x248   :  { %5313 = vrot.lane.b32.xlu0 %v6511_v43, %s5553_s17 }
 0x24a   :  { %5358 = vrot.lane.b32.xlu1 %v6485_v53, %s5554_s18 }
 0x24c   :  { %v5069_v17 = vpop.permute.xlu1 %5068  ;;  %5323 = vrot.lane.b32.xlu0 %v6438_v45, %s5553_s17 }
 0x24d   :  { %v5070_v51 = vunpack.i.l.bf16 %v5069_v17  ;;  %v5071_v23 = vunpack.i.h.bf16 %v5069_v17 }
 0x24e   :  { %5368 = vrot.lane.b32.xlu1 %v6535_v13, %s5550_s15 }
 0x250   :  { %v6638_v44 = vpop.permute.xlu1 %5073  ;;  %5338 = vrot.lane.b32.xlu0 %v6521_v47, %s5553_s17 }
 0x252   :  { %5373 = vrot.lane.b32.xlu1 %v6394_v7, %s5554_s18 }
 0x254   :  { %v6644_v32 = vpop.permute.xlu1 %5078  ;;  %5348 = vrot.lane.b32.xlu0 %v6528_v38, %s5553_s17 }
 0x256   :  { %v5089_v28 = vpop.permute.xlu0 %5088  ;;  %5383 = vrot.lane.b32.xlu1 %v6507_v9, %s5554_s18 }
 0x257   :  { %v5091_v5 = vunpack.i.h.bf16 %v5089_v28  ;;  %v5090_v26 = vunpack.i.l.bf16 %v5089_v28 }
 0x258   :  { %5353 = vrot.lane.b32.xlu0 %v6537_v63, %s5553_s17  ;;  %v6654_v48 = vpop.permute.xlu1 %5083 }
 0x25a   :  { %v6656_v30 = vpop.permute.xlu0 %5093  ;;  %5393 = vrot.lane.b32.xlu1 %v6525_v27, %s5554_s18 }
 0x25c   :  { %5363 = vrot.lane.b32.xlu0 %v6501_v62, %s5554_s18  ;;  %v5124_v59 = vpop.permute.xlu1 %5123 }
 0x25d   :  { %v5125_v36 = vunpack.i.l.bf16 %v5124_v59  ;;  %v5126_v40 = vunpack.i.h.bf16 %v5124_v59 }
 0x25e   :  { %v6662_v12 = vpop.permute.xlu0 %5098  ;;  %5403 = vrot.lane.b32.xlu1 %v6535_v13, %s5553_s17 }
 0x25f   :  { %v1196_v25 = vsel %vm102_vm0, %v5070_v51, %v5125_v36  ;;  %v1197_v29 = vsel %vm102_vm0, %v5125_v36, %v5126_v40 }
 0x260   :  { %5378 = vrot.lane.b32.xlu0 %v6511_v43, %s5554_s18  ;;  %v6668_v14 = vpop.permute.xlu1 %5128 }
 0x261   :  { %v5131_v11 = vunpack.i.h.bf16 %v6668_v14 }
 0x262   :  { %v5104_v57 = vpop.permute.xlu0 %5103  ;;  %5408 = vrot.lane.b32.xlu1 %v6518_v41, %s5554_s18 }
 0x263   :  { %v5106_v50 = vunpack.i.h.bf16 %v5104_v57  ;;  %v5105_v19 = vunpack.i.l.bf16 %v5104_v57 }
 0x264   :  { %5388 = vrot.lane.b32.xlu0 %v6438_v45, %s5554_s18  ;;  %v6682_v3 = vpop.permute.xlu1 %5133 }
 0x265   :  { %v1198_v21 = vsel %vm102_vm0, %v5071_v23, %v5105_v19  ;;  %v6676_v55 = vpack.c.bf16 %v5106_v50, %v5126_v40  ;;  %v1199_v42 = vsel %vm102_vm0, %v5105_v19, %v5106_v50 }
 0x266   :  { %v6680_v16 = vpop.permute.xlu0 %5108  ;;  %v4232_v39 = vpack.c.bf16 %v1199_v42, %v1197_v29  ;;  %v4234_v34 = vpack.c.bf16 %v1198_v21, %v1196_v25  ;;  %5423 = vrot.lane.b32.xlu1 %v6485_v53, %s5555_s19 }
 0x267   :  { %v5111_v6 = vunpack.i.h.bf16 %v6680_v16 }
 0x268   :  { %5398 = vrot.lane.b32.xlu0 %v6521_v47, %s5554_s18  ;;  %4233 = vmatprep.subr.bf16.mxu1 %v4232_v39  ;;  %v6696_v58 = vpop.permute.xlu1 %5138 }
 0x269   :  { %v4360_v18 = vpack.c.bf16 %v5111_v6, %v5131_v11  ;;  %4235 = vmatpush1.bf16.msra.mxu1 %v4234_v34 }
 0x26a   :  { %v6694_v15 = vpop.permute.xlu0 %5113  ;;  %5433 = vrot.lane.b32.xlu1 %v6394_v7, %s5555_s19 }
 0x26b   :  { %4361 = vmatprep.subr.bf16.mxu0 %v4360_v18 }
 0x26c   :  { %5413 = vrot.lane.b32.xlu0 %v6528_v38, %s5554_s18  ;;  %4363 = vmatpush3.bf16.msra.mxu0 %v4362_v46  ;;  %v6707_v60 = vpop.permute.xlu1 %5143 }
 0x26d   :  { %v5146_v20 = vunpack.i.h.bf16 %v6707_v60  ;;  %v5145_v8 = vunpack.i.l.bf16 %v6707_v60  ;;  %v1941_v60 = vld [vmem:[%s8382_s4 + $0x48] sm:$0xff] }
 0x26e   :  { %v6705_v31 = vpop.permute.xlu0 %5118  ;;  %5443 = vrot.lane.b32.xlu1 %v6535_v13, %s5554_s18 }
 0x26f   :  { %v1202_v4 = vsel %vm102_vm0, %v5091_v5, %v5145_v8  ;;  %v1203_v17 = vsel %vm102_vm0, %v5145_v8, %v5146_v20 }
 0x270   :  { %5418 = vrot.lane.b32.xlu0 %v6537_v63, %s5554_s18  ;;  %v6717_v22 = vpop.permute.xlu1 %5148 }
 0x271   :  { %v5151_v51 = vunpack.i.h.bf16 %v6717_v22 }
 0x272   :  { %v6715_v49 = vpop.permute.xlu0 %5158  ;;  %5448 = vrot.lane.b32.xlu1 %v6507_v9, %s5555_s19 }
 0x273   :  { %v5161_v35 = vunpack.i.h.bf16 %v6715_v49  ;;  %v5160_v1 = vunpack.i.l.bf16 %v6715_v49  ;;  %v5100_v49 = vunpack.i.l.bf16 %v6662_v12 }
 0x274   :  { %5428 = vrot.lane.b32.xlu0 %v6501_v62, %s5555_s19  ;;  %v6735_v36 = vpop.permute.xlu1 %5153 }
 0x275   :  { %v1200_v46 = vsel %vm102_vm0, %v5090_v26, %v5160_v1  ;;  %v1201_v24 = vsel %vm102_vm0, %v5160_v1, %v5161_v35 }
 0x276   :  { %v4238_v28 = vpack.c.bf16 %v1202_v4, %v1200_v46  ;;  %v6733_v59 = vpop.permute.xlu0 %5163  ;;  %v4236_v40 = vpack.c.bf16 %v1203_v17, %v1201_v24  ;;  %5458 = vrot.lane.b32.xlu1 %v6525_v27, %s5555_s19 }
 0x277   :  { %v5166_v57 = vunpack.i.h.bf16 %v6733_v59 }
 0x278   :  { %5438 = vrot.lane.b32.xlu0 %v6511_v43, %s5555_s19  ;;  %4237 = vmatprep.subr.bf16.mxu1 %v4236_v40  ;;  %v5179_v19 = vpop.permute.xlu1 %5178 }
 0x279   :  { %v4364_v23 = vpack.c.bf16 %v5151_v51, %v5166_v57  ;;  %4239 = vmatpush1.bf16.msra.mxu1 %v4238_v28  ;;  %v5181_v34 = vunpack.i.h.bf16 %v5179_v19  ;;  %v5180_v18 = vunpack.i.l.bf16 %v5179_v19 }
 0x27a   :  { %v6747_v50 = vpop.permute.xlu0 %5168  ;;  %5468 = vrot.lane.b32.xlu1 %v6518_v41, %s5555_s19 }
 0x27b   :  { %4365 = vmatprep.subr.bf16.mxu0 %v4364_v23 }
 0x27c   :  { %5453 = vrot.lane.b32.xlu0 %v6438_v45, %s5555_s19  ;;  %4367 = vmatpush3.bf16.msra.mxu0 %v4366_v54  ;;  %v6758_v21 = vpop.permute.xlu1 %5183 }
 0x27e   :  { %v6756_v25 = vpop.permute.xlu0 %5173  ;;  %5478 = vrot.lane.b32.xlu1 %v6535_v13, %s5555_s19 }
 0x280   :  { %5463 = vrot.lane.b32.xlu0 %v6521_v47, %s5555_s19  ;;  %v6766_v42 = vpop.permute.xlu1 %5188 }
 0x282   :  { %v6764_v29 = vpop.permute.xlu0 %5193  ;;  %5488 = vrot.lane.b32.xlu1 %v6485_v53, %s5548_s30 }
 0x283   :  { %v5196_v10 = vunpack.i.h.bf16 %v6764_v29  ;;  %v5195_v33 = vunpack.i.l.bf16 %v6764_v29  ;;  %v1943_v29 = vld [vmem:[%s8382_s4 + $0x58] sm:$0xff] }
 0x284   :  { %5473 = vrot.lane.b32.xlu0 %v6528_v38, %s5555_s19  ;;  %v6776_v39 = vpop.permute.xlu1 %5208 }
 0x285   :  { %v5211_v8 = vunpack.i.h.bf16 %v6776_v39  ;;  %v5210_v5 = vunpack.i.l.bf16 %v6776_v39  ;;  %v1206_v53 = vsel %vm102_vm0, %v5181_v34, %v5195_v33  ;;  %v1207_v4 = vsel %vm102_vm0, %v5195_v33, %v5196_v10 }
 0x286   :  { %v6774_v54 = vpop.permute.xlu0 %5198  ;;  %5498 = vrot.lane.b32.xlu1 %v6394_v7, %s5548_s30 }
 0x287   :  { %v1204_v26 = vsel %vm102_vm0, %v5180_v18, %v5210_v5  ;;  %v1205_v1 = vsel %vm102_vm0, %v5210_v5, %v5211_v8  ;;  %v5201_v7 = vunpack.i.h.bf16 %v6774_v54 }
 0x288   :  { %5483 = vrot.lane.b32.xlu0 %v6537_v63, %s5555_s19  ;;  %v4242_v46 = vpack.c.bf16 %v1206_v53, %v1204_v26  ;;  %v6794_v17 = vpop.permute.xlu1 %5213  ;;  %v4240_v28 = vpack.c.bf16 %v1207_v4, %v1205_v1  ;;  %v5130_v4 = vunpack.i.l.bf16 %v6668_v14  ;;  %v1936_v14 = vld [vmem:[%s8382_s4 + $0x20] sm:$0xff] }
 0x289   :  { %v5216_v40 = vunpack.i.h.bf16 %v6794_v17 }
 0x28a   :  { %v6792_v24 = vpop.permute.xlu0 %5203  ;;  %5508 = vrot.lane.b32.xlu1 %v6507_v9, %s5548_s30  ;;  %4241 = vmatprep.subr.bf16.mxu1 %v4240_v28 }
 0x28b   :  { %v4368_v23 = vpack.c.bf16 %v5201_v7, %v5216_v40  ;;  %4243 = vmatpush1.bf16.msra.mxu1 %v4242_v46 }
 0x28c   :  { %5493 = vrot.lane.b32.xlu0 %v6501_v62, %s5548_s30  ;;  %v6808_v33 = vpop.permute.xlu1 %5218 }
 0x28d   :  { %4369 = vmatprep.subr.bf16.mxu0 %v4368_v23  ;;  %v5076_v23 = vunpack.i.h.bf16 %v6638_v44 }
 0x28e   :  { %v6806_v19 = vpop.permute.xlu0 %5223  ;;  %5518 = vrot.lane.b32.xlu1 %v6525_v27, %s5548_s30  ;;  %4371 = vmatpush3.bf16.msra.mxu0 %v4370_v0 }
 0x28f   :  { %v8395_v62 = vunpack.i.h.bf16 %v6806_v19  ;;  %v5225_v9 = vunpack.i.l.bf16 %v6806_v19 }
 0x290   :  { %5503 = vrot.lane.b32.xlu0 %v6511_v43, %s5548_s30  ;;  %v6821_v18 = vpop.permute.xlu1 %5253 }
 0x291   :  { %v8394_v5 = vunpack.i.h.bf16 %v6821_v18  ;;  %v5255_v53 = vunpack.i.l.bf16 %v6821_v18  ;;  %v1209_v43 = vsel %vm102_vm0, %v5225_v9, %v8395_v62 }
 0x292   :  { %v6819_v34 = vpop.permute.xlu0 %5228  ;;  %5528 = vrot.lane.b32.xlu1 %v6518_v41, %s5548_s30  ;;  %v1932_v41 = vld [vmem:[%s8382_s4] sm:$0xff] }
 0x293   :  { %v1211_v61 = vsel %vm102_vm0, %v5255_v53, %v8394_v5 }
 0x294   :  { %5513 = vrot.lane.b32.xlu0 %v6438_v45, %s5548_s30  ;;  %v6837_v27 = vpop.permute.xlu1 %5258  ;;  %v4244_v0 = vpack.c.bf16 %v1211_v61, %v1209_v43  ;;  %v5110_v45 = vunpack.i.l.bf16 %v6680_v16  ;;  %v1934_v61 = vld [vmem:[%s8382_s4 + $0x10] sm:$0xff] }
 0x296   :  { %v6835_v56 = vpop.permute.xlu0 %5233  ;;  %5538 = vrot.lane.b32.xlu1 %v6535_v13, %s5548_s30  ;;  %4245 = vmatprep.subr.bf16.mxu1 %v4244_v0  ;;  %v1287_v0 = vsel %vm159_vm2, %v5110_v45, %v5111_v6 }
 0x298   :  { %5523 = vrot.lane.b32.xlu0 %v6521_v47, %s5548_s30  ;;  %v6847_v1 = vpop.permute.xlu1 %5268  ;;  %v5165_v47 = vunpack.i.l.bf16 %v6733_v59 }
 0x29a   :  { %v5239_v26 = vpop.permute.xlu0 %5238  ;;  %1950 = vperm.xlu1 %5066, %v1932_v41   ;;  %v1286_v41 = vsel %vm159_vm2, %v5076_v23, %v5110_v45  ;;  %v5116_v45 = vunpack.i.h.bf16 %v6694_v15 }
 0x29b   :  { %v5241_v46 = vunpack.i.h.bf16 %v5239_v26  ;;  %v5240_v28 = vunpack.i.l.bf16 %v5239_v26 }
 0x29c   :  { %5533 = vrot.lane.b32.xlu0 %v6528_v38, %s5548_s30  ;;  %v6864_v62 = vpop.permute.xlu1 %5278  ;;  %v5075_v38 = vunpack.i.l.bf16 %v6638_v44  ;;  %v1933_v44 = vld [vmem:[%s8382_s4 + $0x8] sm:$0xff] }
 0x29d   :  { %v1208_v13 = vsel %vm102_vm0, %v5240_v28, %v5225_v9  ;;  %v1210_v43 = vsel %vm102_vm0, %v5241_v46, %v5255_v53  ;;  %v5150_v9 = vunpack.i.l.bf16 %v6717_v22  ;;  %v1285_v53 = vsel %vm159_vm2, %v5130_v4, %v5131_v11  ;;  %v1938_v22 = vld [vmem:[%s8382_s4 + $0x30] sm:$0xff] }
 0x29e   :  { %v4246_v26 = vpack.c.bf16 %v1210_v43, %v1208_v13  ;;  %v6862_v5 = vpop.permute.xlu0 %5243  ;;  %1960 = vperm.xlu1 %5066, %v1934_v61   ;;  %v4248_v16 = vpack.c.bf16 %v1287_v0, %v1285_v53  ;;  %v1284_v6 = vsel %vm159_vm2, %v5075_v38, %v5130_v4  ;;  %v5215_v46 = vunpack.i.l.bf16 %v6794_v17 }
 0x29f   :  { %v1289_v11 = vsel %vm159_vm2, %v5165_v47, %v5166_v57  ;;  %v4250_v23 = vpack.c.bf16 %v1286_v41, %v1284_v6  ;;  %v5200_v13 = vunpack.i.l.bf16 %v6774_v54  ;;  %v5231_v43 = vunpack.i.h.bf16 %v6819_v34  ;;  %v1937_v54 = vld [vmem:[%s8382_s4 + $0x28] sm:$0xff] }
 0x2a0   :  { %5543 = vrot.lane.b32.xlu0 %v6537_v63, %s5548_s30  ;;  %4247 = vmatpush1.bf16.msra.mxu1 %v4246_v26  ;;  %v5095_v63 = vunpack.i.l.bf16 %v6656_v30  ;;  %v5294_v28 = vpop.permute.xlu1 %5293  ;;  %v1291_v59 = vsel %vm159_vm2, %v5150_v9, %v5151_v51  ;;  %v5096_v57 = vunpack.i.h.bf16 %v6656_v30  ;;  %v5136_v38 = vunpack.i.h.bf16 %v6682_v3 }
 0x2a1   :  { %4249 = vmatprep.subr.bf16.mxu1 %v4248_v16  ;;  %v5296_v61 = vunpack.i.h.bf16 %v5294_v28  ;;  %v4252_v26 = vpack.c.bf16 %v1291_v59, %v1289_v11  ;;  %v5295_v41 = vunpack.i.l.bf16 %v5294_v28  ;;  %v1935_v16 = vld [vmem:[%s8382_s4 + $0x18] sm:$0xff]  ;;  %v1293_v30 = vsel %vm159_vm2, %v5215_v46, %v5216_v40 }
 0x2a2   :  { %v6887_v4 = vpop.permute.xlu0 %5248  ;;  %v1288_v0 = vsel %vm159_vm2, %v5095_v63, %v5165_v47  ;;  %1970 = vperm.xlu1 %5066, %v1936_v14   ;;  %v1290_v51 = vsel %vm159_vm2, %v5096_v57, %v5150_v9  ;;  %v5185_v47 = vunpack.i.l.bf16 %v6758_v21  ;;  %v5230_v11 = vunpack.i.l.bf16 %v6819_v34 }
 0x2a3   :  { %v4372_v53 = vpack.c.bf16 %v5296_v61, %v5231_v43  ;;  %v4254_v14 = vpack.c.bf16 %v1290_v51, %v1288_v0  ;;  %v1295_v63 = vsel %vm159_vm2, %v5200_v13, %v5201_v7  ;;  %v4376_v17 = vpack.c.bf16 %v5116_v45, %v5136_v38  ;;  %v1939_v51 = vld [vmem:[%s8382_s4 + $0x38] sm:$0xff] }
 0x2a4   :  { %1955 = vperm.xlu0 %5065, %v1933_v44   ;;  %4251 = vmatpush1.bf16.msra.mxu1 %v4250_v23  ;;  %v6910_v44 = vpop.permute.xlu1 %5298  ;;  %v5171_v40 = vunpack.i.h.bf16 %v6747_v50  ;;  %v5186_v9 = vunpack.i.h.bf16 %v6758_v21  ;;  %v1292_v28 = vsel %vm159_vm2, %v5185_v47, %v5215_v46  ;;  %v4256_v23 = vpack.c.bf16 %v1295_v63, %v1293_v30  ;;  %v1940_v21 = vld [vmem:[%s8382_s4 + $0x40] sm:$0xff] }
 0x2a5   :  { %4253 = vmatprep.subr.bf16.mxu1 %v4252_v26  ;;  %4373 = vmatprep.subr.bf16.mxu0 %v4372_v53  ;;  %v5115_v34 = vunpack.i.l.bf16 %v6694_v15  ;;  %v1299_v7 = vsel %vm159_vm2, %v5295_v41, %v5296_v61  ;;  %v5156_v46 = vunpack.i.h.bf16 %v6735_v36  ;;  %v5246_v57 = vunpack.i.h.bf16 %v6862_v5 }
 0x2a6   :  { %v6908_v6 = vpop.permute.xlu0 %5263  ;;  %1980 = vperm.xlu1 %5066, %v1938_v22   ;;  %4375 = vmatpush3.bf16.msra.mxu0 %v4374_v2  ;;  %v1294_v59 = vsel %vm159_vm2, %v5186_v9, %v5200_v13  ;;  %v5245_v0 = vunpack.i.l.bf16 %v6862_v5  ;;  %v5135_v2 = vunpack.i.l.bf16 %v6682_v3  ;;  %v1297_v53 = vsel %vm159_vm2, %v5230_v11, %v5231_v43  ;;  %v1942_v43 = vld [vmem:[%s8382_s4 + $0x50] sm:$0xff]  ;;  %v1944_v3 = vld [vmem:[%s8382_s4 + $0x60] sm:$0xff] }
 0x2a7   :  { %4377 = vmatprep.subr.bf16.mxu0 %v4376_v17  ;;  %v4258_v26 = vpack.c.bf16 %v1294_v59, %v1292_v28  ;;  %v4380_v61 = vpack.c.bf16 %v5156_v46, %v5171_v40  ;;  %v1298_v13 = vsel %vm159_vm2, %v5246_v57, %v5295_v41  ;;  %v4260_v22 = vpack.c.bf16 %v1299_v7, %v1297_v53 }
 0x2a8   :  { %1965 = vperm.xlu0 %5065, %v1935_v16   ;;  %4255 = vmatpush1.bf16.msra.mxu1 %v4254_v14  ;;  %v6940_v52 = vpop.permute.xlu1 %5308  ;;  %v5221_v16 = vunpack.i.h.bf16 %v6808_v33  ;;  %v5081_v5 = vunpack.i.h.bf16 %v6644_v32  ;;  %v5170_v30 = vunpack.i.l.bf16 %v6747_v50  ;;  %v1375_v41 = vsel %vm216_vm5, %v5115_v34, %v5116_v45 }
 0x2a9   :  { %4257 = vmatprep.subr.bf16.mxu1 %v4256_v23  ;;  %v5080_v47 = vunpack.i.l.bf16 %v6644_v32  ;;  %v5155_v14 = vunpack.i.l.bf16 %v6735_v36  ;;  %v5206_v50 = vunpack.i.h.bf16 %v6792_v24  ;;  %v4382_v15 = vpack.c.bf16 %v5146_v20, %v5161_v35 }
 0x2aa   :  { %v6938_v37 = vpop.permute.xlu0 %5273  ;;  %1990 = vperm.xlu1 %5066, %v1940_v21   ;;  %4379 = vmatpush3.bf16.msra.mxu0 %v6676_v55  ;;  %v1296_v55 = vsel %vm159_vm2, %v5245_v0, %v5230_v11  ;;  %v1374_v9 = vsel %vm216_vm5, %v5081_v5, %v5115_v34  ;;  %v1373_v36 = vsel %vm216_vm5, %v5135_v2, %v5136_v38  ;;  %v5220_v23 = vunpack.i.l.bf16 %v6808_v33 }
 0x2ab   :  { %4381 = vmatprep.subr.bf16.mxu0 %v4380_v61  ;;  %v4262_v32 = vpack.c.bf16 %v1298_v13, %v1296_v55  ;;  %v4384_v45 = vpack.c.bf16 %v5206_v50, %v5221_v16  ;;  %v4264_v11 = vpack.c.bf16 %v1375_v41, %v1373_v36  ;;  %v1372_v28 = vsel %vm216_vm5, %v5080_v47, %v5135_v2 }
 0x2ac   :  { %1975 = vperm.xlu0 %5065, %v1937_v54   ;;  %4259 = vmatpush1.bf16.msra.mxu1 %v4258_v26  ;;  %v6964_v17 = vpop.permute.xlu1 %5318  ;;  %v1377_v20 = vsel %vm216_vm5, %v5170_v30, %v5171_v40  ;;  %v4266_v33 = vpack.c.bf16 %v1374_v9, %v1372_v28  ;;  %v1379_v34 = vsel %vm216_vm5, %v5155_v14, %v5156_v46  ;;  %v5205_v21 = vunpack.i.l.bf16 %v6792_v24 }
 0x2ad   :  { %4261 = vmatprep.subr.bf16.mxu1 %v4260_v22  ;;  %v4386_v54 = vpack.c.bf16 %v5196_v10, %v5211_v8  ;;  %v5236_v7 = vunpack.i.h.bf16 %v6835_v56  ;;  %v5101_v59 = vunpack.i.h.bf16 %v6662_v12  ;;  %v1376_v57 = vsel %vm216_vm5, %v5100_v49, %v5170_v30  ;;  %v1946_v10 = vld [vmem:[%s8382_s4 + $0x70] sm:$0xff] }
 0x2ae   :  { %v6962_v63 = vpop.permute.xlu0 %5283  ;;  %2000 = vperm.xlu1 %5066, %v1942_v43   ;;  %4383 = vmatpush3.bf16.msra.mxu0 %v4382_v15  ;;  %v4268_v0 = vpack.c.bf16 %v1379_v34, %v1377_v20  ;;  %v1381_v39 = vsel %vm216_vm5, %v5220_v23, %v5221_v16  ;;  %v5190_v8 = vunpack.i.l.bf16 %v6766_v42  ;;  %v8399_v61 = vunpack.i.h.bf16 %v6806_v19  ;;  %v1852_v19 = vld [vmem:[%s8381_s3] sm:$0xff]  ;;  %v1858_v15 = vld [vmem:[%s8381_s3 + $0x30] sm:$0xff]  ;;  %v1947_v20 = vld [vmem:[%s8382_s4 + $0x78] sm:$0xff] }
 0x2af   :  { %4385 = vmatprep.subr.bf16.mxu0 %v4384_v45  ;;  %v1378_v12 = vsel %vm216_vm5, %v5101_v59, %v5155_v14  ;;  %v8400_v13 = vunpack.i.h.bf16 %v6821_v18  ;;  %v5235_v5 = vunpack.i.l.bf16 %v6835_v56  ;;  %v1383_v16 = vsel %vm216_vm5, %v5205_v21, %v5206_v50  ;;  %v1945_v18 = vld [vmem:[%s8382_s4 + $0x68] sm:$0xff] }
 0x2b0   :  { %1985 = vperm.xlu0 %5065, %v1939_v51   ;;  %4263 = vmatpush1.bf16.msra.mxu1 %v4262_v32  ;;  %v5329_v38 = vpop.permute.xlu1 %5328  ;;  %v4270_v53 = vpack.c.bf16 %v1378_v12, %v1376_v57  ;;  %v5191_v30 = vunpack.i.h.bf16 %v6766_v42  ;;  %v1380_v51 = vsel %vm216_vm5, %v5190_v8, %v5220_v23  ;;  %v4272_v43 = vpack.c.bf16 %v1383_v16, %v1381_v39  ;;  %v1862_v12 = vld [vmem:[%s8381_s3 + $0x50] sm:$0xff] }
 0x2b1   :  { %4265 = vmatprep.subr.bf16.mxu1 %v4264_v11  ;;  %v5331_v40 = vunpack.i.h.bf16 %v5329_v38  ;;  %v5330_v26 = vunpack.i.l.bf16 %v5329_v38  ;;  %v4390_v22 = vpack.c.bf16 %v8400_v13, %v8399_v61  ;;  %v5121_v41 = vunpack.i.h.bf16 %v6705_v31 }
 0x2b2   :  { %v6984_v35 = vpop.permute.xlu0 %5288  ;;  %2010 = vperm.xlu1 %5066, %v1944_v3   ;;  %4387 = vmatpush3.bf16.msra.mxu0 %v4386_v54  ;;  %v5120_v47 = vunpack.i.l.bf16 %v6705_v31  ;;  %v1382_v56 = vsel %vm216_vm5, %v5191_v30, %v5205_v21  ;;  %v5251_v14 = vunpack.i.h.bf16 %v6887_v4  ;;  %v5250_v50 = vunpack.i.l.bf16 %v6887_v4  ;;  %v1857_v3 = vld [vmem:[%s8381_s3 + $0x28] sm:$0xff] }
 0x2b3   :  { %v4388_v2 = vpack.c.bf16 %v5331_v40, %v5236_v7  ;;  %v1387_v42 = vsel %vm216_vm5, %v5330_v26, %v5331_v40  ;;  %v5141_v32 = vunpack.i.h.bf16 %v6696_v58  ;;  %v5140_v36 = vunpack.i.l.bf16 %v6696_v58 }
 0x2b4   :  { %1995 = vperm.xlu0 %5065, %v1941_v60   ;;  %4267 = vmatpush1.bf16.msra.mxu1 %v4266_v33  ;;  %v7006_v46 = vpop.permute.xlu1 %5333  ;;  %v4274_v45 = vpack.c.bf16 %v1382_v56, %v1380_v51  ;;  %v1385_v11 = vsel %vm216_vm5, %v5235_v5, %v5236_v7  ;;  %v1386_v28 = vsel %vm216_vm5, %v5251_v14, %v5330_v26  ;;  %v5261_v23 = vunpack.i.h.bf16 %v6837_v27  ;;  %v1863_v7 = vld [vmem:[%s8381_s3 + $0x58] sm:$0xff] }
 0x2b5   :  { %4269 = vmatprep.subr.bf16.mxu1 %v4268_v0  ;;  %4389 = vmatprep.subr.bf16.mxu0 %v4388_v2  ;;  %v4276_v4 = vpack.c.bf16 %v1387_v42, %v1385_v11  ;;  %v5260_v60 = vunpack.i.l.bf16 %v6837_v27  ;;  %v1463_v49 = vsel %vm273_vm4, %v5120_v47, %v5121_v41  ;;  %v5086_v38 = vunpack.i.h.bf16 %v6654_v48  ;;  %v1867_v56 = vld [vmem:[%s8381_s3 + $0x78] sm:$0xff] }
 0x2b6   :  { %v7004_v24 = vpop.permute.xlu0 %5303  ;;  %2020 = vperm.xlu1 %5066, %v1946_v10   ;;  %4391 = vmatpush3.bf16.msra.mxu0 %v4390_v22  ;;  %v5085_v33 = vunpack.i.l.bf16 %v6654_v48  ;;  %v1384_v34 = vsel %vm216_vm5, %v5250_v50, %v5235_v5  ;;  %v5176_v40 = vunpack.i.h.bf16 %v6756_v25  ;;  %v5175_v59 = vunpack.i.l.bf16 %v6756_v25 }
 0x2b7   :  { %v4278_v57 = vpack.c.bf16 %v1386_v28, %v1384_v34  ;;  %v1461_v48 = vsel %vm273_vm4, %v5140_v36, %v5141_v32  ;;  %v1462_v0 = vsel %vm273_vm4, %v5086_v38, %v5120_v47  ;;  %v5266_v2 = vunpack.i.h.bf16 %v6908_v6  ;;  %v1868_v47 = vld [vmem:[%s8381_s3 + $0x80] sm:$0xff] }
 0x2b8   :  { %2005 = vperm.xlu0 %5065, %v1943_v29   ;;  %4271 = vmatpush1.bf16.msra.mxu1 %v4270_v53  ;;  %v7030_v9 = vpop.permute.xlu1 %5343  ;;  %v5265_v26 = vunpack.i.l.bf16 %v6908_v6  ;;  %v4280_v29 = vpack.c.bf16 %v1463_v49, %v1461_v48  ;;  %v5276_v10 = vunpack.i.h.bf16 %v6938_v37  ;;  %v5275_v39 = vunpack.i.l.bf16 %v6938_v37 }
 0x2b9   :  { %4273 = vmatprep.subr.bf16.mxu1 %v4272_v43  ;;  %2625 = vmatmul.mubr.f32.vlgmr.msra.gmra.mrb[16].mxu0 %v1852_v19  ;;  %v1467_v8 = vsel %vm273_vm4, %v5260_v60, %v5261_v23  ;;  %v1460_v53 = vsel %vm273_vm4, %v5085_v33, %v5140_v36  ;;  %v5271_v13 = vunpack.i.h.bf16 %v6847_v1  ;;  %v5270_v22 = vunpack.i.l.bf16 %v6847_v1  ;;  %v7119_v33 = vld [vmem:[%s8381_s3 + $0xa0] sm:$0xff] }
 0x2ba   :  { %v7028_v55 = vpop.permute.xlu0 %5313  ;;  %2629 = vmatprep.mubr.f32.mxu0 %v1858_v15  ;;  %v4282_v5 = vpack.c.bf16 %v1462_v0, %v1460_v53  ;;  %v1465_v16 = vsel %vm273_vm4, %v5175_v59, %v5176_v40  ;;  %v1464_v30 = vsel %vm273_vm4, %v5265_v26, %v5175_v59  ;;  %v1466_v51 = vsel %vm273_vm4, %v5266_v2, %v5260_v60 }
 0x2bb   :  { %v4284_v43 = vpack.c.bf16 %v1467_v8, %v1465_v16  ;;  %v1471_v14 = vsel %vm273_vm4, %v5275_v39, %v5276_v10  ;;  %v5280_v50 = vunpack.i.l.bf16 %v6864_v62  ;;  %v4286_v11 = vpack.c.bf16 %v1466_v51, %v1464_v30  ;;  %v7149_v16 = vld [vmem:[%s8381_s3 + $0xc8] sm:$0xff] }
 0x2bc   :  { %2015 = vperm.xlu0 %5065, %v1945_v18   ;;  %4275 = vmatpush1.bf16.msra.mxu1 %v4274_v45  ;;  %v7055_v21 = vpop.permute.xlu1 %5358  ;;  %v5286_v28 = vunpack.i.h.bf16 %v6962_v63  ;;  %v1469_v60 = vsel %vm273_vm4, %v5270_v22, %v5271_v13  ;;  %v5305_v38 = vunpack.i.l.bf16 %v7004_v24  ;;  %v5300_v2 = vunpack.i.l.bf16 %v6910_v44 }
 0x2bd   :  { %4277 = vmatprep.subr.bf16.mxu1 %v4276_v4  ;;  %2630 = vmatmul.mubr.f32.gmra.mrb[18].mxu0 %v1857_v3  ;;  %v5285_v4 = vunpack.i.l.bf16 %v6962_v63  ;;  %v4288_v49 = vpack.c.bf16 %v1471_v14, %v1469_v60  ;;  %v1468_v59 = vsel %vm273_vm4, %v5280_v50, %v5270_v22  ;;  %v5311_v53 = vunpack.i.h.bf16 %v6940_v52  ;;  %v7346_v63 = vld [vmem:[%s8381_s3 + $0x1b8] sm:$0xff] }
 0x2be   :  { %v7053_v54 = vpop.permute.xlu0 %5323  ;;  %2634 = vmatprep.mubr.f32.mxu0 %v1863_v7  ;;  %v5316_v22 = vunpack.i.h.bf16 %v7028_v55  ;;  %v5310_v30 = vunpack.i.l.bf16 %v6940_v52  ;;  %v5321_v51 = vunpack.i.h.bf16 %v6964_v17  ;;  %v5335_v58 = vunpack.i.l.bf16 %v7006_v46 }
 0x2bf   :  { %v1550_v60 = vsel %vm330_vm6, %v5311_v53, %v5305_v38 }
 0x2c0   :  { %2025 = vperm.xlu0 %5065, %v1947_v20   ;;  %4279 = vmatpush1.bf16.msra.mxu1 %v4278_v57  ;;  %v7079_v61 = vpop.permute.xlu1 %5368  ;;  %v5290_v57 = vunpack.i.l.bf16 %v6984_v35 }
 0x2c1   :  { %4281 = vmatprep.subr.bf16.mxu1 %v4280_v29  ;;  %2635 = vmatmul.mubr.f32.gmra.mrb[20].mxu0 %v1862_v12  ;;  %v5371_v18 = vunpack.i.h.bf16 %v7079_v61  ;;  %v5370_v42 = vunpack.i.l.bf16 %v7079_v61  ;;  %v1473_v29 = vsel %vm273_vm4, %v5285_v4, %v5286_v28 }
 0x2c2   :  { %v7077_v6 = vpop.permute.xlu0 %5338  ;;  %2639 = vmatprep.mubr.f32.mxu0 %v1868_v47 }
 0x2c3   :  { %2142 = vmatmul.mubr.f32.vlgmr.msra.gmra.mrb[40].mxu1 %v1852_v19  ;;  %v5281_v19 = vunpack.i.h.bf16 %v6864_v62  ;;  %v1873_v62 = vld [vmem:[%s8381_s3 + $0xa8] sm:$0xff]  ;;  %v1475_v34 = vsel %vm273_vm4, %v5370_v42, %v5371_v18 }
 0x2c4   :  { %4283 = vmatpush1.bf16.msra.mxu1 %v4282_v5  ;;  %v7103_v45 = vpop.permute.xlu1 %5373  ;;  %2147 = vmatprep.mubr.f32.mxu1 %v1858_v15  ;;  %v5306_v15 = vunpack.i.h.bf16 %v7004_v24  ;;  %v4292_v8 = vpack.c.bf16 %v1475_v34, %v1473_v29  ;;  %v5315_v5 = vunpack.i.l.bf16 %v7028_v55  ;;  %v5336_v29 = vunpack.i.h.bf16 %v7006_v46 }
 0x2c5   :  { %4285 = vmatprep.subr.bf16.mxu1 %v4284_v43  ;;  %v1470_v20 = vsel %vm273_vm4, %v5281_v19, %v5275_v39  ;;  %2640 = vmatmul.mubr.f32.gmra.mrb[22].mxu0 %v1867_v56  ;;  %v7139_v39 = vld [vmem:[%s8381_s3 + $0xd0] sm:$0xff]  ;;  %v5320_v43 = vunpack.i.l.bf16 %v6964_v17  ;;  %v5361_v19 = vunpack.i.h.bf16 %v7055_v21 }
 0x2c6   :  { %v7101_v36 = vpop.permute.xlu0 %5348  ;;  %2644 = vmatprep.mubr.f32.mxu0 %v1873_v62  ;;  %v4290_v26 = vpack.c.bf16 %v1470_v20, %v1468_v59  ;;  %v5326_v20 = vunpack.i.h.bf16 %v7053_v54  ;;  %v5341_v59 = vunpack.i.h.bf16 %v7077_v6  ;;  %v1557_v25 = vsel %vm330_vm6, %v5335_v58, %v5336_v29 }
 0x2c7   :  { %2148 = vmatmul.mubr.f32.gmra.mrb[42].mxu1 %v1857_v3  ;;  %v5291_v3 = vunpack.i.h.bf16 %v6984_v35 }
 0x2c8   :  { %4287 = vmatpush1.bf16.msra.mxu1 %v4286_v11  ;;  %2153 = vmatprep.mubr.f32.mxu1 %v1863_v7  ;;  %v7129_v0 = vpop.permute.xlu1 %5383  ;;  %v5301_v7 = vunpack.i.h.bf16 %v6910_v44 }
 0x2c9   :  { %4289 = vmatprep.subr.bf16.mxu1 %v4288_v49  ;;  %v1474_v35 = vsel %vm273_vm4, %v5291_v3, %v5370_v42  ;;  %2645 = vmatmul.mubr.f32.gmra.mrb[24].mxu0 %v7119_v33  ;;  %v1472_v42 = vsel %vm273_vm4, %v5290_v57, %v5285_v4  ;;  %v7171_v4 = vld [vmem:[%s8381_s3 + $0xf8] sm:$0xff]  ;;  %v5325_v49 = vunpack.i.l.bf16 %v7053_v54  ;;  %v5340_v3 = vunpack.i.l.bf16 %v7077_v6 }
 0x2ca   :  { %v7127_v48 = vpop.permute.xlu0 %5353  ;;  %2649 = vmatprep.mubr.f32.mxu0 %v7139_v39  ;;  %v4294_v50 = vpack.c.bf16 %v1474_v35, %v1472_v42  ;;  %v1549_v52 = vsel %vm330_vm6, %v5300_v2, %v5301_v7  ;;  %v1553_v54 = vsel %vm330_vm6, %v5315_v5, %v5316_v22  ;;  %v5386_v31 = vunpack.i.h.bf16 %v7129_v0 }
 0x2cb   :  { %2154 = vmatmul.mubr.f32.gmra.mrb[44].mxu1 %v1862_v12  ;;  %v1551_v12 = vsel %vm330_vm6, %v5305_v38, %v5306_v15  ;;  %v7186_v38 = vld [vmem:[%s8381_s3 + $0xf0] sm:$0xff] }
 0x2cc   :  { %4291 = vmatpush1.bf16.msra.mxu1 %v4290_v26  ;;  %2159 = vmatprep.mubr.f32.mxu1 %v1868_v47  ;;  %v7160_v47 = vpop.permute.xlu1 %5393  ;;  %v4296_v34 = vpack.c.bf16 %v1551_v12, %v1549_v52  ;;  %v1548_v26 = vsel %vm330_vm6, %v5310_v30, %v5300_v2  ;;  %v1554_v2 = vsel %vm330_vm6, %v5326_v20, %v5320_v43  ;;  %v1888_v30 = vld [vmem:[%s8381_s3 + $0x120] sm:$0xff]  ;;  %v5345_v20 = vunpack.i.l.bf16 %v7030_v9 }
 0x2cd   :  { %4293 = vmatprep.subr.bf16.mxu1 %v4292_v8  ;;  %2650 = vmatmul.mubr.f32.gmra.mrb[26].mxu0 %v7149_v16  ;;  %v1555_v8 = vsel %vm330_vm6, %v5320_v43, %v5321_v51  ;;  %v4298_v53 = vpack.c.bf16 %v1550_v60, %v1548_v26  ;;  %v1559_v43 = vsel %vm330_vm6, %v5340_v3, %v5341_v59  ;;  %v5346_v60 = vunpack.i.h.bf16 %v7030_v9 }
 0x2ce   :  { %v7158_v14 = vpop.permute.xlu0 %5363  ;;  %2654 = vmatprep.mubr.f32.mxu0 %v7171_v4  ;;  %v4300_v12 = vpack.c.bf16 %v1555_v8, %v1553_v54  ;;  %v4398_v52 = vpack.c.bf16 %v5261_v23, %v5176_v40  ;;  %v5351_v54 = vunpack.i.h.bf16 %v7101_v36  ;;  %v4304_v9 = vpack.c.bf16 %v1559_v43, %v1557_v25  ;;  %v1893_v23 = vld [vmem:[%s8381_s3 + $0x148] sm:$0xff] }
 0x2cf   :  { %v5366_v11 = vunpack.i.h.bf16 %v7158_v14  ;;  %2160 = vmatmul.mubr.f32.gmra.mrb[46].mxu1 %v1867_v56  ;;  %v4394_v56 = vpack.c.bf16 %v5121_v41, %v5141_v32  ;;  %v1552_v32 = vsel %vm330_vm6, %v5325_v49, %v5315_v5  ;;  %v1558_v27 = vsel %vm330_vm6, %v5346_v60, %v5340_v3 }
 0x2d0   :  { %4295 = vmatpush1.bf16.msra.mxu1 %v4294_v50  ;;  %2165 = vmatprep.mubr.f32.mxu1 %v1873_v62  ;;  %v7199_v35 = vpop.permute.xlu1 %5403  ;;  %v5365_v40 = vunpack.i.l.bf16 %v7158_v14  ;;  %v1556_v3 = vsel %vm330_vm6, %v5345_v20, %v5335_v58  ;;  %v5360_v26 = vunpack.i.l.bf16 %v7055_v21  ;;  %v5356_v8 = vunpack.i.h.bf16 %v7127_v48 }
 0x2d1   :  { %v4392_v57 = vpack.c.bf16 %v5366_v11, %v5361_v19  ;;  %4297 = vmatprep.subr.bf16.mxu1 %v4296_v34  ;;  %2655 = vmatmul.mubr.f32.gmra.mrb[28].mxu0 %v7186_v38  ;;  %v5406_v50 = vunpack.i.h.bf16 %v7199_v35  ;;  %v5405_v5 = vunpack.i.l.bf16 %v7199_v35  ;;  %v5375_v20 = vunpack.i.l.bf16 %v7103_v45 }
 0x2d2   :  { %v7197_v62 = vpop.permute.xlu0 %5378  ;;  %2659 = vmatprep.mubr.f32.mxu0 %v1888_v30  ;;  %v1637_v14 = vsel %vm387_vm7, %v5360_v26, %v5361_v19 }
 0x2d3   :  { %v5381_v41 = vunpack.i.h.bf16 %v7197_v62  ;;  %4393 = vmatprep.subr.bf16.mxu0 %v4392_v57  ;;  %2166 = vmatmul.mubr.f32.gmra.mrb[48].mxu1 %v7119_v33  ;;  %v7224_v33 = vld [vmem:[%s8381_s3 + $0x118] sm:$0xff]  ;;  %v4302_v57 = vpack.c.bf16 %v1554_v2, %v1552_v32  ;;  %v1562_v60 = vsel %vm330_vm6, %v5356_v8, %v5405_v5  ;;  %v1636_v21 = vsel %vm387_vm7, %v5375_v20, %v5360_v26 }
 0x2d4   :  { %4299 = vmatpush1.bf16.msra.mxu1 %v4298_v53  ;;  %4395 = vmatpush3.bf16.msra.mxu0 %v4394_v56  ;;  %v7237_v34 = vpop.permute.xlu1 %5408  ;;  %v5350_v56 = vunpack.i.l.bf16 %v7101_v36  ;;  %v5355_v53 = vunpack.i.l.bf16 %v7127_v48  ;;  %v1898_v48 = vld [vmem:[%s8381_s3 + $0x170] sm:$0xff] }
 0x2d5   :  { %v4396_v42 = vpack.c.bf16 %v5386_v31, %v5381_v41  ;;  %4301 = vmatprep.subr.bf16.mxu1 %v4300_v12  ;;  %2171 = vmatprep.mubr.f32.mxu1 %v7139_v39  ;;  %v7255_v39 = vld [vmem:[%s8381_s3 + $0x140] sm:$0xff]  ;;  %v4306_v12 = vpack.c.bf16 %v1558_v27, %v1556_v3  ;;  %v5395_v3 = vunpack.i.l.bf16 %v7160_v47  ;;  %v1854_v36 = vld [vmem:[%s8381_s3 + $0x10] sm:$0xff] }
 0x2d6   :  { %v7235_v49 = vpop.permute.xlu0 %5388  ;;  %2660 = vmatmul.mubr.f32.gmra.mrb[30].mxu0 %v7224_v33  ;;  %v1561_v58 = vsel %vm330_vm6, %v5350_v56, %v5351_v54  ;;  %v1560_v27 = vsel %vm330_vm6, %v5355_v53, %v5350_v56  ;;  %v1903_v56 = vld [vmem:[%s8381_s3 + $0x198] sm:$0xff] }
 0x2d7   :  { %4397 = vmatprep.subr.bf16.mxu0 %v4396_v42  ;;  %2172 = vmatmul.mubr.f32.gmra.mrb[50].mxu1 %v7149_v16  ;;  %v1563_v16 = vsel %vm330_vm6, %v5405_v5, %v5406_v50  ;;  %v5396_v42 = vunpack.i.h.bf16 %v7160_v47  ;;  %v1897_v5 = vld [vmem:[%s8381_s3 + $0x168] sm:$0xff]  ;;  %v4310_v1 = vpack.c.bf16 %v1562_v60, %v1560_v27  ;;  %v5391_v37 = vunpack.i.h.bf16 %v7235_v49 }
 0x2d8   :  { %4303 = vmatpush1.bf16.msra.mxu1 %v4302_v57  ;;  %4399 = vmatpush3.bf16.msra.mxu0 %v4398_v52  ;;  %v7266_v2 = vpop.permute.xlu1 %5423  ;;  %v5376_v52 = vunpack.i.h.bf16 %v7103_v45  ;;  %v5380_v57 = vunpack.i.l.bf16 %v7197_v62  ;;  %v4402_v45 = vpack.c.bf16 %v5276_v10, %v5271_v13  ;;  %v5390_v10 = vunpack.i.l.bf16 %v7235_v49  ;;  %v1913_v27 = vld [vmem:[%s8381_s3 + $0x1e8] sm:$0xff] }
 0x2d9   :  { %4305 = vmatprep.subr.bf16.mxu1 %v4304_v9  ;;  %2177 = vmatprep.mubr.f32.mxu1 %v7171_v4  ;;  %v4308_v4 = vpack.c.bf16 %v1563_v16, %v1561_v58  ;;  %v5385_v9 = vunpack.i.l.bf16 %v7129_v0  ;;  %v4406_v0 = vpack.c.bf16 %v5371_v18, %v5286_v28  ;;  %v5410_v60 = vunpack.i.l.bf16 %v7237_v34 }
 0x2da   :  { %v7264_v32 = vpop.permute.xlu0 %5398  ;;  %2664 = vmatprep.mubr.f32.mxu0 %v1893_v23  ;;  %v5426_v28 = vunpack.i.h.bf16 %v7266_v2 }
 0x2db   :  { %v5401_v43 = vunpack.i.h.bf16 %v7264_v32  ;;  %2178 = vmatmul.mubr.f32.gmra.mrb[52].mxu1 %v7186_v38  ;;  %2665 = vmatmul.mubr.f32.gmra.mrb[32].mxu0 %v7255_v39  ;;  %v1639_v38 = vsel %vm387_vm7, %v5365_v40, %v5366_v11  ;;  %v1638_v11 = vsel %vm387_vm7, %v5376_v52, %v5365_v40  ;;  %v5400_v19 = vunpack.i.l.bf16 %v7264_v32  ;;  %v7318_v40 = vld [vmem:[%s8381_s3 + $0x190] sm:$0xff] }
 0x2dc   :  { %4307 = vmatpush1.bf16.msra.mxu1 %v4306_v12  ;;  %2183 = vmatprep.mubr.f32.mxu1 %v1888_v30  ;;  %v7301_v30 = vpop.permute.xlu1 %5433  ;;  %v4312_v13 = vpack.c.bf16 %v1639_v38, %v1637_v14  ;;  %v4314_v49 = vpack.c.bf16 %v1638_v11, %v1636_v21  ;;  %v1643_v26 = vsel %vm387_vm7, %v5385_v9, %v5386_v31  ;;  %v5411_v31 = vunpack.i.h.bf16 %v7237_v34 }
 0x2dd   :  { %v4400_v25 = vpack.c.bf16 %v5401_v43, %v5396_v42  ;;  %4309 = vmatprep.subr.bf16.mxu1 %v4308_v4  ;;  %2669 = vmatprep.mubr.f32.mxu0 %v1898_v48  ;;  %v1640_v12 = vsel %vm387_vm7, %v5390_v10, %v5380_v57  ;;  %v1642_v58 = vsel %vm387_vm7, %v5391_v37, %v5385_v9  ;;  %v5436_v24 = vunpack.i.h.bf16 %v7301_v30 }
 0x2de   :  { %v7299_v16 = vpop.permute.xlu0 %5413  ;;  %v1647_v61 = vsel %vm387_vm7, %v5400_v19, %v5401_v43  ;;  %v4318_v18 = vpack.c.bf16 %v1642_v58, %v1640_v12  ;;  %v1644_v9 = vsel %vm387_vm7, %v5410_v60, %v5395_v3  ;;  %v4410_v14 = vpack.c.bf16 %v5306_v15, %v5301_v7  ;;  %v1918_v7 = vld [vmem:[%s8381_s3 + $0x210] sm:$0xff] }
 0x2df   :  { %4401 = vmatprep.subr.bf16.mxu0 %v4400_v25  ;;  %2184 = vmatmul.mubr.f32.gmra.mrb[54].mxu1 %v7224_v33  ;;  %v1641_v33 = vsel %vm387_vm7, %v5380_v57, %v5381_v41  ;;  %v5416_v52 = vunpack.i.h.bf16 %v7299_v16  ;;  %v7333_v41 = vld [vmem:[%s8381_s3 + $0x1c0] sm:$0xff]  ;;  %v1646_v25 = vsel %vm387_vm7, %v5411_v31, %v5400_v19  ;;  %v1922_v31 = vld [vmem:[%s8381_s3 + $0x230] sm:$0xff] }
 0x2e0   :  { %2670 = vmatmul.mubr.f32.gmra.mrb[34].mxu0 %v1897_v5  ;;  %4311 = vmatpush1.bf16.msra.mxu1 %v4310_v1  ;;  %v5444_v53 = vpop.permute.xlu1 %5443  ;;  %v4322_v11 = vpack.c.bf16 %v1646_v25, %v1644_v9  ;;  %v5425_v1 = vunpack.i.l.bf16 %v7266_v2  ;;  %v5435_v2 = vunpack.i.l.bf16 %v7301_v30 }
 0x2e1   :  { %4403 = vmatpush3.bf16.msra.mxu0 %v4402_v45  ;;  %4313 = vmatprep.subr.bf16.mxu1 %v4312_v13  ;;  %v5446_v62 = vunpack.i.h.bf16 %v5444_v53  ;;  %v5445_v20 = vunpack.i.l.bf16 %v5444_v53 }
 0x2e2   :  { %v5419_v8 = vpop.permute.xlu0 %5418  ;;  %2189 = vmatprep.mubr.f32.mxu1 %v1893_v23  ;;  %2674 = vmatprep.mubr.f32.mxu0 %v1903_v56  ;;  %v4316_v23 = vpack.c.bf16 %v1643_v26, %v1641_v33  ;;  %v1725_v12 = vsel %vm444_vm8, %v5425_v1, %v5426_v28 }
 0x2e3   :  { %2190 = vmatmul.mubr.f32.gmra.mrb[56].mxu1 %v7255_v39  ;;  %v4404_v4 = vpack.c.bf16 %v5446_v62, %v5416_v52  ;;  %v5415_v39 = vunpack.i.l.bf16 %v7299_v16  ;;  %v5421_v32 = vunpack.i.h.bf16 %v5419_v8  ;;  %v5420_v38 = vunpack.i.l.bf16 %v5419_v8 }
 0x2e4   :  { %2675 = vmatmul.mubr.f32.gmra.mrb[36].mxu0 %v7318_v40  ;;  %4315 = vmatpush1.bf16.msra.mxu1 %v4314_v49  ;;  %v7353_v57 = vpop.permute.xlu1 %5448  ;;  %v4414_v8 = vpack.c.bf16 %v5321_v51, %v5316_v22 }
 0x2e5   :  { %2195 = vmatprep.mubr.f32.mxu1 %v1898_v48  ;;  %4317 = vmatprep.subr.bf16.mxu1 %v4316_v23  ;;  %v1645_v48 = vsel %vm387_vm7, %v5395_v3, %v5396_v42  ;;  %v7368_v42 = vld [vmem:[%s8381_s3 + $0x1e0] sm:$0xff]  ;;  %v1649_v13 = vsel %vm387_vm7, %v5415_v39, %v5416_v52  ;;  %v1648_v21 = vsel %vm387_vm7, %v5420_v38, %v5415_v39  ;;  %v5451_v33 = vunpack.i.h.bf16 %v7353_v57  ;;  %v7392_v3 = vld [vmem:[%s8381_s3 + $0x208] sm:$0xff] }
 0x2e6   :  { %v5429_v34 = vpop.permute.xlu0 %5428  ;;  %2679 = vmatprep.mubr.f32.mxu0 %v7333_v41  ;;  %4405 = vmatprep.subr.bf16.mxu0 %v4404_v4  ;;  %v4320_v45 = vpack.c.bf16 %v1647_v61, %v1645_v48  ;;  %v1650_v19 = vsel %vm387_vm7, %v5421_v32, %v5445_v20  ;;  %v5450_v52 = vunpack.i.l.bf16 %v7353_v57 }
 0x2e7   :  { %v5431_v43 = vunpack.i.h.bf16 %v5429_v34  ;;  %2196 = vmatmul.mubr.f32.gmra.mrb[58].mxu1 %v1897_v5  ;;  %v5430_v16 = vunpack.i.l.bf16 %v5429_v34  ;;  %4407 = vmatpush3.bf16.msra.mxu0 %v4406_v0  ;;  %v1651_v5 = vsel %vm387_vm7, %v5445_v20, %v5446_v62  ;;  %v4326_v53 = vpack.c.bf16 %v1650_v19, %v1648_v21 }
 0x2e8   :  { %2680 = vmatmul.mubr.f32.gmra.mrb[38].mxu0 %v7346_v63  ;;  %4319 = vmatpush1.bf16.msra.mxu1 %v4318_v18  ;;  %v7376_v10 = vpop.permute.xlu1 %5458  ;;  %v4324_v15 = vpack.c.bf16 %v1651_v5, %v1649_v13  ;;  %v1724_v0 = vsel %vm444_vm8, %v5435_v2, %v5425_v1  ;;  %v1731_v18 = vsel %vm444_vm8, %v5450_v52, %v5451_v33 }
 0x2e9   :  { %v4408_v47 = vpack.c.bf16 %v5431_v43, %v5426_v28  ;;  %4321 = vmatprep.subr.bf16.mxu1 %v4320_v45  ;;  %2201 = vmatprep.mubr.f32.mxu1 %v1903_v56  ;;  %v1726_v58 = vsel %vm444_vm8, %v5436_v24, %v5430_v16  ;;  %v5461_v62 = vunpack.i.h.bf16 %v7376_v10  ;;  %v5460_v55 = vunpack.i.l.bf16 %v7376_v10  ;;  %v1928_v28 = vld [vmem:[%s8381_s3 + $0x260] sm:$0xff]  ;;  %v1855_v10 = vld [vmem:[%s8381_s3 + $0x18] sm:$0xff] }
 0x2ea   :  { %v5439_v37 = vpop.permute.xlu0 %5438  ;;  %2684 = vmatprep.mubr.f32.mxu0 %v1913_v27  ;;  %v4330_v60 = vpack.c.bf16 %v1726_v58, %v1724_v0  ;;  %v4418_v5 = vpack.c.bf16 %v5341_v59, %v5336_v29 }
 0x2eb   :  { %v5441_v44 = vunpack.i.h.bf16 %v5439_v37  ;;  %4409 = vmatprep.subr.bf16.mxu0 %v4408_v47  ;;  %2202 = vmatmul.mubr.f32.gmra.mrb[60].mxu1 %v7318_v40  ;;  %v5440_v56 = vunpack.i.l.bf16 %v5439_v37  ;;  %v1727_v40 = vsel %vm444_vm8, %v5430_v16, %v5431_v43  ;;  %v1733_v39 = vsel %vm444_vm8, %v5460_v55, %v5461_v62  ;;  %v1927_v43 = vld [vmem:[%s8381_s3 + $0x258] sm:$0xff] }
 0x2ec   :  { %2685 = vmatmul.mubr.f32.gmra.mrb[40].mxu0 %v7368_v42  ;;  %4323 = vmatpush1.bf16.msra.mxu1 %v4322_v11  ;;  %v7399_v30 = vpop.permute.xlu1 %5468  ;;  %v4328_v51 = vpack.c.bf16 %v1727_v40, %v1725_v12 }
 0x2ed   :  { %v4412_v49 = vpack.c.bf16 %v5451_v33, %v5441_v44  ;;  %4411 = vmatpush3.bf16.msra.mxu0 %v4410_v14  ;;  %4325 = vmatprep.subr.bf16.mxu1 %v4324_v15  ;;  %v1729_v23 = vsel %vm444_vm8, %v5440_v56, %v5441_v44  ;;  %v5470_v9 = vunpack.i.l.bf16 %v7399_v30  ;;  %v4422_v33 = vpack.c.bf16 %v5406_v50, %v5351_v54 }
 0x2ee   :  { %v5454_v26 = vpop.permute.xlu0 %5453  ;;  %2207 = vmatprep.mubr.f32.mxu1 %v7333_v41  ;;  %2689 = vmatprep.mubr.f32.mxu0 %v1918_v7  ;;  %v1923_v41 = vld [vmem:[%s8381_s3 + $0x238] sm:$0xff]  ;;  %v4332_v48 = vpack.c.bf16 %v1731_v18, %v1729_v23 }
 0x2ef   :  { %4413 = vmatprep.subr.bf16.mxu0 %v4412_v49  ;;  %v5456_v17 = vunpack.i.h.bf16 %v5454_v26  ;;  %v5455_v22 = vunpack.i.l.bf16 %v5454_v26  ;;  %2208 = vmatmul.mubr.f32.gmra.mrb[62].mxu1 %v7346_v63  ;;  %v1732_v59 = vsel %vm444_vm8, %v5470_v9, %v5460_v55  ;;  %v1860_v26 = vld [vmem:[%s8381_s3 + $0x40] sm:$0xff]  ;;  %v1859_v55 = vld [vmem:[%s8381_s3 + $0x38] sm:$0xff] }
 0x2f0   :  { %2690 = vmatmul.mubr.f32.gmra.mrb[42].mxu0 %v7392_v3  ;;  %4327 = vmatpush1.bf16.msra.mxu1 %v4326_v53  ;;  %v5479_v20 = vpop.permute.xlu1 %5478 }
 0x2f1   :  { %4415 = vmatpush3.bf16.msra.mxu0 %v4414_v8  ;;  %4329 = vmatprep.subr.bf16.mxu1 %v4328_v51  ;;  %v1728_v34 = vsel %vm444_vm8, %v5455_v22, %v5440_v56  ;;  %v1730_v57 = vsel %vm444_vm8, %v5456_v17, %v5450_v52  ;;  %v5481_v32 = vunpack.i.h.bf16 %v5479_v20  ;;  %v5480_v38 = vunpack.i.l.bf16 %v5479_v20 }
 0x2f2   :  { %v5464_v4 = vpop.permute.xlu0 %5463  ;;  %2213 = vmatprep.mubr.f32.mxu1 %v1913_v27  ;;  %2694 = vmatprep.mubr.f32.mxu0 %v1923_v41  ;;  %v5471_v27 = vunpack.i.h.bf16 %v7399_v30  ;;  %v4334_v14 = vpack.c.bf16 %v1730_v57, %v1728_v34  ;;  %v1870_v57 = vld [vmem:[%s8381_s3 + $0x90] sm:$0xff] }
 0x2f3   :  { %v5466_v63 = vunpack.i.h.bf16 %v5464_v4  ;;  %v5465_v61 = vunpack.i.l.bf16 %v5464_v4  ;;  %2214 = vmatmul.mubr.f32.gmra.mrb[64].mxu1 %v7368_v42  ;;  %v1739_v6 = vsel %vm444_vm8, %v5480_v38, %v5481_v32  ;;  %v1864_v4 = vld [vmem:[%s8381_s3 + $0x60] sm:$0xff] }
 0x2f4   :  { %2695 = vmatmul.mubr.f32.gmra.mrb[44].mxu0 %v1922_v31  ;;  %4331 = vmatpush1.bf16.msra.mxu1 %v4330_v60  ;;  %v7431_v47 = vpop.permute.xlu1 %5488  ;;  %v1865_v60 = vld [vmem:[%s8381_s3 + $0x68] sm:$0xff] }
 0x2f5   :  { %v4416_v25 = vpack.c.bf16 %v5466_v63, %v5461_v62  ;;  %2219 = vmatprep.mubr.f32.mxu1 %v1918_v7  ;;  %v1735_v45 = vsel %vm444_vm8, %v5465_v61, %v5466_v63  ;;  %4333 = vmatprep.subr.bf16.mxu1 %v4332_v48  ;;  %v1734_v37 = vsel %vm444_vm8, %v5471_v27, %v5465_v61  ;;  %v5491_v7 = vunpack.i.h.bf16 %v7431_v47 }
 0x2f6   :  { %v5474_v16 = vpop.permute.xlu0 %5473  ;;  %2699 = vmatprep.mubr.f32.mxu0 %v1928_v28  ;;  %v4336_v42 = vpack.c.bf16 %v1735_v45, %v1733_v39  ;;  %v4338_v44 = vpack.c.bf16 %v1734_v37, %v1732_v59  ;;  %v5490_v2 = vunpack.i.l.bf16 %v7431_v47  ;;  %v1869_v45 = vld [vmem:[%s8381_s3 + $0x88] sm:$0xff]  ;;  %v1894_v47 = vld [vmem:[%s8381_s3 + $0x150] sm:$0xff] }
 0x2f7   :  { %v5476_v11 = vunpack.i.h.bf16 %v5474_v16  ;;  %v5475_v1 = vunpack.i.l.bf16 %v5474_v16  ;;  %4417 = vmatprep.subr.bf16.mxu0 %v4416_v25  ;;  %2220 = vmatmul.mubr.f32.gmra.mrb[66].mxu1 %v7392_v3 }
 0x2f8   :  { %2700 = vmatmul.mubr.f32.gmra.mrb[46].mxu0 %v1927_v43  ;;  %4335 = vmatpush1.bf16.msra.mxu1 %v4334_v14  ;;  %v5499_v21 = vpop.permute.xlu1 %5498  ;;  %v1813_v12 = vsel %vm501_vm1, %v5490_v2, %v5491_v7 }
 0x2f9   :  { %v4420_v13 = vpack.c.bf16 %v5481_v32, %v5476_v11  ;;  %4419 = vmatpush3.bf16.msra.mxu0 %v4418_v5  ;;  %v1737_v46 = vsel %vm444_vm8, %v5475_v1, %v5476_v11  ;;  %4337 = vmatprep.subr.bf16.mxu1 %v4336_v42  ;;  %v5500_v56 = vunpack.i.l.bf16 %v5499_v21  ;;  %v5501_v40 = vunpack.i.h.bf16 %v5499_v21  ;;  %v1875_v11 = vld [vmem:[%s8381_s3 + $0xb8] sm:$0xff] }
 0x2fa   :  { %v5484_v29 = vpop.permute.xlu0 %5483  ;;  %2225 = vmatprep.mubr.f32.mxu1 %v1923_v41  ;;  %v4340_v19 = vpack.c.bf16 %v1739_v6, %v1737_v46  ;;  %2769 = vmatprep.mubr.f32.mxu0 %v1855_v10  ;;  %v1874_v6 = vld [vmem:[%s8381_s3 + $0xb0] sm:$0xff] }
 0x2fb   :  { %v5486_v24 = vunpack.i.h.bf16 %v5484_v29  ;;  %v5485_v15 = vunpack.i.l.bf16 %v5484_v29  ;;  %4421 = vmatprep.subr.bf16.mxu0 %v4420_v13  ;;  %2226 = vmatmul.mubr.f32.gmra.mrb[68].mxu1 %v1922_v31  ;;  %v1812_v30 = vsel %vm501_vm1, %v5500_v56, %v5490_v2 }
 0x2fc   :  { %4339 = vmatpush1.bf16.msra.mxu1 %v4338_v44  ;;  %v7458_v54 = vpop.permute.xlu1 %5508  ;;  %2231 = vmatprep.mubr.f32.mxu1 %v1928_v28 }
 0x2fd   :  { %v1736_v49 = vsel %vm444_vm8, %v5485_v15, %v5475_v1  ;;  %v1738_v3 = vsel %vm444_vm8, %v5486_v24, %v5480_v38  ;;  %4423 = vmatpush3.bf16.msra.mxu0 %v4422_v33  ;;  %4341 = vmatprep.subr.bf16.mxu1 %v4340_v19  ;;  %v5511_v52 = vunpack.i.h.bf16 %v7458_v54  ;;  %v5510_v62 = vunpack.i.l.bf16 %v7458_v54  ;;  %v1880_v24 = vld [vmem:[%s8381_s3 + $0xe0] sm:$0xff]  ;;  %v1879_v15 = vld [vmem:[%s8381_s3 + $0xd8] sm:$0xff]  ;;  %v7642_v54 = vld [vmem:[%s8381_s3 + $0x70] sm:$0xff] }
 0x2fe   :  { %v4342_v35 = vpack.c.bf16 %v1738_v3, %v1736_v49  ;;  %v7456_v50 = vpop.permute.xlu0 %5493 }
 0x2ff   :  { %v5496_v8 = vunpack.i.h.bf16 %v7456_v50  ;;  %v5495_v53 = vunpack.i.l.bf16 %v7456_v50  ;;  %2232 = vmatmul.mubr.f32.gmra.mrb[70].mxu1 %v1927_v43  ;;  %v1819_v63 = vsel %vm501_vm1, %v5510_v62, %v5511_v52  ;;  %v1899_v50 = vld [vmem:[%s8381_s3 + $0x178] sm:$0xff] }
 0x300   :  { %2770 = vmatmul.mubr.f32.vlgmr.msra.gmra.mrb[48].mxu0 %v1854_v36  ;;  %4343 = vmatpush1.bf16.msra.mxu1 %v4342_v35  ;;  %v7480_v41 = vpop.permute.xlu1 %5518 }
 0x301   :  { %v1814_v58 = vsel %vm501_vm1, %v5501_v40, %v5495_v53  ;;  %2302 = vmatprep.mubr.f32.mxu1 %v1855_v10  ;;  %v1815_v17 = vsel %vm501_vm1, %v5495_v53, %v5496_v8  ;;  %2774 = vmatprep.mubr.f32.mxu0 %v1860_v26  ;;  %v5521_v48 = vunpack.i.h.bf16 %v7480_v41  ;;  %v5520_v25 = vunpack.i.l.bf16 %v7480_v41  ;;  %v1885_v40 = vld [vmem:[%s8381_s3 + $0x108] sm:$0xff]  ;;  %v7654_v41 = vld [vmem:[%s8381_s3 + $0x98] sm:$0xff] }
 0x302   :  { %v4346_v22 = vpack.c.bf16 %v1814_v58, %v1812_v30  ;;  %v7478_v51 = vpop.permute.xlu0 %5503  ;;  %v4344_v0 = vpack.c.bf16 %v1815_v17, %v1813_v12  ;;  %v1884_v30 = vld [vmem:[%s8381_s3 + $0x100] sm:$0xff]  ;;  %v1890_v58 = vld [vmem:[%s8381_s3 + $0x130] sm:$0xff]  ;;  %v1895_v17 = vld [vmem:[%s8381_s3 + $0x158] sm:$0xff] }
 0x303   :  { %v5506_v31 = vunpack.i.h.bf16 %v7478_v51  ;;  %v5505_v23 = vunpack.i.l.bf16 %v7478_v51  ;;  %2303 = vmatmul.mubr.f32.vlgmr.msra.gmra.mrb[40].mxu1 %v1854_v36  ;;  %v1821_v37 = vsel %vm501_vm1, %v5520_v25, %v5521_v48 }
 0x304   :  { %2775 = vmatmul.mubr.f32.gmra.mrb[50].mxu0 %v1859_v55  ;;  %4345 = vmatprep.subr.bf16.mxu1 %v4344_v0  ;;  %v5529_v18 = vpop.permute.xlu1 %5528  ;;  %v1910_v0 = vld [vmem:[%s8381_s3 + $0x1d0] sm:$0xff] }
 0x305   :  { %2308 = vmatprep.mubr.f32.mxu1 %v1860_v26  ;;  %v1817_v20 = vsel %vm501_vm1, %v5505_v23, %v5506_v31  ;;  %4347 = vmatpush1.bf16.msra.mxu1 %v4346_v22  ;;  %v5530_v32 = vunpack.i.l.bf16 %v5529_v18  ;;  %v5531_v42 = vunpack.i.h.bf16 %v5529_v18  ;;  %v1904_v22 = vld [vmem:[%s8381_s3 + $0x1a0] sm:$0xff] }
 0x306   :  { %v5514_v61 = vpop.permute.xlu0 %5513  ;;  %2779 = vmatprep.mubr.f32.mxu0 %v1865_v60  ;;  %v4348_v28 = vpack.c.bf16 %v1819_v63, %v1817_v20  ;;  %v1920_v20 = vld [vmem:[%s8381_s3 + $0x220] sm:$0xff]  ;;  %v1919_v63 = vld [vmem:[%s8381_s3 + $0x218] sm:$0xff] }
 0x307   :  { %v5516_v39 = vunpack.i.h.bf16 %v5514_v61  ;;  %v5515_v34 = vunpack.i.l.bf16 %v5514_v61  ;;  %2309 = vmatmul.mubr.f32.gmra.mrb[42].mxu1 %v1859_v55  ;;  %v1820_v1 = vsel %vm501_vm1, %v5530_v32, %v5520_v25  ;;  %v1889_v55 = vld [vmem:[%s8381_s3 + $0x128] sm:$0xff]  ;;  %v1924_v18 = vld [vmem:[%s8381_s3 + $0x240] sm:$0xff]  ;;  %v4428_v25 = vpack.c.bf16 %v5511_v52, %v5506_v31 }
 0x308   :  { %2780 = vmatmul.mubr.f32.gmra.mrb[52].mxu0 %v1864_v4  ;;  %4349 = vmatprep.subr.bf16.mxu1 %v4348_v28  ;;  %v7508_v16 = vpop.permute.xlu1 %5538  ;;  %v1925_v61 = vld [vmem:[%s8381_s3 + $0x248] sm:$0xff]  ;;  %v1930_v28 = vld [vmem:[%s8381_s3 + $0x270] sm:$0xff]  ;;  %v7662_v31 = vld [vmem:[%s8381_s3 + $0xc0] sm:$0xff] }
 0x309   :  { %v1816_v38 = vsel %vm501_vm1, %v5515_v34, %v5505_v23  ;;  %v1818_v43 = vsel %vm501_vm1, %v5516_v39, %v5510_v62  ;;  %2314 = vmatprep.mubr.f32.mxu1 %v1865_v60  ;;  %2784 = vmatprep.mubr.f32.mxu0 %v1870_v57  ;;  %v5541_v13 = vunpack.i.h.bf16 %v7508_v16  ;;  %v5540_v46 = vunpack.i.l.bf16 %v7508_v16  ;;  %v1909_v23 = vld [vmem:[%s8381_s3 + $0x1c8] sm:$0xff]  ;;  %v1915_v60 = vld [vmem:[%s8381_s3 + $0x1f8] sm:$0xff]  ;;  %v3043_v16 = vld [vmem:[%s8383_s6] sm:$0xff] }
 0x30a   :  { %v4350_v27 = vpack.c.bf16 %v1818_v43, %v1816_v38  ;;  %v7506_v9 = vpop.permute.xlu0 %5523  ;;  %v7559_v62 = vpack.c.bf16 %v5496_v8, %v5491_v7  ;;  %v1900_v7 = vld [vmem:[%s8381_s3 + $0x180] sm:$0xff]  ;;  %v1905_v8 = vld [vmem:[%s8381_s3 + $0x1a8] sm:$0xff]  ;;  %v8401_v34 = vmov 0.0   ;;  %v7678_v38 = vld [vmem:[%s8381_s3 + $0x110] sm:$0xff] }
 0x30b   :  { %v5526_v5 = vunpack.i.h.bf16 %v7506_v9  ;;  %v5525_v14 = vunpack.i.l.bf16 %v7506_v9  ;;  %2315 = vmatmul.mubr.f32.gmra.mrb[44].mxu1 %v1864_v4  ;;  %v1827_v56 = vsel %vm501_vm1, %v5540_v46, %v5541_v13  ;;  %v1914_v4 = vld [vmem:[%s8381_s3 + $0x1f0] sm:$0xff]  ;;  %v1929_v39 = vld [vmem:[%s8381_s3 + $0x268] sm:$0xff]  ;;  %v7686_v43 = vld [vmem:[%s8381_s3 + $0x138] sm:$0xff] }
 0x30c   :  { %2785 = vmatmul.mubr.f32.gmra.mrb[54].mxu0 %v1869_v45  ;;  %4351 = vmatpush1.bf16.msra.mxu1 %v4350_v27  ;;  %v7630_v32 = vld [vmem:[%s8381_s3 + $0x48] sm:$0xff]  ;;  %v3046_v27 = vld [vmem:[%s8383_s6 + $0x18] sm:$0xff] }
 0x30d   :  { %v1822_v10 = vsel %vm501_vm1, %v5531_v42, %v5525_v14  ;;  %2320 = vmatprep.mubr.f32.mxu1 %v1870_v57  ;;  %v1823_v59 = vsel %vm501_vm1, %v5525_v14, %v5526_v5  ;;  %2789 = vmatprep.mubr.f32.mxu0 %v1875_v11  ;;  %v7617_v57 = vld [vmem:[%s8381_s3 + $0x20] sm:$0xff]  ;;  %v4432_v51 = vpack.c.bf16 %v5526_v5, %v5521_v48  ;;  %v7670_v48 = vld [vmem:[%s8381_s3 + $0xe8] sm:$0xff]  ;;  %v3045_v42 = vld [vmem:[%s8383_s6 + $0x10] sm:$0xff] }
 0x30e   :  { %v4354_v29 = vpack.c.bf16 %v1822_v10, %v1820_v1  ;;  %v7528_v21 = vpop.permute.xlu0 %5533  ;;  %v4352_v19 = vpack.c.bf16 %v1823_v59, %v1821_v37  ;;  %v4442_v5 = vpack.c.bf16 %v3045_v42, %v3043_v16  ;;  %v7706_v14 = vld [vmem:[%s8381_s3 + $0x160] sm:$0xff]  ;;  %v3050_v1 = vld [vmem:[%s8383_s6 + $0x38] sm:$0xff]  ;;  %v3052_v59 = vld [vmem:[%s8383_s6 + $0x48] sm:$0xff] }
 0x30f   :  { %v5536_v33 = vunpack.i.h.bf16 %v7528_v21  ;;  %v5535_v44 = vunpack.i.l.bf16 %v7528_v21  ;;  %2321 = vmatmul.mubr.f32.gmra.mrb[46].mxu1 %v1869_v45  ;;  %v3044_v45 = vld [vmem:[%s8383_s6 + $0x8] sm:$0xff]  ;;  %v3047_v10 = vld [vmem:[%s8383_s6 + $0x20] sm:$0xff] }
 0x310   :  { %2790 = vmatmul.mubr.f32.gmra.mrb[56].mxu0 %v1874_v6  ;;  %4353 = vmatprep.subr.bf16.mxu1 %v4352_v19  ;;  %v4440_v9 = vpack.c.bf16 %v3046_v27, %v3044_v45  ;;  %v3051_v19 = vld [vmem:[%s8383_s6 + $0x40] sm:$0xff]  ;;  %v7846_v45 = vld [vmem:[%s8381_s3 + $0x278] sm:$0xff]  ;;  %v3076_v27 = vld [vmem:[%s8383_s6 + $0x108] sm:$0xff] }
 0x311   :  { %2326 = vmatprep.mubr.f32.mxu1 %v1875_v11  ;;  %v1825_v2 = vsel %vm501_vm1, %v5535_v44, %v5536_v33  ;;  %4355 = vmatpush1.bf16.msra.mxu1 %v4354_v29  ;;  %v4436_v52 = vpack.c.bf16 %v5541_v13, %v5536_v33  ;;  %v3048_v11 = vld [vmem:[%s8383_s6 + $0x28] sm:$0xff]  ;;  %v3049_v13 = vld [vmem:[%s8383_s6 + $0x30] sm:$0xff]  ;;  %v3054_v29 = vld [vmem:[%s8383_s6 + $0x58] sm:$0xff] }
 0x312   :  { %v5544_v49 = vpop.permute.xlu0 %5543  ;;  %2794 = vmatprep.mubr.f32.mxu0 %v1880_v24  ;;  %v4356_v3 = vpack.c.bf16 %v1827_v56, %v1825_v2  ;;  %4441 = vmatprep.subr.bf16.mxu0 %v4440_v9  ;;  %v4444_v37 = vpack.c.bf16 %v3050_v1, %v3048_v11  ;;  %v4448_v21 = vpack.c.bf16 %v3054_v29, %v3052_v59  ;;  %v3053_v33 = vld [vmem:[%s8383_s6 + $0x50] sm:$0xff]  ;;  %v3058_v2 = vld [vmem:[%s8383_s6 + $0x78] sm:$0xff]  ;;  %v3075_v42 = vld [vmem:[%s8383_s6 + $0x100] sm:$0xff] }
 0x313   :  { %v5546_v36 = vunpack.i.h.bf16 %v5544_v49  ;;  %v5545_v35 = vunpack.i.l.bf16 %v5544_v49  ;;  %2327 = vmatmul.mubr.f32.gmra.mrb[48].mxu1 %v1874_v6  ;;  %4443 = vmatpush1.bf16.msra.mxu0 %v4442_v5  ;;  %v7726_v6 = vld [vmem:[%s8381_s3 + $0x188] sm:$0xff]  ;;  %v3055_v49 = vld [vmem:[%s8383_s6 + $0x60] sm:$0xff]  ;;  %v3078_v9 = vld [vmem:[%s8383_s6 + $0x118] sm:$0xff] }
 0x314   :  { %2795 = vmatmul.mubr.f32.gmra.mrb[58].mxu0 %v1879_v15  ;;  %4357 = vmatprep.subr.bf16.mxu1 %v4356_v3  ;;  %v3057_v3 = vld [vmem:[%s8383_s6 + $0x70] sm:$0xff]  ;;  %v4472_v16 = vpack.c.bf16 %v3078_v9, %v3076_v27  ;;  %v3080_v1 = vld [vmem:[%s8383_s6 + $0x128] sm:$0xff]  ;;  %v3086_v29 = vld [vmem:[%s8383_s6 + $0x158] sm:$0xff] }
 0x315   :  { %v1824_v53 = vsel %vm501_vm1, %v5545_v35, %v5535_v44  ;;  %v1826_v26 = vsel %vm501_vm1, %v5546_v36, %v5540_v46  ;;  %2332 = vmatprep.mubr.f32.mxu1 %v1880_v24  ;;  %2799 = vmatprep.mubr.f32.mxu0 %v1885_v40  ;;  %v4446_v46 = vpack.c.bf16 %v3049_v13, %v3047_v10  ;;  %v7746_v24 = vld [vmem:[%s8381_s3 + $0x1b0] sm:$0xff]  ;;  %v7766_v35 = vld [vmem:[%s8381_s3 + $0x1d8] sm:$0xff]  ;;  %v3079_v13 = vld [vmem:[%s8383_s6 + $0x120] sm:$0xff] }
 0x316   :  { %v4358_v12 = vpack.c.bf16 %v1826_v26, %v1824_v53  ;;  %4445 = vmatprep.subr.bf16.mxu0 %v4444_v37  ;;  %v4450_v44 = vpack.c.bf16 %v3053_v33, %v3051_v19  ;;  %v4454_v36 = vpack.c.bf16 %v3057_v3, %v3055_v49  ;;  %v3062_v53 = vld [vmem:[%s8383_s6 + $0x98] sm:$0xff]  ;;  %v3077_v5 = vld [vmem:[%s8383_s6 + $0x110] sm:$0xff]  ;;  %v3084_v59 = vld [vmem:[%s8383_s6 + $0x148] sm:$0xff] }
 0x317   :  { %2333 = vmatmul.mubr.f32.gmra.mrb[50].mxu1 %v1879_v15  ;;  %4447 = vmatpush1.bf16.msra.mxu0 %v4446_v46  ;;  %v3056_v15 = vld [vmem:[%s8383_s6 + $0x68] sm:$0xff]  ;;  %v4474_v11 = vpack.c.bf16 %v3077_v5, %v3075_v42  ;;  %v3082_v37 = vld [vmem:[%s8383_s6 + $0x138] sm:$0xff]  ;;  %v3081_v46 = vld [vmem:[%s8383_s6 + $0x130] sm:$0xff] }
 0x318   :  { %2800 = vmatmul.mubr.f32.gmra.mrb[60].mxu0 %v1884_v30  ;;  %4359 = vmatpush1.bf16.msra.mxu1 %v4358_v12  ;;  %v4452_v56 = vpack.c.bf16 %v3058_v2, %v3056_v15  ;;  %v3061_v12 = vld [vmem:[%s8383_s6 + $0x90] sm:$0xff]  ;;  %v4476_v10 = vpack.c.bf16 %v3082_v37, %v3080_v1  ;;  %v3083_v19 = vld [vmem:[%s8383_s6 + $0x140] sm:$0xff]  ;;  %v3088_v33 = vld [vmem:[%s8383_s6 + $0x168] sm:$0xff] }
 0x319   :  { %2338 = vmatprep.mubr.f32.mxu1 %v1885_v40  ;;  %4425 = vmatprep.subr.bf16.mxu1 %v7559_v62  ;;  %v3060_v40 = vld [vmem:[%s8383_s6 + $0x88] sm:$0xff]  ;;  %v3087_v2 = vld [vmem:[%s8383_s6 + $0x160] sm:$0xff]  ;;  %v3094_v49 = vld [vmem:[%s8383_s6 + $0x198] sm:$0xff] }
 0x31a   :  { %2804 = vmatprep.mubr.f32.mxu0 %v1890_v58  ;;  %4449 = vmatprep.subr.bf16.mxu0 %v4448_v21  ;;  %v4456_v26 = vpack.c.bf16 %v3062_v53, %v3060_v40  ;;  %v4480_v21 = vpack.c.bf16 %v3086_v29, %v3084_v59  ;;  %v3093_v40 = vld [vmem:[%s8383_s6 + $0x190] sm:$0xff]  ;;  %v3110_v1 = vld [vmem:[%s8383_s6 + $0x218] sm:$0xff] }
 0x31b   :  { %2339 = vmatmul.mubr.f32.gmra.mrb[52].mxu1 %v1884_v30  ;;  %4451 = vmatpush1.bf16.msra.mxu0 %v4450_v44  ;;  %v3059_v30 = vld [vmem:[%s8383_s6 + $0x80] sm:$0xff]  ;;  %v3090_v44 = vld [vmem:[%s8383_s6 + $0x178] sm:$0xff] }
 0x31c   :  { %2805 = vmatmul.mubr.f32.gmra.mrb[62].mxu0 %v1889_v55  ;;  %2344 = vmatprep.mubr.f32.mxu1 %v1890_v58  ;;  %v4458_v58 = vpack.c.bf16 %v3061_v12, %v3059_v30  ;;  %v4484_v15 = vpack.c.bf16 %v3090_v44, %v3088_v33  ;;  %v3096_v30 = vld [vmem:[%s8383_s6 + $0x1a8] sm:$0xff]  ;;  %v3098_v12 = vld [vmem:[%s8383_s6 + $0x1b8] sm:$0xff] }
 0x31d   :  { %2809 = vmatprep.mubr.f32.mxu0 %v1895_v17  ;;  %4453 = vmatprep.subr.bf16.mxu0 %v4452_v56  ;;  %v3092_v56 = vld [vmem:[%s8383_s6 + $0x188] sm:$0xff] }
 0x31e   :  { %v4488_v3 = vpack.c.bf16 %v3094_v49, %v3092_v56 }
 0x31f   :  { %2345 = vmatmul.mubr.f32.gmra.mrb[54].mxu1 %v1889_v55  ;;  %4455 = vmatpush1.bf16.msra.mxu0 %v4454_v36  ;;  %v3064_v55 = vld [vmem:[%s8383_s6 + $0xa8] sm:$0xff] }
 0x320   :  { %2810 = vmatmul.mubr.f32.gmra.mrb[64].mxu0 %v1894_v47  ;;  %2350 = vmatprep.mubr.f32.mxu1 %v1895_v17  ;;  %v3066_v17 = vld [vmem:[%s8383_s6 + $0xb8] sm:$0xff] }
 0x321   :  { %2814 = vmatprep.mubr.f32.mxu0 %v1900_v7  ;;  %4457 = vmatprep.subr.bf16.mxu0 %v4456_v26 }
 0x323   :  { %2351 = vmatmul.mubr.f32.gmra.mrb[56].mxu1 %v1894_v47  ;;  %4459 = vmatpush1.bf16.msra.mxu0 %v4458_v58  ;;  %v4460_v47 = vpack.c.bf16 %v3066_v17, %v3064_v55  ;;  %v3095_v58 = vld [vmem:[%s8383_s6 + $0x1a0] sm:$0xff]  ;;  %v3097_v55 = vld [vmem:[%s8383_s6 + $0x1b0] sm:$0xff]  ;;  %v3102_v17 = vld [vmem:[%s8383_s6 + $0x1d8] sm:$0xff] }
 0x324   :  { %2815 = vmatmul.mubr.f32.gmra.mrb[66].mxu0 %v1899_v50  ;;  %2356 = vmatprep.mubr.f32.mxu1 %v1900_v7  ;;  %v3063_v7 = vld [vmem:[%s8383_s6 + $0xa0] sm:$0xff] }
 0x325   :  { %2819 = vmatprep.mubr.f32.mxu0 %v1905_v8  ;;  %4461 = vmatprep.subr.bf16.mxu0 %v4460_v47 }
 0x327   :  { %2357 = vmatmul.mubr.f32.gmra.mrb[58].mxu1 %v1899_v50  ;;  %v3065_v50 = vld [vmem:[%s8383_s6 + $0xb0] sm:$0xff] }
 0x328   :  { %2820 = vmatmul.mubr.f32.gmra.mrb[68].mxu0 %v1904_v22  ;;  %2362 = vmatprep.mubr.f32.mxu1 %v1905_v8  ;;  %v4462_v8 = vpack.c.bf16 %v3065_v50, %v3063_v7  ;;  %v4494_v7 = vpack.c.bf16 %v3097_v55, %v3095_v58 }
 0x329   :  { %2824 = vmatprep.mubr.f32.mxu0 %v1910_v0 }
 0x32a   :  { %4463 = vmatpush1.bf16.msra.mxu0 %v4462_v8 }
 0x32b   :  { %2363 = vmatmul.mubr.f32.gmra.mrb[60].mxu1 %v1904_v22  ;;  %v7806_v22 = vld [vmem:[%s8381_s3 + $0x228] sm:$0xff] }
 0x32c   :  { %2825 = vmatmul.mubr.f32.gmra.mrb[70].mxu0 %v1909_v23  ;;  %2368 = vmatprep.mubr.f32.mxu1 %v1910_v0  ;;  %v3068_v0 = vld [vmem:[%s8383_s6 + $0xc8] sm:$0xff] }
 0x32d   :  { %2829 = vmatprep.mubr.f32.mxu0 %v1915_v60 }
 0x32f   :  { %2369 = vmatmul.mubr.f32.gmra.mrb[62].mxu1 %v1909_v23  ;;  %v3070_v23 = vld [vmem:[%s8383_s6 + $0xd8] sm:$0xff] }
 0x330   :  { %2830 = vmatmul.mubr.f32.gmra.mrb[72].mxu0 %v1914_v4  ;;  %2374 = vmatprep.mubr.f32.mxu1 %v1915_v60  ;;  %v4464_v60 = vpack.c.bf16 %v3070_v23, %v3068_v0 }
 0x331   :  { %2834 = vmatprep.mubr.f32.mxu0 %v1920_v20 }
 0x332   :  { %4465 = vmatprep.subr.bf16.mxu0 %v4464_v60 }
 0x333   :  { %2375 = vmatmul.mubr.f32.gmra.mrb[64].mxu1 %v1914_v4  ;;  %v3067_v4 = vld [vmem:[%s8383_s6 + $0xc0] sm:$0xff] }
 0x334   :  { %2835 = vmatmul.mubr.f32.gmra.mrb[74].mxu0 %v1919_v63  ;;  %2380 = vmatprep.mubr.f32.mxu1 %v1920_v20  ;;  %v3069_v20 = vld [vmem:[%s8383_s6 + $0xd0] sm:$0xff] }
 0x335   :  { %2839 = vmatprep.mubr.f32.mxu0 %v1925_v61 }
 0x337   :  { %2381 = vmatmul.mubr.f32.gmra.mrb[66].mxu1 %v1919_v63  ;;  %v4466_v63 = vpack.c.bf16 %v3069_v20, %v3067_v4 }
 0x338   :  { %2840 = vmatmul.mubr.f32.gmra.mrb[76].mxu0 %v1924_v18  ;;  %2386 = vmatprep.mubr.f32.mxu1 %v1925_v61  ;;  %v7826_v61 = vld [vmem:[%s8381_s3 + $0x250] sm:$0xff] }
 0x339   :  { %2844 = vmatprep.mubr.f32.mxu0 %v1930_v28  ;;  %4467 = vmatpush1.bf16.msra.mxu0 %v4466_v63 }
 0x33b   :  { %2387 = vmatmul.mubr.f32.gmra.mrb[68].mxu1 %v1924_v18  ;;  %v3072_v18 = vld [vmem:[%s8383_s6 + $0xe8] sm:$0xff] }
 0x33c   :  { %2845 = vmatmul.mubr.f32.gmra.mrb[78].mxu0 %v1929_v39  ;;  %2392 = vmatprep.mubr.f32.mxu1 %v1930_v28  ;;  %v3074_v28 = vld [vmem:[%s8383_s6 + $0xf8] sm:$0xff] }
 0x33f   :  { %2393 = vmatmul.mubr.f32.gmra.mrb[70].mxu1 %v1929_v39  ;;  %v4468_v39 = vpack.c.bf16 %v3074_v28, %v3072_v18  ;;  %v3104_v18 = vld [vmem:[%s8383_s6 + $0x1e8] sm:$0xff] }
 0x340   :  { %2463 = vmatprep.mubr.f32.mxu1 %v8401_v34 }
 0x341   :  { %4469 = vmatprep.subr.bf16.mxu0 %v4468_v39 }
 0x343   :  { %3742 = vmatmul.mubr.msk.f32.vlgmr.msra.gmra.mrb[40].mxu1 %vm2028_vm9, %v7617_v57 }
 0x344   :  { %4427 = vmatpush3.bf16.msra.mxu1 %v7559_v62  ;;  %2469 = vmatprep.mubr.f32.mxu1 %v8401_v34  ;;  %v7786_v62 = vld [vmem:[%s8381_s3 + $0x200] sm:$0xff] }
 0x345   :  { %4429 = vmatprep.subr.bf16.mxu1 %v4428_v25 }
 0x347   :  { %3743 = vmatmul.mubr.msk.f32.gmra.mrb[42].mxu1 %vm2028_vm9, %v7630_v32 }
 0x348   :  { %4431 = vmatpush3.bf16.msra.mxu1 %v4428_v25  ;;  %2475 = vmatprep.mubr.f32.mxu1 %v8401_v34  ;;  %v3071_v25 = vld [vmem:[%s8383_s6 + $0xe0] sm:$0xff] }
 0x349   :  { %4433 = vmatprep.subr.bf16.mxu1 %v4432_v51 }
 0x34b   :  { %3744 = vmatmul.mubr.msk.f32.gmra.mrb[44].mxu1 %vm2028_vm9, %v7642_v54 }
 0x34c   :  { %4435 = vmatpush3.bf16.msra.mxu1 %v4432_v51  ;;  %2481 = vmatprep.mubr.f32.mxu1 %v8401_v34  ;;  %v3073_v51 = vld [vmem:[%s8383_s6 + $0xf0] sm:$0xff] }
 0x34d   :  { %4437 = vmatprep.subr.bf16.mxu1 %v4436_v52 }
 0x34f   :  { %3745 = vmatmul.mubr.msk.f32.gmra.mrb[46].mxu1 %vm2028_vm9, %v7654_v41 }
 0x350   :  { %4439 = vmatpush3.bf16.msra.mxu1 %v4436_v52  ;;  %2487 = vmatprep.mubr.f32.mxu1 %v8401_v34  ;;  %v4470_v52 = vpack.c.bf16 %v3073_v51, %v3071_v25  ;;  %v3103_v25 = vld [vmem:[%s8383_s6 + $0x1e0] sm:$0xff]  ;;  %v3105_v51 = vld [vmem:[%s8383_s6 + $0x1f0] sm:$0xff] }
 0x351   :  { %v4502_v27 = vpack.c.bf16 %v3105_v51, %v3103_v25 }
 0x352   :  { %4471 = vmatpush1.bf16.msra.mxu0 %v4470_v52 }
 0x353   :  { %3746 = vmatmul.mubr.msk.f32.gmra.mrb[48].mxu1 %vm2028_vm9, %v7662_v31  ;;  %4473 = vmatprep.subr.bf16.mxu0 %v4472_v16 }
 0x354   :  { %2493 = vmatprep.mubr.f32.mxu1 %v8401_v34 }
 0x356   :  { %4475 = vmatpush1.bf16.msra.mxu0 %v4474_v11  ;;  %v3108_v11 = vld [vmem:[%s8383_s6 + $0x208] sm:$0xff] }
 0x357   :  { %3747 = vmatmul.mubr.msk.f32.gmra.mrb[50].mxu1 %vm2028_vm9, %v7670_v48  ;;  %4477 = vmatprep.subr.bf16.mxu0 %v4476_v10  ;;  %v4504_v10 = vpack.c.bf16 %v3110_v1, %v3108_v11 }
 0x358   :  { %2499 = vmatprep.mubr.f32.mxu1 %v8401_v34 }
 0x35b   :  { %3748 = vmatmul.mubr.msk.f32.gmra.mrb[52].mxu1 %vm2028_vm9, %v7678_v38 }
 0x35c   :  { %2505 = vmatprep.mubr.f32.mxu1 %v8401_v34 }
 0x35f   :  { %3749 = vmatmul.mubr.msk.f32.gmra.mrb[54].mxu1 %vm2028_vm9, %v7686_v43 }
 0x360   :  { %2511 = vmatprep.mubr.f32.mxu1 %v8401_v34 }
 0x363   :  { %3750 = vmatmul.mubr.msk.f32.gmra.mrb[56].mxu1 %vm2028_vm9, %v7706_v14 }
 0x364   :  { %2517 = vmatprep.mubr.f32.mxu1 %v8401_v34 }
 0x367   :  { %3751 = vmatmul.mubr.msk.f32.gmra.mrb[58].mxu1 %vm2028_vm9, %v7726_v6 }
 0x368   :  { %2523 = vmatprep.mubr.f32.mxu1 %v8401_v34 }
 0x36b   :  { %3752 = vmatmul.mubr.msk.f32.gmra.mrb[60].mxu1 %vm2028_vm9, %v7746_v24 }
 0x36c   :  { %2529 = vmatprep.mubr.f32.mxu1 %v8401_v34 }
 0x36f   :  { %3753 = vmatmul.mubr.msk.f32.gmra.mrb[62].mxu1 %vm2028_vm9, %v7766_v35 }
 0x370   :  { %2535 = vmatprep.mubr.f32.mxu1 %v8401_v34 }
 0x373   :  { %3754 = vmatmul.mubr.msk.f32.gmra.mrb[64].mxu1 %vm2028_vm9, %v7786_v62 }
 0x374   :  { %2541 = vmatprep.mubr.f32.mxu1 %v8401_v34 }
 0x377   :  { %3755 = vmatmul.mubr.msk.f32.gmra.mrb[66].mxu1 %vm2028_vm9, %v7806_v22 }
 0x378   :  { %2547 = vmatprep.mubr.f32.mxu1 %v8401_v34 }
 0x37b   :  { %3756 = vmatmul.mubr.msk.f32.gmra.mrb[68].mxu1 %vm2028_vm9, %v7826_v61 }
 0x37c   :  { %2553 = vmatprep.mubr.f32.mxu1 %v8401_v34 }
 0x37f   :  { %3757 = vmatmul.mubr.msk.f32.gmra.mrb[70].mxu1 %vm2028_vm9, %v7846_v45 }
 0x380   :  { %4080 = vmatprep.mubr.msk.f32.mxu1 %vm2028_vm9, %v7617_v57  ;;  %v4478_v57 = vpack.c.bf16 %v3081_v46, %v3079_v13 }
 0x382   :  { %4479 = vmatpush1.bf16.msra.mxu0 %v4478_v57 }
 0x383   :  { %4081 = vmatmul.mubr.msk.f32.vlgmr.msra.gmra.mrb[72].mxu1 %vm2028_vm9, %v7630_v32  ;;  %v3085_v32 = vld [vmem:[%s8383_s6 + $0x150] sm:$0xff]  ;;  %4481 = vmatprep.subr.bf16.mxu0 %v4480_v21 }
 0x384   :  { %4083 = vmatprep.mubr.msk.f32.mxu1 %vm2028_vm9, %v7642_v54  ;;  %v4482_v54 = vpack.c.bf16 %v3085_v32, %v3083_v19 }
 0x386   :  { %4483 = vmatpush1.bf16.msra.mxu0 %v4482_v54 }
 0x387   :  { %4084 = vmatmul.mubr.msk.f32.gmra.mrb[74].mxu1 %vm2028_vm9, %v7654_v41  ;;  %v3089_v41 = vld [vmem:[%s8383_s6 + $0x170] sm:$0xff]  ;;  %4485 = vmatprep.subr.bf16.mxu0 %v4484_v15 }
 0x388   :  { %4086 = vmatprep.mubr.msk.f32.mxu1 %vm2028_vm9, %v7662_v31  ;;  %v4486_v31 = vpack.c.bf16 %v3089_v41, %v3087_v2 }
 0x38a   :  { %4487 = vmatpush1.bf16.msra.mxu0 %v4486_v31 }
 0x38b   :  { %4087 = vmatmul.mubr.msk.f32.gmra.mrb[76].mxu1 %vm2028_vm9, %v7670_v48  ;;  %v3091_v48 = vld [vmem:[%s8383_s6 + $0x180] sm:$0xff]  ;;  %4489 = vmatprep.subr.bf16.mxu0 %v4488_v3 }
 0x38c   :  { %4089 = vmatprep.mubr.msk.f32.mxu1 %vm2028_vm9, %v7678_v38  ;;  %v3892_v36 = vpop.f32.mrb[16].mxu0  ;;  %v4490_v53 = vpack.c.bf16 %v3093_v40, %v3091_v48 }
 0x38d   :  { %v3893_v38 = vpop.f32.mrb[17].mxu0 }
 0x38e   :  { %v7926_v26 = vadd.f32 %v3893_v38, %v3892_v36  ;;  %4491 = vmatpush1.bf16.msra.mxu0 %v4490_v53 }
 0x38f   :  { %4090 = vmatmul.mubr.msk.f32.gmra.mrb[78].mxu1 %vm2028_vm9, %v7686_v43  ;;  %v4492_v43 = vpack.c.bf16 %v3098_v12, %v3096_v30 }
 0x390   :  { %4092 = vmatprep.mubr.msk.f32.mxu1 %vm2028_vm9, %v7706_v14  ;;  %v3100_v14 = vld [vmem:[%s8383_s6 + $0x1c8] sm:$0xff]  ;;  %v3895_v47 = vpop.f32.mrb[18].mxu0 }
 0x391   :  { %v4496_v50 = vpack.c.bf16 %v3102_v17, %v3100_v14  ;;  %v3896_v8 = vpop.f32.mrb[19].mxu0  ;;  %4493 = vmatprep.subr.bf16.mxu0 %v4492_v43  ;;  %v8016_v14 = vpop.permute.xlu1 %1950 }
 0x392   :  { %v7950_v0 = vadd.f32 %v3896_v8, %v3895_v47  ;;  %4495 = vmatpush1.bf16.msra.mxu0 %v4494_v7  ;;  %v2627_v47 = vadd.f32 %v7926_v26, %v8016_v14 }
 0x393   :  { %4093 = vmatmul.mubr.msk.f32.gmra.mrb[80].mxu1 %vm2028_vm9, %v7726_v6  ;;  %4497 = vmatprep.subr.bf16.mxu0 %v4496_v50  ;;  %v3099_v6 = vld [vmem:[%s8383_s6 + $0x1c0] sm:$0xff] }
 0x394   :  { %4095 = vmatprep.mubr.msk.f32.mxu1 %vm2028_vm9, %v7746_v24  ;;  %v3898_v23 = vpop.f32.mrb[20].mxu0  ;;  %v3101_v24 = vld [vmem:[%s8383_s6 + $0x1d0] sm:$0xff] }
 0x395   :  { %v3899_v60 = vpop.f32.mrb[21].mxu0  ;;  %v4498_v63 = vpack.c.bf16 %v3101_v24, %v3099_v6 }
 0x396   :  { %v7956_v4 = vadd.f32 %v3899_v60, %v3898_v23  ;;  %v8022_v23 = vpop.permute.xlu0 %1955 }
 0x397   :  { %4096 = vmatmul.mubr.msk.f32.gmra.mrb[82].mxu1 %vm2028_vm9, %v7766_v35  ;;  %v3106_v35 = vld [vmem:[%s8383_s6 + $0x1f8] sm:$0xff]  ;;  %4499 = vmatpush1.bf16.msra.mxu0 %v4498_v63  ;;  %v2632_v6 = vadd.f32 %v7950_v0, %v8022_v23 }
 0x398   :  { %4098 = vmatprep.mubr.msk.f32.mxu1 %vm2028_vm9, %v7786_v62  ;;  %v3901_v20 = vpop.f32.mrb[22].mxu0  ;;  %v4500_v62 = vpack.c.bf16 %v3106_v35, %v3104_v18  ;;  %v8028_v18 = vpop.permute.xlu1 %1960 }
 0x399   :  { %v3902_v28 = vpop.f32.mrb[23].mxu0  ;;  %v2637_v26 = vadd.f32 %v7956_v4, %v8028_v18 }
 0x39a   :  { %v7974_v39 = vadd.f32 %v3902_v28, %v3901_v20  ;;  %4501 = vmatprep.subr.bf16.mxu0 %v4500_v62  ;;  %v8034_v51 = vpop.permute.xlu0 %1965 }
 0x39b   :  { %4099 = vmatmul.mubr.msk.f32.gmra.mrb[84].mxu1 %vm2028_vm9, %v7806_v22  ;;  %4503 = vmatpush1.bf16.msra.mxu0 %v4502_v27 }
 0x39c   :  { %4101 = vmatprep.mubr.msk.f32.mxu1 %vm2028_vm9, %v7826_v61  ;;  %v3904_v52 = vpop.f32.mrb[24].mxu0  ;;  %4505 = vmatprep.subr.bf16.mxu0 %v4504_v10  ;;  %v2642_v0 = vadd.f32 %v7974_v39, %v8034_v51 }
 0x39d   :  { %v3905_v9 = vpop.f32.mrb[25].mxu0 }
 0x39e   :  { %v7986_v22 = vadd.f32 %v3905_v9, %v3904_v52  ;;  %v8046_v10 = vpop.permute.xlu0 %1975 }
 0x39f   :  { %4102 = vmatmul.mubr.msk.f32.gmra.mrb[86].mxu1 %vm2028_vm9, %v7846_v45 }
 0x3a0   :  { %v3907_v61 = vpop.f32.mrb[26].mxu0 }
 0x3a1   :  { %v3908_v16 = vpop.f32.mrb[27].mxu0 }
 0x3a2   :  { %v7988_v42 = vadd.f32 %v3908_v16, %v3907_v61  ;;  %v8040_v16 = vpop.permute.xlu1 %1970 }
 0x3a3   :  { %v2647_v4 = vadd.f32 %v7986_v22, %v8040_v16 }
 0x3a4   :  { %v3910_v5 = vpop.f32.mrb[28].mxu0  ;;  %v2652_v39 = vadd.f32 %v7988_v42, %v8046_v10 }
 0x3a5   :  { %v3911_v37 = vpop.f32.mrb[29].mxu0 }
 0x3a6   :  { %v7996_v13 = vadd.f32 %v3911_v37, %v3910_v5 }
 0x3a9   :  { %v3913_v45 = vpop.f32.mrb[30].mxu0 }
 0x3aa   :  { %v3914_v46 = vpop.f32.mrb[31].mxu0 }
 0x3ab   :  { %v7998_v57 = vadd.f32 %v3914_v46, %v3913_v45 }
 0x3ae   :  { %v3916_v59 = vpop.f32.mrb[32].mxu0 }
 0x3af   :  { %v3917_v29 = vpop.f32.mrb[33].mxu0 }
 0x3b0   :  { %v8000_v21 = vadd.f32 %v3917_v29, %v3916_v59 }
 0x3b3   :  { %v3919_v19 = vpop.f32.mrb[34].mxu0 }
 0x3b4   :  { %v3920_v32 = vpop.f32.mrb[35].mxu0 }
 0x3b5   :  { %v8002_v54 = vadd.f32 %v3920_v32, %v3919_v19  ;;  %v8052_v19 = vpop.permute.xlu1 %1980 }
 0x3b6   :  { %v2657_v22 = vadd.f32 %v7996_v13, %v8052_v19 }
 0x3b7   :  { %v3922_v33 = vpop.f32.mrb[36].mxu0 }
 0x3b8   :  { %v3923_v44 = vpop.f32.mrb[37].mxu0 }
 0x3b9   :  { %v8004_v15 = vadd.f32 %v3923_v44, %v3922_v33 }
 0x3bb   :  { %v3925_v2 = vpop.f32.mrb[38].mxu0 }
 0x3bc   :  { %v3926_v41 = vpop.f32.mrb[39].mxu0 }
 0x3bd   :  { %v8006_v31 = vadd.f32 %v3926_v41, %v3925_v2  ;;  %v8058_v41 = vpop.permute.xlu0 %1985 }
 0x3be   :  { %v2662_v42 = vadd.f32 %v7998_v57, %v8058_v41 }
 0x3bf   :  { %v3928_v56 = vpop.f32.mrb[40].mxu0 }
 0x3c0   :  { %v3929_v49 = vpop.f32.mrb[41].mxu0 }
 0x3c1   :  { %v8008_v3 = vadd.f32 %v3929_v49, %v3928_v56 }
 0x3c3   :  { %v3931_v36 = vpop.f32.mrb[42].mxu0 }
 0x3c4   :  { %v3932_v48 = vpop.f32.mrb[43].mxu0 }
 0x3c5   :  { %v8010_v40 = vadd.f32 %v3932_v48, %v3931_v36 }
 0x3c7   :  { %v3934_v38 = vpop.f32.mrb[44].mxu0 }
 0x3c8   :  { %v3935_v53 = vpop.f32.mrb[45].mxu0 }
 0x3c9   :  { %v8012_v30 = vadd.f32 %v3935_v53, %v3934_v38  ;;  %v8064_v38 = vpop.permute.xlu1 %1990 }
 0x3ca   :  { %v2667_v13 = vadd.f32 %v8000_v21, %v8064_v38 }
 0x3cb   :  { %v3937_v12 = vpop.f32.mrb[46].mxu0 }
 0x3cc   :  { %v3938_v58 = vpop.f32.mrb[47].mxu0 }
 0x3cd   :  { %v8014_v43 = vadd.f32 %v3938_v58, %v3937_v12 }
 0x3d3   :  { %v3972_v55 = vpop.f32.mrb[48].mxu0 }
 0x3d4   :  { %v3973_v17 = vpop.f32.mrb[49].mxu0 }
 0x3d5   :  { %v3974_v7 = vadd.f32 %v3973_v17, %v3972_v55  ;;  %v8070_v17 = vpop.permute.xlu0 %1995 }
 0x3d6   :  { %v2672_v57 = vadd.f32 %v8002_v54, %v8070_v17 }
 0x3d7   :  { %v3975_v50 = vpop.f32.mrb[50].mxu0  ;;  %v8020_v8 = vadd.f32 %v3974_v7, %v2627_v47 }
 0x3d8   :  { %v3976_v60 = vpop.f32.mrb[51].mxu0 }
 0x3d9   :  { %v3977_v24 = vadd.f32 %v3976_v60, %v3975_v50 }
 0x3db   :  { %v3978_v20 = vpop.f32.mrb[52].mxu0  ;;  %v8026_v63 = vadd.f32 %v3977_v24, %v2632_v6  ;;  %v8076_v6 = vpop.permute.xlu1 %2000 }
 0x3dc   :  { %v3979_v35 = vpop.f32.mrb[53].mxu0  ;;  %v2677_v21 = vadd.f32 %v8004_v15, %v8076_v6 }
 0x3dd   :  { %v3980_v28 = vadd.f32 %v3979_v35, %v3978_v20 }
 0x3df   :  { %v3981_v62 = vpop.f32.mrb[54].mxu0  ;;  %v8032_v25 = vadd.f32 %v3980_v28, %v2637_v26  ;;  %v8082_v28 = vpop.permute.xlu0 %2005 }
 0x3e0   :  { %v3982_v52 = vpop.f32.mrb[55].mxu0  ;;  %v2682_v54 = vadd.f32 %v8006_v31, %v8082_v28 }
 0x3e1   :  { %v3983_v27 = vadd.f32 %v3982_v52, %v3981_v62 }
 0x3e3   :  { %v3984_v9 = vpop.f32.mrb[56].mxu0  ;;  %v8038_v61 = vadd.f32 %v3983_v27, %v2642_v0 }
 0x3e4   :  { %v3985_v5 = vpop.f32.mrb[57].mxu0 }
 0x3e5   :  { %v3986_v11 = vadd.f32 %v3985_v5, %v3984_v9  ;;  %v8088_v9 = vpop.permute.xlu1 %2010 }
 0x3e6   :  { %v2687_v15 = vadd.f32 %v8008_v3, %v8088_v9 }
 0x3e7   :  { %v3987_v1 = vpop.f32.mrb[58].mxu0  ;;  %v8044_v37 = vadd.f32 %v3986_v11, %v2647_v4 }
 0x3e8   :  { %v3988_v45 = vpop.f32.mrb[59].mxu0 }
 0x3e9   :  { %v3989_v46 = vadd.f32 %v3988_v45, %v3987_v1  ;;  %v8094_v45 = vpop.permute.xlu0 %2015 }
 0x3ea   :  { %v2692_v31 = vadd.f32 %v8010_v40, %v8094_v45 }
 0x3eb   :  { %v3990_v59 = vpop.f32.mrb[60].mxu0  ;;  %v8050_v29 = vadd.f32 %v3989_v46, %v2652_v39 }
 0x3ec   :  { %v3991_v32 = vpop.f32.mrb[61].mxu0 }
 0x3ed   :  { %v3992_v33 = vadd.f32 %v3991_v32, %v3990_v59 }
 0x3ef   :  { %v3993_v44 = vpop.f32.mrb[62].mxu0  ;;  %v8056_v2 = vadd.f32 %v3992_v33, %v2657_v22  ;;  %v8100_v22 = vpop.permute.xlu1 %2020 }
 0x3f0   :  { %v3994_v56 = vpop.f32.mrb[63].mxu0  ;;  %v2697_v3 = vadd.f32 %v8012_v30, %v8100_v22  ;;  %v3107_v30 = vld [vmem:[%s8383_s6 + $0x200] sm:$0xff] }
 0x3f1   :  { %v3995_v49 = vadd.f32 %v3994_v56, %v3993_v44 }
 0x3f3   :  { %v3996_v36 = vpop.f32.mrb[64].mxu0  ;;  %v8062_v48 = vadd.f32 %v3995_v49, %v2662_v42  ;;  %v8106_v49 = vpop.permute.xlu0 %2025 }
 0x3f4   :  { %v3997_v53 = vpop.f32.mrb[65].mxu0  ;;  %v2702_v40 = vadd.f32 %v8014_v43, %v8106_v49  ;;  %v3112_v43 = vld [vmem:[%s8383_s6 + $0x228] sm:$0xff] }
 0x3f5   :  { %v3998_v12 = vadd.f32 %v3997_v53, %v3996_v36 }
 0x3f7   :  { %v3999_v58 = vpop.f32.mrb[66].mxu0  ;;  %v8068_v55 = vadd.f32 %v3998_v12, %v2667_v13 }
 0x3f8   :  { %v4000_v47 = vpop.f32.mrb[67].mxu0 }
 0x3f9   :  { %v4001_v7 = vadd.f32 %v4000_v47, %v3999_v58 }
 0x3fb   :  { %v4002_v50 = vpop.f32.mrb[68].mxu0  ;;  %v8074_v60 = vadd.f32 %v4001_v7, %v2672_v57  ;;  %v3109_v57 = vld [vmem:[%s8383_s6 + $0x210] sm:$0xff] }
 0x3fc   :  { %v4003_v24 = vpop.f32.mrb[69].mxu0 }
 0x3fd   :  { %v4004_v20 = vadd.f32 %v4003_v24, %v4002_v50  ;;  %v3114_v50 = vld [vmem:[%s8383_s6 + $0x238] sm:$0xff] }
 0x3ff   :  { %v4005_v35 = vpop.f32.mrb[70].mxu0  ;;  %v8080_v26 = vadd.f32 %v4004_v20, %v2677_v21  ;;  %v4506_v20 = vpack.c.bf16 %v3109_v57, %v3107_v30 }
 0x400   :  { %v4006_v62 = vpop.f32.mrb[71].mxu0 }
 0x401   :  { %v4007_v52 = vadd.f32 %v4006_v62, %v4005_v35 }
 0x403   :  { %v4008_v0 = vpop.f32.mrb[72].mxu0  ;;  %v8086_v27 = vadd.f32 %v4007_v52, %v2682_v54  ;;  %v4508_v52 = vpack.c.bf16 %v3114_v50, %v3112_v43 }
 0x404   :  { %v4009_v5 = vpop.f32.mrb[73].mxu0 }
 0x405   :  { %v4010_v4 = vadd.f32 %v4009_v5, %v4008_v0  ;;  %v3113_v0 = vld [vmem:[%s8383_s6 + $0x230] sm:$0xff] }
 0x407   :  { %v4011_v11 = vpop.f32.mrb[74].mxu0  ;;  %v8092_v1 = vadd.f32 %v4010_v4, %v2687_v15 }
 0x408   :  { %v4012_v39 = vpop.f32.mrb[75].mxu0 }
 0x409   :  { %v4013_v46 = vadd.f32 %v4012_v39, %v4011_v11 }
 0x40b   :  { %v4014_v59 = vpop.f32.mrb[76].mxu0  ;;  %v8098_v32 = vadd.f32 %v4013_v46, %v2692_v31 }
 0x40c   :  { %v4015_v33 = vpop.f32.mrb[77].mxu0 }
 0x40d   :  { %v4016_v44 = vadd.f32 %v4015_v33, %v4014_v59 }
 0x40f   :  { %v4017_v56 = vpop.f32.mrb[78].mxu0  ;;  %v8104_v42 = vadd.f32 %v4016_v44, %v2697_v3 }
 0x410   :  { %v4018_v36 = vpop.f32.mrb[79].mxu0 }
 0x411   :  { %v4019_v53 = vadd.f32 %v4018_v36, %v4017_v56 }
 0x413   :  { %v8110_v13 = vadd.f32 %v4019_v53, %v2702_v40 }
 0x416   :  { %v2465_v12 = vpop.f32.mrb[40].mxu1 }
 0x417   :  { %v4606_v58 = vadd.f32 %v2465_v12, %v8016_v14  ;;  %v2467_v47 = vpop.f32.mrb[41].mxu1 }
 0x418   :  { %v4607_v7 = vadd.f32 %v2467_v47, %v8016_v14  ;;  %v3111_v14 = vld [vmem:[%s8383_s6 + $0x220] sm:$0xff] }
 0x419   :  { %v2995_v35 = vmax.f32 %v4606_v58, 0.0  ;;  %v4510_v11 = vpack.c.bf16 %v3113_v0, %v3111_v14 }
 0x41a   :  { %v2996_v24 = vmax.f32 %v4607_v7, 0.0  ;;  %v2471_v21 = vpop.f32.mrb[42].mxu1 }
 0x41b   :  { %v4608_v62 = vadd.f32 %v2471_v21, %v8022_v23  ;;  %v2473_v54 = vpop.f32.mrb[43].mxu1 }
 0x41c   :  { %v4609_v5 = vadd.f32 %v2473_v54, %v8022_v23  ;;  %3227 = vmatprep.mubr.f32.mxu0 %v2996_v24 }
 0x41d   :  { %3228 = vmatmul.mubr.f32.vlgmr.msra.gmra.mrb[80].mxu0 %v2995_v35  ;;  %v2998_v39 = vmax.f32 %v4608_v62, 0.0 }
 0x41e   :  { %v2999_v15 = vmax.f32 %v4609_v5, 0.0  ;;  %v2477_v4 = vpop.f32.mrb[44].mxu1  ;;  %4507 = vmatpush1.bf16.msra.mxu0 %v4506_v20 }
 0x41f   :  { %v4610_v31 = vadd.f32 %v2477_v4, %v8028_v18  ;;  %v2479_v46 = vpop.f32.mrb[45].mxu1  ;;  %4509 = vmatprep.subr.bf16.mxu0 %v4508_v52 }
 0x420   :  { %v4611_v59 = vadd.f32 %v2479_v46, %v8028_v18  ;;  %3233 = vmatprep.mubr.f32.mxu0 %v2999_v15 }
 0x421   :  { %3234 = vmatmul.mubr.f32.gmra.mrb[82].mxu0 %v2998_v39  ;;  %v3001_v44 = vmax.f32 %v4610_v31, 0.0 }
 0x422   :  { %v3002_v33 = vmax.f32 %v4611_v59, 0.0  ;;  %v2483_v3 = vpop.f32.mrb[46].mxu1  ;;  %4511 = vmatpush1.bf16.msra.mxu0 %v4510_v11 }
 0x423   :  { %v4612_v23 = vadd.f32 %v2483_v3, %v8034_v51  ;;  %v2485_v56 = vpop.f32.mrb[47].mxu1 }
 0x424   :  { %v4613_v36 = vadd.f32 %v2485_v56, %v8034_v51  ;;  %3239 = vmatprep.mubr.f32.mxu0 %v3002_v33 }
 0x425   :  { %3240 = vmatmul.mubr.f32.gmra.mrb[84].mxu0 %v3001_v44  ;;  %v3004_v12 = vmax.f32 %v4612_v23, 0.0 }
 0x426   :  { %v3005_v40 = vmax.f32 %v4613_v36, 0.0  ;;  %v2489_v53 = vpop.f32.mrb[48].mxu1 }
 0x427   :  { %v4614_v58 = vadd.f32 %v2489_v53, %v8040_v16  ;;  %v2491_v47 = vpop.f32.mrb[49].mxu1 }
 0x428   :  { %v4615_v18 = vadd.f32 %v2491_v47, %v8040_v16  ;;  %3245 = vmatprep.mubr.f32.mxu0 %v3005_v40 }
 0x429   :  { %3246 = vmatmul.mubr.f32.gmra.mrb[86].mxu0 %v3004_v12  ;;  %v3007_v7 = vmax.f32 %v4614_v58, 0.0 }
 0x42a   :  { %v3008_v30 = vmax.f32 %v4615_v18, 0.0  ;;  %v2495_v57 = vpop.f32.mrb[50].mxu1 }
 0x42b   :  { %v4616_v43 = vadd.f32 %v2495_v57, %v8046_v10  ;;  %v2497_v50 = vpop.f32.mrb[51].mxu1 }
 0x42c   :  { %v4617_v51 = vadd.f32 %v2497_v50, %v8046_v10  ;;  %3251 = vmatprep.mubr.f32.mxu0 %v3008_v30 }
 0x42d   :  { %3252 = vmatmul.mubr.f32.gmra.mrb[88].mxu0 %v3007_v7  ;;  %v3010_v20 = vmax.f32 %v4616_v43, 0.0 }
 0x42e   :  { %v3011_v24 = vmax.f32 %v4617_v51, 0.0  ;;  %v2501_v21 = vpop.f32.mrb[52].mxu1 }
 0x42f   :  { %v4618_v35 = vadd.f32 %v2501_v21, %v8052_v19  ;;  %v2503_v62 = vpop.f32.mrb[53].mxu1 }
 0x430   :  { %v4619_v16 = vadd.f32 %v2503_v62, %v8052_v19  ;;  %3257 = vmatprep.mubr.f32.mxu0 %v3011_v24 }
 0x431   :  { %3258 = vmatmul.mubr.f32.gmra.mrb[90].mxu0 %v3010_v20  ;;  %v3013_v14 = vmax.f32 %v4618_v35, 0.0 }
 0x432   :  { %v3014_v54 = vmax.f32 %v4619_v16, 0.0  ;;  %v2507_v52 = vpop.f32.mrb[54].mxu1 }
 0x433   :  { %v4620_v0 = vadd.f32 %v2507_v52, %v8058_v41  ;;  %v2509_v5 = vpop.f32.mrb[55].mxu1 }
 0x434   :  { %v4621_v10 = vadd.f32 %v2509_v5, %v8058_v41  ;;  %3263 = vmatprep.mubr.f32.mxu0 %v3014_v54 }
 0x435   :  { %3264 = vmatmul.mubr.f32.gmra.mrb[92].mxu0 %v3013_v14  ;;  %v3016_v11 = vmax.f32 %v4620_v0, 0.0 }
 0x436   :  { %v3017_v15 = vmax.f32 %v4621_v10, 0.0  ;;  %v2513_v4 = vpop.f32.mrb[56].mxu1 }
 0x437   :  { %v4622_v39 = vadd.f32 %v2513_v4, %v8064_v38  ;;  %v2515_v31 = vpop.f32.mrb[57].mxu1 }
 0x438   :  { %v4623_v19 = vadd.f32 %v2515_v31, %v8064_v38  ;;  %3269 = vmatprep.mubr.f32.mxu0 %v3017_v15 }
 0x439   :  { %3270 = vmatmul.mubr.f32.gmra.mrb[94].mxu0 %v3016_v11  ;;  %v3019_v33 = vmax.f32 %v4622_v39, 0.0 }
 0x43a   :  { %v3020_v46 = vmax.f32 %v4623_v19, 0.0  ;;  %v2519_v59 = vpop.f32.mrb[58].mxu1 }
 0x43b   :  { %v4624_v3 = vadd.f32 %v2519_v59, %v8070_v17  ;;  %v2521_v44 = vpop.f32.mrb[59].mxu1 }
 0x43c   :  { %v4625_v41 = vadd.f32 %v2521_v44, %v8070_v17  ;;  %3275 = vmatprep.mubr.f32.mxu0 %v3020_v46 }
 0x43d   :  { %3276 = vmatmul.mubr.f32.gmra.mrb[96].mxu0 %v3019_v33  ;;  %v3022_v36 = vmax.f32 %v4624_v3, 0.0 }
 0x43e   :  { %v3023_v23 = vmax.f32 %v4625_v41, 0.0  ;;  %v2525_v56 = vpop.f32.mrb[60].mxu1 }
 0x43f   :  { %v4626_v40 = vadd.f32 %v2525_v56, %v8076_v6  ;;  %v2527_v53 = vpop.f32.mrb[61].mxu1 }
 0x440   :  { %v4627_v38 = vadd.f32 %v2527_v53, %v8076_v6  ;;  %3281 = vmatprep.mubr.f32.mxu0 %v3023_v23 }
 0x441   :  { %3282 = vmatmul.mubr.f32.gmra.mrb[98].mxu0 %v3022_v36  ;;  %v3025_v47 = vmax.f32 %v4626_v40, 0.0 }
 0x442   :  { %v3026_v12 = vmax.f32 %v4627_v38, 0.0  ;;  %v2531_v58 = vpop.f32.mrb[62].mxu1 }
 0x443   :  { %v4628_v18 = vadd.f32 %v2531_v58, %v8082_v28  ;;  %v2533_v30 = vpop.f32.mrb[63].mxu1 }
 0x444   :  { %v4629_v17 = vadd.f32 %v2533_v30, %v8082_v28  ;;  %3287 = vmatprep.mubr.f32.mxu0 %v3026_v12 }
 0x445   :  { %3288 = vmatmul.mubr.f32.gmra.mrb[100].mxu0 %v3025_v47  ;;  %v3028_v43 = vmax.f32 %v4628_v18, 0.0 }
 0x446   :  { %v3029_v57 = vmax.f32 %v4629_v17, 0.0  ;;  %v2537_v7 = vpop.f32.mrb[64].mxu1 }
 0x447   :  { %v4630_v50 = vadd.f32 %v2537_v7, %v8088_v9  ;;  %v2539_v51 = vpop.f32.mrb[65].mxu1 }
 0x448   :  { %v4631_v6 = vadd.f32 %v2539_v51, %v8088_v9  ;;  %3293 = vmatprep.mubr.f32.mxu0 %v3029_v57 }
 0x449   :  { %3294 = vmatmul.mubr.f32.gmra.mrb[102].mxu0 %v3028_v43  ;;  %v3031_v20 = vmax.f32 %v4630_v50, 0.0 }
 0x44a   :  { %v3032_v24 = vmax.f32 %v4631_v6, 0.0  ;;  %v2543_v21 = vpop.f32.mrb[66].mxu1 }
 0x44b   :  { %v4632_v35 = vadd.f32 %v2543_v21, %v8094_v45  ;;  %v2545_v62 = vpop.f32.mrb[67].mxu1 }
 0x44c   :  { %v4633_v28 = vadd.f32 %v2545_v62, %v8094_v45  ;;  %3299 = vmatprep.mubr.f32.mxu0 %v3032_v24 }
 0x44d   :  { %3300 = vmatmul.mubr.f32.gmra.mrb[104].mxu0 %v3031_v20  ;;  %v3034_v52 = vmax.f32 %v4632_v35, 0.0 }
 0x44e   :  { %v3035_v16 = vmax.f32 %v4633_v28, 0.0  ;;  %v2549_v54 = vpop.f32.mrb[68].mxu1  ;;  %v5557_v28 = vmov 0.0|0.0  }
 0x44f   :  { %v4634_v14 = vadd.f32 %v2549_v54, %v8100_v22  ;;  %v2551_v0 = vpop.f32.mrb[69].mxu1  ;;  %4544 = vmatprep.subr.bf16.mxu1 %v5557_v28  ;;  %v3622_v54 = vld [vmem:[%s8384_s9 + $0x8] sm:$0xff] }
 0x450   :  { %v4635_v9 = vadd.f32 %v2551_v0, %v8100_v22  ;;  %3305 = vmatprep.mubr.f32.mxu0 %v3035_v16  ;;  %v3621_v16 = vld [vmem:[%s8384_s9] sm:$0xff]  ;;  %v3624_v0 = vld [vmem:[%s8384_s9 + $0x18] sm:$0xff] }
 0x451   :  { %3306 = vmatmul.mubr.f32.gmra.mrb[106].mxu0 %v3034_v52  ;;  %v3037_v15 = vmax.f32 %v4634_v14, 0.0  ;;  %v3623_v52 = vld [vmem:[%s8384_s9 + $0x10] sm:$0xff]  ;;  %v4545_v14 = vpack.c.bf16 %v3622_v54, %v3621_v16 }
 0x452   :  { %v3038_v5 = vmax.f32 %v4635_v9, 0.0  ;;  %v2555_v10 = vpop.f32.mrb[70].mxu1  ;;  %v3625_v9 = vld [vmem:[%s8384_s9 + $0x20] sm:$0xff] }
 0x453   :  { %v4636_v4 = vadd.f32 %v2555_v10, %v8106_v49  ;;  %v2557_v11 = vpop.f32.mrb[71].mxu1  ;;  %4546 = vmatpush1.bf16.msra.mxu1 %v4545_v14 }
 0x454   :  { %v4637_v45 = vadd.f32 %v2557_v11, %v8106_v49  ;;  %3311 = vmatprep.mubr.f32.mxu0 %v3038_v5  ;;  %4547 = vmatprep.subr.bf16.mxu1 %v5557_v28  ;;  %v3626_v5 = vld [vmem:[%s8384_s9 + $0x28] sm:$0xff] }
 0x455   :  { %3312 = vmatmul.mubr.f32.gmra.mrb[108].mxu0 %v3037_v15  ;;  %v3040_v19 = vmax.f32 %v4636_v4, 0.0  ;;  %v4551_v10 = vpack.c.bf16 %v3626_v5, %v3625_v9  ;;  %v3627_v15 = vld [vmem:[%s8384_s9 + $0x30] sm:$0xff]  ;;  %v3628_v4 = vld [vmem:[%s8384_s9 + $0x38] sm:$0xff]  ;;  %v3497_v5 = vld [vmem:[%s8385_s7 + $0x60] sm:$0xff] }
 0x456   :  { %v3041_v39 = vmax.f32 %v4637_v45, 0.0  ;;  %v4082_v31 = vpop.f32.mrb[72].mxu1  ;;  %v4554_v11 = vpack.c.bf16 %v3628_v4, %v3627_v15  ;;  %v3629_v45 = vld [vmem:[%s8384_s9 + $0x40] sm:$0xff]  ;;  %v3498_v15 = vld [vmem:[%s8385_s7 + $0x68] sm:$0xff]  ;;  %v3500_v4 = vld [vmem:[%s8385_s7 + $0x78] sm:$0xff] }
 0x457   :  { %v2922_v46 = vadd.f32 %v4082_v31, %v8026_v63  ;;  %v2916_v59 = vpop.f32.mrb[73].mxu1 }
 0x458   :  { %v2917_v22 = vadd.f32 %v2916_v59, %v8020_v8  ;;  %3317 = vmatprep.mubr.f32.mxu0 %v3041_v39  ;;  %v3630_v39 = vld [vmem:[%s8384_s9 + $0x48] sm:$0xff] }
 0x459   :  { %3318 = vmatmul.mubr.f32.gmra.mrb[110].mxu0 %v3040_v19  ;;  %v3000_v63 = vmax.f32 %v2922_v46, 0.0  ;;  %v4557_v31 = vpack.c.bf16 %v3630_v39, %v3629_v45  ;;  %v3631_v19 = vld [vmem:[%s8384_s9 + $0x50] sm:$0xff]  ;;  %v3632_v46 = vld [vmem:[%s8384_s9 + $0x58] sm:$0xff] }
 0x45a   :  { %v2997_v33 = vmax.f32 %v2917_v22, 0.0  ;;  %v4085_v3 = vpop.f32.mrb[74].mxu1  ;;  %3388 = vmatprep.mubr.f32.mxu0 %v8401_v34  ;;  %v4560_v59 = vpack.c.bf16 %v3632_v46, %v3631_v19  ;;  %v3633_v22 = vld [vmem:[%s8384_s9 + $0x60] sm:$0xff] }
 0x45b   :  { %v2932_v44 = vadd.f32 %v4085_v3, %v8038_v61  ;;  %v2926_v41 = vpop.f32.mrb[75].mxu1 }
 0x45c   :  { %v2927_v49 = vadd.f32 %v2926_v41, %v8032_v25  ;;  %v3636_v41 = vld [vmem:[%s8384_s9 + $0x78] sm:$0xff] }
 0x45d   :  { %3774 = vmatmul.mubr.msk.f32.vlgmr.msra.gmra.mrb[80].mxu0 %vm598_vm3, %v2997_v33  ;;  %v3634_v33 = vld [vmem:[%s8384_s9 + $0x68] sm:$0xff] }
 0x45e   :  { %v4088_v23 = vpop.f32.mrb[76].mxu1  ;;  %3394 = vmatprep.mubr.f32.mxu0 %v8401_v34  ;;  %v3003_v61 = vmax.f32 %v2927_v49, 0.0  ;;  %v4563_v3 = vpack.c.bf16 %v3634_v33, %v3633_v22 }
 0x45f   :  { %v2942_v56 = vadd.f32 %v4088_v23, %v8050_v29  ;;  %v2936_v8 = vpop.f32.mrb[77].mxu1  ;;  %v3006_v29 = vmax.f32 %v2932_v44, 0.0  ;;  %v3635_v44 = vld [vmem:[%s8384_s9 + $0x70] sm:$0xff]  ;;  %v3637_v23 = vld [vmem:[%s8384_s9 + $0x80] sm:$0xff] }
 0x460   :  { %v2937_v36 = vadd.f32 %v2936_v8, %v8044_v37  ;;  %v4566_v49 = vpack.c.bf16 %v3636_v41, %v3635_v44  ;;  %v3501_v44 = vld [vmem:[%s8385_s7 + $0x80] sm:$0xff]  ;;  %v3503_v41 = vld [vmem:[%s8385_s7 + $0x90] sm:$0xff] }
 0x461   :  { %3775 = vmatmul.mubr.msk.f32.gmra.mrb[82].mxu0 %vm598_vm3, %v3000_v63  ;;  %v3638_v63 = vld [vmem:[%s8384_s9 + $0x88] sm:$0xff] }
 0x462   :  { %v4091_v40 = vpop.f32.mrb[78].mxu1  ;;  %3400 = vmatprep.mubr.f32.mxu0 %v8401_v34 }
 0x463   :  { %v2952_v53 = vadd.f32 %v4091_v40, %v8062_v48  ;;  %v2946_v25 = vpop.f32.mrb[79].mxu1  ;;  %v3009_v48 = vmax.f32 %v2937_v36, 0.0  ;;  %v3485_v40 = vld [vmem:[%s8385_s7] sm:$0xff] }
 0x464   :  { %v2947_v38 = vadd.f32 %v2946_v25, %v8056_v2  ;;  %v3488_v25 = vld [vmem:[%s8385_s7 + $0x18] sm:$0xff] }
 0x465   :  { %3776 = vmatmul.mubr.msk.f32.gmra.mrb[84].mxu0 %vm598_vm3, %v3003_v61  ;;  %v3018_v24 = vmax.f32 %v2952_v53, 0.0  ;;  %v3487_v61 = vld [vmem:[%s8385_s7 + $0x10] sm:$0xff]  ;;  %v3486_v53 = vld [vmem:[%s8385_s7 + $0x8] sm:$0xff] }
 0x466   :  { %v4094_v12 = vpop.f32.mrb[80].mxu1  ;;  %3406 = vmatprep.mubr.f32.mxu0 %v8401_v34 }
 0x467   :  { %v2962_v58 = vadd.f32 %v4094_v12, %v8074_v60  ;;  %v2956_v37 = vpop.f32.mrb[81].mxu1  ;;  %v3012_v60 = vmax.f32 %v2942_v56, 0.0  ;;  %v4569_v56 = vpack.c.bf16 %v3638_v63, %v3637_v23  ;;  %v3504_v23 = vld [vmem:[%s8385_s7 + $0x98] sm:$0xff] }
 0x468   :  { %v2957_v47 = vadd.f32 %v2956_v37, %v8068_v55 }
 0x469   :  { %3777 = vmatmul.mubr.msk.f32.gmra.mrb[86].mxu0 %vm598_vm3, %v3006_v29 }
 0x46a   :  { %v4097_v18 = vpop.f32.mrb[82].mxu1  ;;  %3412 = vmatprep.mubr.f32.mxu0 %v8401_v34 }
 0x46b   :  { %v2972_v30 = vadd.f32 %v4097_v18, %v8086_v27  ;;  %v2966_v2 = vpop.f32.mrb[83].mxu1  ;;  %v3015_v27 = vmax.f32 %v2947_v38, 0.0 }
 0x46c   :  { %v2967_v17 = vadd.f32 %v2966_v2, %v8080_v26 }
 0x46d   :  { %3778 = vmatmul.mubr.msk.f32.gmra.mrb[88].mxu0 %vm598_vm3, %v3009_v48 }
 0x46e   :  { %v4100_v57 = vpop.f32.mrb[84].mxu1  ;;  %3418 = vmatprep.mubr.f32.mxu0 %v8401_v34 }
 0x46f   :  { %v2982_v7 = vadd.f32 %v4100_v57, %v8098_v32  ;;  %v2976_v55 = vpop.f32.mrb[85].mxu1  ;;  %v3024_v32 = vmax.f32 %v2962_v58, 0.0  ;;  %v3491_v57 = vld [vmem:[%s8385_s7 + $0x30] sm:$0xff] }
 0x470   :  { %v2977_v43 = vadd.f32 %v2976_v55, %v8092_v1  ;;  %v3021_v1 = vmax.f32 %v2957_v47, 0.0 }
 0x471   :  { %3779 = vmatmul.mubr.msk.f32.gmra.mrb[90].mxu0 %vm598_vm3, %v3012_v60  ;;  %v3036_v20 = vmax.f32 %v2982_v7, 0.0  ;;  %v3490_v60 = vld [vmem:[%s8385_s7 + $0x28] sm:$0xff]  ;;  %v3492_v7 = vld [vmem:[%s8385_s7 + $0x38] sm:$0xff] }
 0x472   :  { %v4103_v50 = vpop.f32.mrb[86].mxu1  ;;  %3424 = vmatprep.mubr.f32.mxu0 %v8401_v34  ;;  %v3033_v21 = vmax.f32 %v2977_v43, 0.0 }
 0x473   :  { %v2992_v51 = vadd.f32 %v4103_v50, %v8110_v13  ;;  %v2986_v26 = vpop.f32.mrb[87].mxu1  ;;  %v3030_v13 = vmax.f32 %v2972_v30, 0.0 }
 0x474   :  { %v2987_v6 = vadd.f32 %v2986_v26, %v8104_v42  ;;  %v3027_v42 = vmax.f32 %v2967_v17, 0.0  ;;  %v3489_v17 = vld [vmem:[%s8385_s7 + $0x20] sm:$0xff] }
 0x475   :  { %3780 = vmatmul.mubr.msk.f32.gmra.mrb[92].mxu0 %vm598_vm3, %v3015_v27  ;;  %v3042_v62 = vmax.f32 %v2992_v51, 0.0 }
 0x476   :  { %3430 = vmatprep.mubr.f32.mxu0 %v8401_v34  ;;  %v3039_v35 = vmax.f32 %v2987_v6, 0.0 }
 0x479   :  { %3781 = vmatmul.mubr.msk.f32.gmra.mrb[94].mxu0 %vm598_vm3, %v3018_v24 }
 0x47a   :  { %3436 = vmatprep.mubr.f32.mxu0 %v8401_v34 }
 0x47d   :  { %3782 = vmatmul.mubr.msk.f32.gmra.mrb[96].mxu0 %vm598_vm3, %v3021_v1 }
 0x47e   :  { %3442 = vmatprep.mubr.f32.mxu0 %v8401_v34 }
 0x481   :  { %3783 = vmatmul.mubr.msk.f32.gmra.mrb[98].mxu0 %vm598_vm3, %v3024_v32 }
 0x482   :  { %3448 = vmatprep.mubr.f32.mxu0 %v8401_v34 }
 0x485   :  { %3784 = vmatmul.mubr.msk.f32.gmra.mrb[100].mxu0 %vm598_vm3, %v3027_v42  ;;  %v3493_v42 = vld [vmem:[%s8385_s7 + $0x40] sm:$0xff] }
 0x486   :  { %3454 = vmatprep.mubr.f32.mxu0 %v8401_v34 }
 0x489   :  { %3785 = vmatmul.mubr.msk.f32.gmra.mrb[102].mxu0 %vm598_vm3, %v3030_v13  ;;  %v3495_v13 = vld [vmem:[%s8385_s7 + $0x50] sm:$0xff] }
 0x48a   :  { %3460 = vmatprep.mubr.f32.mxu0 %v8401_v34 }
 0x48d   :  { %3786 = vmatmul.mubr.msk.f32.gmra.mrb[104].mxu0 %vm598_vm3, %v3033_v21  ;;  %v3494_v21 = vld [vmem:[%s8385_s7 + $0x48] sm:$0xff] }
 0x48e   :  { %3466 = vmatprep.mubr.f32.mxu0 %v8401_v34 }
 0x491   :  { %3787 = vmatmul.mubr.msk.f32.gmra.mrb[106].mxu0 %vm598_vm3, %v3036_v20  ;;  %v3496_v20 = vld [vmem:[%s8385_s7 + $0x58] sm:$0xff] }
 0x492   :  { %3472 = vmatprep.mubr.f32.mxu0 %v8401_v34 }
 0x495   :  { %3788 = vmatmul.mubr.msk.f32.gmra.mrb[108].mxu0 %vm598_vm3, %v3039_v35 }
 0x496   :  { %3478 = vmatprep.mubr.f32.mxu0 %v8401_v34 }
 0x499   :  { %3789 = vmatmul.mubr.msk.f32.gmra.mrb[110].mxu0 %vm598_vm3, %v3042_v62 }
 0x49a   :  { %3614 = vmatprep.mubr.f32.mxu0 %v8401_v34  ;;  %v4548_v34 = vpack.c.bf16 %v3624_v0, %v3623_v52 }
 0x49c   :  { %4549 = vmatpush1.bf16.msra.mxu1 %v4548_v34 }
 0x49d   :  { %4550 = vmatprep.subr.bf16.mxu1 %v5557_v28 }
 0x4a0   :  { %4552 = vmatpush1.bf16.msra.mxu1 %v4551_v10  ;;  %v3499_v10 = vld [vmem:[%s8385_s7 + $0x70] sm:$0xff] }
 0x4a1   :  { %4553 = vmatprep.subr.bf16.mxu1 %v5557_v28 }
 0x4a4   :  { %4555 = vmatpush1.bf16.msra.mxu1 %v4554_v11 }
 0x4a5   :  { %4556 = vmatprep.subr.bf16.mxu1 %v5557_v28 }
 0x4a8   :  { %4558 = vmatpush1.bf16.msra.mxu1 %v4557_v31 }
 0x4a9   :  { %4559 = vmatprep.subr.bf16.mxu1 %v5557_v28 }
 0x4ac   :  { %4561 = vmatpush1.bf16.msra.mxu1 %v4560_v59 }
 0x4ad   :  { %4562 = vmatprep.subr.bf16.mxu1 %v5557_v28 }
 0x4b0   :  { %4564 = vmatpush1.bf16.msra.mxu1 %v4563_v3 }
 0x4b1   :  { %4565 = vmatprep.subr.bf16.mxu1 %v5557_v28 }
 0x4b4   :  { %4567 = vmatpush1.bf16.msra.mxu1 %v4566_v49  ;;  %v3502_v49 = vld [vmem:[%s8385_s7 + $0x88] sm:$0xff] }
 0x4b5   :  { %4568 = vmatprep.subr.bf16.mxu1 %v5557_v28 }
 0x4b8   :  { %4570 = vmatpush1.bf16.msra.mxu1 %v4569_v56 }
 0x4b9   :  { %4571 = vmatprep.subr.bf16.mxu1 %v5557_v28 }
 0x530   :  { %v3390_v8 = vpop.f32.mrb[80].mxu0 }
 0x531   :  { %v3392_v36 = vpop.f32.mrb[81].mxu0  ;;  %v3517_v12 = vmul.f32 %v3485_v40, %v3390_v8 }
 0x532   :  { %v3518_v37 = vmul.f32 %v3486_v53, %v3392_v36 }
 0x534   :  { %v3396_v38 = vpop.f32.mrb[82].mxu0 }
 0x535   :  { %v3519_v29 = vmul.f32 %v3487_v61, %v3396_v38  ;;  %v3398_v58 = vpop.f32.mrb[83].mxu0 }
 0x536   :  { %v3520_v47 = vmul.f32 %v3488_v25, %v3398_v58  ;;  %v3507_v58 = vld [vmem:[%s8385_s7 + $0xb0] sm:$0xff] }
 0x537   :  { %v4514_v18 = vpack.c.bf16 %v3519_v29, %v3517_v12  ;;  %v3505_v29 = vld [vmem:[%s8385_s7 + $0xa0] sm:$0xff] }
 0x538   :  { %v4512_v48 = vpack.c.bf16 %v3520_v47, %v3518_v37  ;;  %v3402_v30 = vpop.f32.mrb[84].mxu0  ;;  %v3506_v37 = vld [vmem:[%s8385_s7 + $0xa8] sm:$0xff]  ;;  %v3508_v47 = vld [vmem:[%s8385_s7 + $0xb8] sm:$0xff] }
 0x539   :  { %v3404_v2 = vpop.f32.mrb[85].mxu0  ;;  %v3521_v43 = vmul.f32 %v3489_v17, %v3402_v30 }
 0x53a   :  { %4513 = vmatprep.subr.bf16.mxu0 %v4512_v48  ;;  %v3522_v51 = vmul.f32 %v3490_v60, %v3404_v2 }
 0x53b   :  { %4515 = vmatpush1.bf16.msra.mxu0 %v4514_v18 }
 0x53c   :  { %v3408_v55 = vpop.f32.mrb[86].mxu0 }
 0x53d   :  { %v3523_v50 = vmul.f32 %v3491_v57, %v3408_v55  ;;  %v3410_v27 = vpop.f32.mrb[87].mxu0 }
 0x53e   :  { %v3524_v26 = vmul.f32 %v3492_v7, %v3410_v27  ;;  %v3511_v27 = vld [vmem:[%s8385_s7 + $0xd0] sm:$0xff] }
 0x53f   :  { %v4518_v6 = vpack.c.bf16 %v3523_v50, %v3521_v43  ;;  %v3509_v50 = vld [vmem:[%s8385_s7 + $0xc0] sm:$0xff] }
 0x540   :  { %v4516_v24 = vpack.c.bf16 %v3524_v26, %v3522_v51  ;;  %v3414_v1 = vpop.f32.mrb[88].mxu0  ;;  %v3510_v51 = vld [vmem:[%s8385_s7 + $0xc8] sm:$0xff]  ;;  %v3512_v26 = vld [vmem:[%s8385_s7 + $0xd8] sm:$0xff] }
 0x541   :  { %v3416_v32 = vpop.f32.mrb[89].mxu0  ;;  %v3525_v62 = vmul.f32 %v3493_v42, %v3414_v1 }
 0x542   :  { %4517 = vmatprep.subr.bf16.mxu0 %v4516_v24  ;;  %v3526_v54 = vmul.f32 %v3494_v21, %v3416_v32 }
 0x543   :  { %4519 = vmatpush1.bf16.msra.mxu0 %v4518_v6 }
 0x544   :  { %v3420_v35 = vpop.f32.mrb[90].mxu0 }
 0x545   :  { %v3527_v28 = vmul.f32 %v3495_v13, %v3420_v35  ;;  %v3422_v16 = vpop.f32.mrb[91].mxu0 }
 0x546   :  { %v3528_v52 = vmul.f32 %v3496_v20, %v3422_v16  ;;  %v3515_v16 = vld [vmem:[%s8385_s7 + $0xf0] sm:$0xff] }
 0x547   :  { %v4522_v14 = vpack.c.bf16 %v3527_v28, %v3525_v62  ;;  %v3513_v28 = vld [vmem:[%s8385_s7 + $0xe0] sm:$0xff] }
 0x548   :  { %v4520_v0 = vpack.c.bf16 %v3528_v52, %v3526_v54  ;;  %v3426_v34 = vpop.f32.mrb[92].mxu0  ;;  %v3514_v54 = vld [vmem:[%s8385_s7 + $0xe8] sm:$0xff]  ;;  %v3516_v52 = vld [vmem:[%s8385_s7 + $0xf8] sm:$0xff] }
 0x549   :  { %v3428_v9 = vpop.f32.mrb[93].mxu0  ;;  %v3529_v45 = vmul.f32 %v3497_v5, %v3426_v34 }
 0x54a   :  { %4521 = vmatprep.subr.bf16.mxu0 %v4520_v0  ;;  %v3530_v19 = vmul.f32 %v3498_v15, %v3428_v9 }
 0x54b   :  { %4523 = vmatpush1.bf16.msra.mxu0 %v4522_v14 }
 0x54c   :  { %v3432_v11 = vpop.f32.mrb[94].mxu0 }
 0x54d   :  { %v3531_v39 = vmul.f32 %v3499_v10, %v3432_v11  ;;  %v3434_v31 = vpop.f32.mrb[95].mxu0  ;;  %v3549_v11 = vld [vmem:[%s8386_s8] sm:$0xff] }
 0x54e   :  { %v3532_v46 = vmul.f32 %v3500_v4, %v3434_v31 }
 0x54f   :  { %v4526_v59 = vpack.c.bf16 %v3531_v39, %v3529_v45  ;;  %v3639_v45 = vld [vmem:[%s8384_s9 + $0x90] sm:$0xff]  ;;  %v3640_v39 = vld [vmem:[%s8384_s9 + $0x98] sm:$0xff] }
 0x550   :  { %v4524_v22 = vpack.c.bf16 %v3532_v46, %v3530_v19  ;;  %v3438_v33 = vpop.f32.mrb[96].mxu0  ;;  %v4572_v31 = vpack.c.bf16 %v3640_v39, %v3639_v45 }
 0x551   :  { %v3440_v3 = vpop.f32.mrb[97].mxu0  ;;  %v3533_v56 = vmul.f32 %v3501_v44, %v3438_v33 }
 0x552   :  { %4525 = vmatprep.subr.bf16.mxu0 %v4524_v22  ;;  %v3534_v40 = vmul.f32 %v3502_v49, %v3440_v3  ;;  %4573 = vmatpush1.bf16.msra.mxu1 %v4572_v31 }
 0x553   :  { %4527 = vmatpush1.bf16.msra.mxu0 %v4526_v59  ;;  %v3790_v59 = vld [vmem:[%s8387_s10] ss:$0 sm:$0xff] }
 0x554   :  { %v3444_v63 = vpop.f32.mrb[98].mxu0 }
 0x555   :  { %v3535_v8 = vmul.f32 %v3503_v41, %v3444_v63  ;;  %v3446_v36 = vpop.f32.mrb[99].mxu0 }
 0x556   :  { %v3536_v61 = vmul.f32 %v3504_v23, %v3446_v36 }
 0x557   :  { %v4530_v53 = vpack.c.bf16 %v3535_v8, %v3533_v56 }
 0x558   :  { %v4528_v25 = vpack.c.bf16 %v3536_v61, %v3534_v40  ;;  %v3450_v38 = vpop.f32.mrb[100].mxu0 }
 0x559   :  { %v3452_v12 = vpop.f32.mrb[101].mxu0  ;;  %v3537_v48 = vmul.f32 %v3505_v29, %v3450_v38 }
 0x55a   :  { %4529 = vmatprep.subr.bf16.mxu0 %v4528_v25  ;;  %v3538_v17 = vmul.f32 %v3506_v37, %v3452_v12 }
 0x55b   :  { %4531 = vmatpush1.bf16.msra.mxu0 %v4530_v53 }
 0x55c   :  { %v3456_v18 = vpop.f32.mrb[102].mxu0 }
 0x55d   :  { %v3539_v30 = vmul.f32 %v3507_v58, %v3456_v18  ;;  %v3458_v2 = vpop.f32.mrb[103].mxu0 }
 0x55e   :  { %v3540_v57 = vmul.f32 %v3508_v47, %v3458_v2 }
 0x55f   :  { %v4534_v60 = vpack.c.bf16 %v3539_v30, %v3537_v48 }
 0x560   :  { %v4532_v7 = vpack.c.bf16 %v3540_v57, %v3538_v17  ;;  %v3462_v55 = vpop.f32.mrb[104].mxu0 }
 0x561   :  { %v3464_v43 = vpop.f32.mrb[105].mxu0  ;;  %v3541_v24 = vmul.f32 %v3509_v50, %v3462_v55 }
 0x562   :  { %4533 = vmatprep.subr.bf16.mxu0 %v4532_v7  ;;  %v3542_v42 = vmul.f32 %v3510_v51, %v3464_v43 }
 0x563   :  { %4535 = vmatpush1.bf16.msra.mxu0 %v4534_v60 }
 0x564   :  { %v3468_v6 = vpop.f32.mrb[106].mxu0 }
 0x565   :  { %v3543_v1 = vmul.f32 %v3511_v27, %v3468_v6  ;;  %v3470_v32 = vpop.f32.mrb[107].mxu0 }
 0x566   :  { %v3544_v13 = vmul.f32 %v3512_v26, %v3470_v32 }
 0x567   :  { %v4538_v21 = vpack.c.bf16 %v3543_v1, %v3541_v24 }
 0x568   :  { %v4536_v20 = vpack.c.bf16 %v3544_v13, %v3542_v42  ;;  %v3474_v35 = vpop.f32.mrb[108].mxu0 }
 0x569   :  { %v3476_v62 = vpop.f32.mrb[109].mxu0  ;;  %v3545_v0 = vmul.f32 %v3513_v28, %v3474_v35 }
 0x56a   :  { %4537 = vmatprep.subr.bf16.mxu0 %v4536_v20  ;;  %v3546_v5 = vmul.f32 %v3514_v54, %v3476_v62 }
 0x56b   :  { %4539 = vmatpush1.bf16.msra.mxu0 %v4538_v21 }
 0x56c   :  { %v3480_v14 = vpop.f32.mrb[110].mxu0 }
 0x56d   :  { %v3547_v34 = vmul.f32 %v3515_v16, %v3480_v14  ;;  %v3482_v9 = vpop.f32.mrb[111].mxu0 }
 0x56e   :  { %v3548_v10 = vmul.f32 %v3516_v52, %v3482_v9 }
 0x56f   :  { %v4542_v15 = vpack.c.bf16 %v3547_v34, %v3545_v0 }
 0x570   :  { %v4540_v4 = vpack.c.bf16 %v3548_v10, %v3546_v5 }
 0x572   :  { %4541 = vmatprep.subr.bf16.mxu0 %v4540_v4 }
 0x573   :  { %4543 = vmatpush1.bf16.msra.mxu0 %v4542_v15 }
 0x576   :  { %3615 = vmatmul.mubr.f32.vlgmr.msra.gmra.mrb[112].mxu0 %v3549_v11 }
 0x649   :  { %v3616_v19 = vpop.f32.mrb[112].mxu0 }
 0x64a   :  { %v3618_v46 = vpop.f32.mrb[113].mxu0 }
 0x64b   :  { %3791 = vmatprep.mubr.msk.f32.mxu1 %vm598_vm3, %v3618_v46 }
 0x64c   :  { %3716 = vmatmul.mubr.f32.vlgmr.msra.gmra.mrb[88].mxu1 %v3616_v19 }
 0x71f   :  { %v3717_v22 = vpop.f32.mrb[88].mxu1 }
 0x720   :  { %v3718_v33 = vadd.f32 %v3790_v59, %v3717_v22  ;;  %v3719_v3 = vpop.f32.mrb[89].mxu1 }
 0x722   :  { %3721 = vst [vmem:[%s8388_s11] sm:$0xff] %v3718_v33 }

</bundles_post_ra>
